<compile_context>
chip_gen: v5e
topology: v5e:2x2
jax: 0.10.0
libtpu: 0.0.40
codegen_flags: <defaults>
</compile_context>

<pallas_src>
import jax
import jax.numpy as jnp
import numpy as np
from jax.experimental import pallas as pl
from jax.experimental.pallas import tpu as pltpu


# ----------------------------------------------------------------------------
# Fused Pallas kernel: whole CNN forward for one batch tile.
# ----------------------------------------------------------------------------
def _cnn_fused_kernel(x_ref, b1_ref, s1_ref, b2_ref, s2_ref, wfc_ref, fcb_ref,
                      o_ref):
    """x_ref:  (TB, 4, 7, 28) bf16, x_ref[b, k, s, :] = image row 4*s + k
       b1_ref: (84, 832)  bf16  banded conv1 weight (BN1 scale folded)
       s1_ref: (1, 416)   f32   conv1 bias/BN1 shift, tiled over 13 pooled cols
       b2_ref: (1248, 320)bf16  banded conv2 weight (BN2 scale folded)
       s2_ref: (1, 160)   f32   conv2 bias/BN2 shift, tiled over 5 pooled cols
       wfc_ref:(800, 10)  bf16  FC weight, columns permuted to (U, V, c) order
       fcb_ref:(1, 10)    f32
       o_ref:  (TB, 1, 10) f32  logits per image
    """
    TB = x_ref.shape[0]
    xt = x_ref[...]
    b1 = b1_ref[...]
    b2 = b2_ref[...]
    wfc = wfc_ref[...]
    s1 = s1_ref[...]
    s2 = s2_ref[...]
    fcb = fcb_ref[...]

    for b in range(TB):                      # static unroll over the batch tile
        xb = xt[b]                           # (4, 7, 28)
        r0, r1, r2, r3 = xb[0], xb[1], xb[2], xb[3]   # image rows 4s+k, (7, 28)

        # ---- conv1 + BN1 + ReLU + 2x2 maxpool ------------------------------
        # LHS rows are pooled rows P (even-P blocks: 7 rows, odd-P: 6 rows);
        # lanes = (ki, absolute input column).  Conv output row = 2P + di.
        lhs_e0 = jnp.concatenate([r0, r1, r2], axis=1)                    # P even, di=0
        lhs_o0 = jnp.concatenate([r2[0:6], r3[0:6], r0[1:7]], axis=1)     # P odd,  di=0
        lhs_e1 = jnp.concatenate([r1, r2, r3], axis=1)                    # P even, di=1
        lhs_o1 = jnp.concatenate([r3[0:6], r0[1:7], r1[1:7]], axis=1)     # P odd,  di=1

        def conv1(lhs):
            y = jnp.dot(lhs, b1, preferred_element_type=jnp.float32)      # (., 832)
            return jnp.maximum(y[:, 0:416], y[:, 416:832])                # max over dj

        h_even = jnp.maximum(conv1(lhs_e0), conv1(lhs_e1))                # P = 0,2,...,12
        h_odd = jnp.maximum(conv1(lhs_o0), conv1(lhs_o1))                 # P = 1,3,...,11
        h_even = jnp.maximum(h_even + s1, 0.0).astype(jnp.bfloat16)       # (7, 416)
        h_odd = jnp.maximum(h_odd + s1, 0.0).astype(jnp.bfloat16)         # (6, 416)

        # ---- conv2 + BN2 + ReLU + 2x2 maxpool ------------------------------
        # LHS rows are pool2 rows U=0..4; lanes = (ki, pooled-1 column, channel).
        lhs2_0 = jnp.concatenate([h_even[0:5], h_odd[0:5], h_even[1:6]], axis=1)  # rows 2U
        lhs2_1 = jnp.concatenate([h_odd[0:5], h_even[1:6], h_odd[1:6]], axis=1)   # rows 2U+1

        def conv2(lhs):
            y = jnp.dot(lhs, b2, preferred_element_type=jnp.float32)      # (5, 320)
            return jnp.maximum(y[:, 0:160], y[:, 160:320])                # max over dj

        g = jnp.maximum(conv2(lhs2_0), conv2(lhs2_1))                     # (5, 160)
        g = jnp.maximum(g + s2, 0.0).astype(jnp.bfloat16)

        # ---- flatten (U, V, c) + FC ----------------------------------------
        # TODO(synk): Dropout(0.25) is training-only; eval-mode forward = identity.
        feat = jnp.concatenate([g[0:1], g[1:2], g[2:3], g[3:4], g[4:5]],
                               axis=1)                                    # (1, 800)
        logits = jnp.dot(feat, wfc, preferred_element_type=jnp.float32) + fcb
        o_ref[b] = logits                                                 # (1, 10)


# ----------------------------------------------------------------------------
# pallas_call wrapper
# ----------------------------------------------------------------------------
def _pick_tb(batch):
    # Bounded batch tile: 1 image/step for small batches (>=2 parallel steps on
    # v7x for B>=2), 8 images/step for large batches to amortize step overhead.
    return 8 if batch >= 64 else 1


@jax.jit
def cnn_forward(x_nchw, prep):
    """x: (B, 1, 28, 28) float32 -> logits (B, 10) float32 (eval-mode)."""
    B = x_nchw.shape[0]
    TB = _pick_tb(B)
    B_pad = ((B + TB - 1) // TB) * TB
    x = x_nchw.reshape(B, 28, 28)
    if B_pad != B:
        x = jnp.concatenate([x, jnp.zeros((B_pad - B, 28, 28), x.dtype)], axis=0)
    # Row-split mod 4 (pure layout permute, no expansion): x4[b,k,s,:] = x[b,4s+k,:]
    x4 = x.reshape(B_pad, 7, 4, 28).transpose(0, 2, 1, 3).astype(jnp.bfloat16)

    out = pl.pallas_call(
        _cnn_fused_kernel,
        out_shape=jax.ShapeDtypeStruct((B_pad, 1, 10), jnp.float32),
        grid=(B_pad // TB,),
        in_specs=[
            pl.BlockSpec((TB, 4, 7, 28), lambda i: (i, 0, 0, 0)),
            # Constant index maps -> weights DMA'd once, VMEM-resident after.
            pl.BlockSpec((84, 832), lambda i: (0, 0)),
            pl.BlockSpec((1, 416), lambda i: (0, 0)),
            pl.BlockSpec((1248, 320), lambda i: (0, 0)),
            pl.BlockSpec((1, 160), lambda i: (0, 0)),
            pl.BlockSpec((800, 10), lambda i: (0, 0)),
            pl.BlockSpec((1, 10), lambda i: (0, 0)),
        ],
        out_specs=pl.BlockSpec((TB, 1, 10), lambda i: (i, 0, 0)),
        compiler_params=pltpu.CompilerParams(
            dimension_semantics=("parallel",)),
    )(x4, prep["b1"], prep["s1"], prep["b2"], prep["s2"],
      prep["wfc"], prep["fcb"])
    return out.reshape(B_pad, 10)[:B]


# ----------------------------------------------------------------------------
# One-time parameter preparation (BN folding, banded matrices, FC permutation)
# ----------------------------------------------------------------------------
def prepare_params(params, eps=1e-5):
    f32 = np.float32
    w1 = np.asarray(params["w1"], f32)     # (32, 1, 3, 3)  torch OIHW
    b1 = np.asarray(params["b1"], f32)
    g1 = np.asarray(params["g1"], f32)
    be1 = np.asarray(params["be1"], f32)
    m1 = np.asarray(params["m1"], f32)
    v1 = np.asarray(params["v1"], f32)
    w2 = np.asarray(params["w2"], f32)     # (32, 32, 3, 3)
    b2 = np.asarray(params["b2"], f32)
    g2 = np.asarray(params["g2"], f32)
    be2 = np.asarray(params["be2"], f32)
    m2 = np.asarray(params["m2"], f32)
    v2 = np.asarray(params["v2"], f32)
    fcw = np.asarray(params["fcw"], f32)   # (10, 800)
    fcb = np.asarray(params["fcb"], f32)   # (10,)

    def bf16_round(a):
        return np.asarray(jnp.asarray(a, jnp.bfloat16).astype(jnp.float32))

    scale1 = g1 / np.sqrt(v1 + eps)                                  # (32,)
    w1s = np.transpose(w1, (2, 3, 1, 0))[:, :, 0, :] * scale1        # (3,3,32)
    shift1 = be1 - m1 * scale1 + b1 * scale1
    scale2 = g2 / np.sqrt(v2 + eps)
    w2s = np.transpose(w2, (2, 3, 1, 0)) * scale2                    # (3,3,32,32)
    shift2 = be2 - m2 * scale2 + b2 * scale2
    w1s = bf16_round(w1s)
    w2s = bf16_round(w2s)

    # Banded conv1 weight (84, 832): rows = (ki, input col jj); columns split
    # into dj=0 / dj=1 halves of 13 pooled columns x 32 channels.
    B1 = np.zeros((3 * 28, 2 * 13 * 32), f32)
    for ki in range(3):
        for kj in range(3):
            for dj in range(2):
                for Q in range(13):
                    jj = 2 * Q + dj + kj
                    col = dj * 416 + Q * 32
                    B1[ki * 28 + jj, col:col + 32] = w1s[ki, kj]

    # Banded conv2 weight (1248, 320): rows = (ki, pooled-1 col q, cin);
    # columns split into dj=0 / dj=1 halves of 5 pooled columns x 32 channels.
    B2 = np.zeros((3 * 13 * 32, 2 * 5 * 32), f32)
    for ki in range(3):
        for kj in range(3):
            for dj in range(2):
                for V in range(5):
                    q = 2 * V + dj + kj
                    B2[ki * 416 + q * 32: ki * 416 + (q + 1) * 32,
                       dj * 160 + V * 32: dj * 160 + (V + 1) * 32] = w2s[ki, kj]

    # FC weight: permute columns from torch NCHW-flatten (c,U,V) to (U,V,c).
    fcw_p = np.transpose(fcw.reshape(10, 32, 5, 5), (2, 3, 1, 0)).reshape(800, 10)
    fcw_p = bf16_round(fcw_p)

    return {
        "b1": jnp.asarray(B1, jnp.bfloat16),
        "s1": jnp.asarray(np.tile(shift1, 13)[None, :], jnp.float32),   # (1, 416)
        "b2": jnp.asarray(B2, jnp.bfloat16),
        "s2": jnp.asarray(np.tile(shift2, 5)[None, :], jnp.float32),    # (1, 160)
        "wfc": jnp.asarray(fcw_p, jnp.bfloat16),                        # (800, 10)
        "fcb": jnp.asarray(fcb[None, :], jnp.float32),                  # (1, 10)
        # f32 copies of the (bf16-rounded) folded weights for the pure-JAX ref.
        "ref_w1": jnp.asarray(w1s), "ref_s1": jnp.asarray(shift1),
        "ref_w2": jnp.asarray(w2s), "ref_s2": jnp.asarray(shift2),
        "ref_wfc": jnp.asarray(fcw_p), "ref_fcb": jnp.asarray(fcb),
    }


# ----------------------------------------------------------------------------
# Pure-JAX reference (same bf16-rounded folded weights) for a correctness check
# ----------------------------------------------------------------------------
@jax.jit
def reference_forward(x_nchw, prep):
    B = x_nchw.shape[0]
    xb = x_nchw.reshape(B, 28, 28).astype(jnp.bfloat16).astype(jnp.float32)
    w1, s1 = prep["ref_w1"], prep["ref_s1"]
    y1 = jnp.zeros((B, 26, 26, 32), jnp.float32)
    for ki in range(3):
        for kj in range(3):
            y1 = y1 + xb[:, ki:ki + 26, kj:kj + 26, None] * w1[ki, kj][None, None, None, :]
    p1 = jnp.max(y1.reshape(B, 13, 2, 13, 2, 32), axis=(2, 4))
    h = jnp.maximum(p1 + s1, 0.0).astype(jnp.bfloat16).astype(jnp.float32)

    w2, s2 = prep["ref_w2"], prep["ref_s2"]
    y2 = jnp.zeros((B, 10, 10, 32), jnp.float32)
    for ki in range(3):
        for kj in range(3):
            y2 = y2 + jnp.einsum("bijc,cd->bijd",
                                 h[:, ki:ki + 10, kj:kj + 10, :], w2[ki, kj])
    p2 = jnp.max(y2.reshape(B, 5, 2, 5, 2, 32), axis=(2, 4))
    g = jnp.maximum(p2 + s2, 0.0).astype(jnp.bfloat16).astype(jnp.float32)
    feat = g.reshape(B, 800)                                   # (U, V, c) order
    return feat @ prep["ref_wfc"] + prep["ref_fcb"][None, :]


# ----------------------------------------------------------------------------
# Deterministic random parameters (stand-in for trained torch weights)
# ----------------------------------------------------------------------------
def init_params(key):
    ks = jax.random.split(key, 14)
    f = lambda k, shp, s=0.1: (s * jax.random.normal(k, shp)).astype(jnp.float32)
    pv = lambda k, n: (1.0 + 0.1 * jnp.abs(jax.random.normal(k, (n,)))).astype(jnp.float32)
    return {
        "w1": f(ks[0], (32, 1, 3, 3)),  "b1": f(ks[1], (32,)),
        "g1": 1.0 + f(ks[2], (32,)),    "be1": f(ks[3], (32,)),
        "m1": f(ks[4], (32,)),          "v1": pv(ks[5], 32),
        "w2": f(ks[6], (32, 32, 3, 3)), "b2": f(ks[7], (32,)),
        "g2": 1.0 + f(ks[8], (32,)),    "be2": f(ks[9], (32,)),
        "m2": f(ks[10], (32,)),         "v2": pv(ks[11], 32),
        "fcw": f(ks[12], (10, 800)),    "fcb": f(ks[13], (10,)),
    }


if __name__ == "__main__":
    key = jax.random.PRNGKey(0)
    k_x, k_p = jax.random.split(key)
    # Input shape forced by fc = Linear(5*5*32, 10): MNIST-like (B, 1, 28, 28).
    x = jax.random.normal(k_x, (2, 1, 28, 28), dtype=jnp.float32)
    params = init_params(k_p)
    prep = prepare_params(params)       # one-time weight folding / layout prep

    out = jax.block_until_ready(cnn_forward(x, prep))
    assert out.shape == (2, 10), out.shape

    ref = jax.block_until_ready(reference_forward(x, prep))
    err = float(jnp.max(jnp.abs(out - ref)))
    assert err < 5e-2, f"kernel vs reference max abs err = {err}"
    print("KERNEL_OK")
</pallas_src>

<mosaic_0001>
module attributes {stable_mosaic.version = 11 : i64} {
  func.func @_cnn_fused_kernel(%arg0: i32, %arg1: memref<1x4x7x28xbf16, #tpu.memory_space<vmem>>, %arg2: memref<84x832xbf16, #tpu.memory_space<vmem>>, %arg3: memref<1x416xf32, #tpu.memory_space<vmem>>, %arg4: memref<1248x320xbf16, #tpu.memory_space<vmem>>, %arg5: memref<1x160xf32, #tpu.memory_space<vmem>>, %arg6: memref<800x10xbf16, #tpu.memory_space<vmem>>, %arg7: memref<1x10xf32, #tpu.memory_space<vmem>>, %arg8: memref<1x1x10xf32, #tpu.memory_space<vmem>>) attributes {dimension_semantics = [#tpu.dimension_semantics<parallel>], iteration_bounds = array<i64: 2>, scalar_prefetch = 0 : i64, scratch_operands = 0 : i64, tpu.core_type = #tpu.core_type<tc>, window_params = [{transform_indices = @transform_0, window_bounds = array<i64: 1, 4, 7, 28>}, {pipeline_mode = #tpu.pipeline_mode<synchronous>, transform_indices = @transform_1, window_bounds = array<i64: 84, 832>}, {pipeline_mode = #tpu.pipeline_mode<synchronous>, transform_indices = @transform_2, window_bounds = array<i64: 1, 416>}, {pipeline_mode = #tpu.pipeline_mode<synchronous>, transform_indices = @transform_3, window_bounds = array<i64: 1248, 320>}, {pipeline_mode = #tpu.pipeline_mode<synchronous>, transform_indices = @transform_4, window_bounds = array<i64: 1, 160>}, {pipeline_mode = #tpu.pipeline_mode<synchronous>, transform_indices = @transform_5, window_bounds = array<i64: 800, 10>}, {pipeline_mode = #tpu.pipeline_mode<synchronous>, transform_indices = @transform_6, window_bounds = array<i64: 1, 10>}, {transform_indices = @transform_7, window_bounds = array<i64: 1, 1, 10>}]} {
    %c0 = arith.constant 0 : index
    %c0_0 = arith.constant 0 : index
    %c0_1 = arith.constant 0 : index
    %c0_2 = arith.constant 0 : index
    %0 = vector.load %arg1[%c0, %c0_0, %c0_1, %c0_2] : memref<1x4x7x28xbf16, #tpu.memory_space<vmem>>, vector<1x4x7x28xbf16>
    %c0_3 = arith.constant 0 : index
    %c0_4 = arith.constant 0 : index
    %1 = vector.load %arg2[%c0_3, %c0_4] : memref<84x832xbf16, #tpu.memory_space<vmem>>, vector<84x832xbf16>
    %c0_5 = arith.constant 0 : index
    %c0_6 = arith.constant 0 : index
    %2 = vector.load %arg4[%c0_5, %c0_6] : memref<1248x320xbf16, #tpu.memory_space<vmem>>, vector<1248x320xbf16>
    %c0_7 = arith.constant 0 : index
    %c0_8 = arith.constant 0 : index
    %3 = vector.load %arg6[%c0_7, %c0_8] : memref<800x10xbf16, #tpu.memory_space<vmem>>, vector<800x10xbf16>
    %c0_9 = arith.constant 0 : index
    %c0_10 = arith.constant 0 : index
    %4 = vector.load %arg3[%c0_9, %c0_10] : memref<1x416xf32, #tpu.memory_space<vmem>>, vector<1x416xf32>
    %c0_11 = arith.constant 0 : index
    %c0_12 = arith.constant 0 : index
    %5 = vector.load %arg5[%c0_11, %c0_12] : memref<1x160xf32, #tpu.memory_space<vmem>>, vector<1x160xf32>
    %c0_13 = arith.constant 0 : index
    %c0_14 = arith.constant 0 : index
    %6 = vector.load %arg7[%c0_13, %c0_14] : memref<1x10xf32, #tpu.memory_space<vmem>>, vector<1x10xf32>
    %7 = vector.shape_cast %0 : vector<1x4x7x28xbf16> to vector<4x7x28xbf16>
    %8 = vector.extract_strided_slice %7 {offsets = [0, 0, 0], sizes = [1, 7, 28], strides = [1, 1, 1]} : vector<4x7x28xbf16> to vector<1x7x28xbf16>
    %9 = vector.shape_cast %8 : vector<1x7x28xbf16> to vector<7x28xbf16>
    %10 = vector.extract_strided_slice %7 {offsets = [1, 0, 0], sizes = [1, 7, 28], strides = [1, 1, 1]} : vector<4x7x28xbf16> to vector<1x7x28xbf16>
    %11 = vector.shape_cast %10 : vector<1x7x28xbf16> to vector<7x28xbf16>
    %12 = vector.extract_strided_slice %7 {offsets = [2, 0, 0], sizes = [1, 7, 28], strides = [1, 1, 1]} : vector<4x7x28xbf16> to vector<1x7x28xbf16>
    %13 = vector.shape_cast %12 : vector<1x7x28xbf16> to vector<7x28xbf16>
    %14 = vector.extract_strided_slice %7 {offsets = [3, 0, 0], sizes = [1, 7, 28], strides = [1, 1, 1]} : vector<4x7x28xbf16> to vector<1x7x28xbf16>
    %15 = vector.shape_cast %14 : vector<1x7x28xbf16> to vector<7x28xbf16>
    %16 = tpu.concatenate %9, %11, %13 in 1 : vector<7x28xbf16>, vector<7x28xbf16>, vector<7x28xbf16> -> vector<7x84xbf16>
    %17 = vector.extract_strided_slice %13 {offsets = [0, 0], sizes = [6, 28], strides = [1, 1]} : vector<7x28xbf16> to vector<6x28xbf16>
    %18 = vector.extract_strided_slice %15 {offsets = [0, 0], sizes = [6, 28], strides = [1, 1]} : vector<7x28xbf16> to vector<6x28xbf16>
    %19 = vector.extract_strided_slice %9 {offsets = [1, 0], sizes = [6, 28], strides = [1, 1]} : vector<7x28xbf16> to vector<6x28xbf16>
    %20 = tpu.concatenate %17, %18, %19 in 1 : vector<6x28xbf16>, vector<6x28xbf16>, vector<6x28xbf16> -> vector<6x84xbf16>
    %21 = tpu.concatenate %11, %13, %15 in 1 : vector<7x28xbf16>, vector<7x28xbf16>, vector<7x28xbf16> -> vector<7x84xbf16>
    %22 = vector.extract_strided_slice %15 {offsets = [0, 0], sizes = [6, 28], strides = [1, 1]} : vector<7x28xbf16> to vector<6x28xbf16>
    %23 = vector.extract_strided_slice %9 {offsets = [1, 0], sizes = [6, 28], strides = [1, 1]} : vector<7x28xbf16> to vector<6x28xbf16>
    %24 = vector.extract_strided_slice %11 {offsets = [1, 0], sizes = [6, 28], strides = [1, 1]} : vector<7x28xbf16> to vector<6x28xbf16>
    %25 = tpu.concatenate %22, %23, %24 in 1 : vector<6x28xbf16>, vector<6x28xbf16>, vector<6x28xbf16> -> vector<6x84xbf16>
    %cst = arith.constant dense<0.000000e+00> : vector<7x832xf32>
    %26 = tpu.matmul %16, %1, %cst {dimension_numbers = #tpu.dot_dimension_numbers<[1], [0], [0], [1], [0, 0, 1, 1], [], []>} : vector<7x84xbf16>, vector<84x832xbf16>, vector<7x832xf32> -> vector<7x832xf32>
    %27 = vector.extract_strided_slice %26 {offsets = [0, 0], sizes = [7, 416], strides = [1, 1]} : vector<7x832xf32> to vector<7x416xf32>
    %28 = vector.extract_strided_slice %26 {offsets = [0, 416], sizes = [7, 416], strides = [1, 1]} : vector<7x832xf32> to vector<7x416xf32>
    %29 = arith.maximumf %27, %28 : vector<7x416xf32>
    %cst_15 = arith.constant dense<0.000000e+00> : vector<7x832xf32>
    %30 = tpu.matmul %21, %1, %cst_15 {dimension_numbers = #tpu.dot_dimension_numbers<[1], [0], [0], [1], [0, 0, 1, 1], [], []>} : vector<7x84xbf16>, vector<84x832xbf16>, vector<7x832xf32> -> vector<7x832xf32>
    %31 = vector.extract_strided_slice %30 {offsets = [0, 0], sizes = [7, 416], strides = [1, 1]} : vector<7x832xf32> to vector<7x416xf32>
    %32 = vector.extract_strided_slice %30 {offsets = [0, 416], sizes = [7, 416], strides = [1, 1]} : vector<7x832xf32> to vector<7x416xf32>
    %33 = arith.maximumf %31, %32 : vector<7x416xf32>
    %34 = arith.maximumf %29, %33 : vector<7x416xf32>
    %cst_16 = arith.constant dense<0.000000e+00> : vector<6x832xf32>
    %35 = tpu.matmul %20, %1, %cst_16 {dimension_numbers = #tpu.dot_dimension_numbers<[1], [0], [0], [1], [0, 0, 1, 1], [], []>} : vector<6x84xbf16>, vector<84x832xbf16>, vector<6x832xf32> -> vector<6x832xf32>
    %36 = vector.extract_strided_slice %35 {offsets = [0, 0], sizes = [6, 416], strides = [1, 1]} : vector<6x832xf32> to vector<6x416xf32>
    %37 = vector.extract_strided_slice %35 {offsets = [0, 416], sizes = [6, 416], strides = [1, 1]} : vector<6x832xf32> to vector<6x416xf32>
    %38 = arith.maximumf %36, %37 : vector<6x416xf32>
    %cst_17 = arith.constant dense<0.000000e+00> : vector<6x832xf32>
    %39 = tpu.matmul %25, %1, %cst_17 {dimension_numbers = #tpu.dot_dimension_numbers<[1], [0], [0], [1], [0, 0, 1, 1], [], []>} : vector<6x84xbf16>, vector<84x832xbf16>, vector<6x832xf32> -> vector<6x832xf32>
    %40 = vector.extract_strided_slice %39 {offsets = [0, 0], sizes = [6, 416], strides = [1, 1]} : vector<6x832xf32> to vector<6x416xf32>
    %41 = vector.extract_strided_slice %39 {offsets = [0, 416], sizes = [6, 416], strides = [1, 1]} : vector<6x832xf32> to vector<6x416xf32>
    %42 = arith.maximumf %40, %41 : vector<6x416xf32>
    %43 = arith.maximumf %38, %42 : vector<6x416xf32>
    %44 = vector.broadcast %4 : vector<1x416xf32> to vector<7x416xf32>
    %45 = arith.addf %34, %44 : vector<7x416xf32>
    %cst_18 = arith.constant 0.000000e+00 : f32
    %46 = vector.broadcast %cst_18 : f32 to vector<7x416xf32>
    %47 = arith.maximumf %45, %46 : vector<7x416xf32>
    %48 = arith.truncf %47 : vector<7x416xf32> to vector<7x416xbf16>
    %49 = vector.broadcast %4 : vector<1x416xf32> to vector<6x416xf32>
    %50 = arith.addf %43, %49 : vector<6x416xf32>
    %cst_19 = arith.constant 0.000000e+00 : f32
    %51 = vector.broadcast %cst_19 : f32 to vector<6x416xf32>
    %52 = arith.maximumf %50, %51 : vector<6x416xf32>
    %53 = arith.truncf %52 : vector<6x416xf32> to vector<6x416xbf16>
    %54 = vector.extract_strided_slice %48 {offsets = [0, 0], sizes = [5, 416], strides = [1, 1]} : vector<7x416xbf16> to vector<5x416xbf16>
    %55 = vector.extract_strided_slice %53 {offsets = [0, 0], sizes = [5, 416], strides = [1, 1]} : vector<6x416xbf16> to vector<5x416xbf16>
    %56 = vector.extract_strided_slice %48 {offsets = [1, 0], sizes = [5, 416], strides = [1, 1]} : vector<7x416xbf16> to vector<5x416xbf16>
    %57 = tpu.concatenate %54, %55, %56 in 1 : vector<5x416xbf16>, vector<5x416xbf16>, vector<5x416xbf16> -> vector<5x1248xbf16>
    %58 = vector.extract_strided_slice %53 {offsets = [0, 0], sizes = [5, 416], strides = [1, 1]} : vector<6x416xbf16> to vector<5x416xbf16>
    %59 = vector.extract_strided_slice %48 {offsets = [1, 0], sizes = [5, 416], strides = [1, 1]} : vector<7x416xbf16> to vector<5x416xbf16>
    %60 = vector.extract_strided_slice %53 {offsets = [1, 0], sizes = [5, 416], strides = [1, 1]} : vector<6x416xbf16> to vector<5x416xbf16>
    %61 = tpu.concatenate %58, %59, %60 in 1 : vector<5x416xbf16>, vector<5x416xbf16>, vector<5x416xbf16> -> vector<5x1248xbf16>
    %cst_20 = arith.constant dense<0.000000e+00> : vector<5x320xf32>
    %62 = tpu.matmul %57, %2, %cst_20 {dimension_numbers = #tpu.dot_dimension_numbers<[1], [0], [0], [1], [0, 0, 1, 1], [], []>} : vector<5x1248xbf16>, vector<1248x320xbf16>, vector<5x320xf32> -> vector<5x320xf32>
    %63 = vector.extract_strided_slice %62 {offsets = [0, 0], sizes = [5, 160], strides = [1, 1]} : vector<5x320xf32> to vector<5x160xf32>
    %64 = vector.extract_strided_slice %62 {offsets = [0, 160], sizes = [5, 160], strides = [1, 1]} : vector<5x320xf32> to vector<5x160xf32>
    %65 = arith.maximumf %63, %64 : vector<5x160xf32>
    %cst_21 = arith.constant dense<0.000000e+00> : vector<5x320xf32>
    %66 = tpu.matmul %61, %2, %cst_21 {dimension_numbers = #tpu.dot_dimension_numbers<[1], [0], [0], [1], [0, 0, 1, 1], [], []>} : vector<5x1248xbf16>, vector<1248x320xbf16>, vector<5x320xf32> -> vector<5x320xf32>
    %67 = vector.extract_strided_slice %66 {offsets = [0, 0], sizes = [5, 160], strides = [1, 1]} : vector<5x320xf32> to vector<5x160xf32>
    %68 = vector.extract_strided_slice %66 {offsets = [0, 160], sizes = [5, 160], strides = [1, 1]} : vector<5x320xf32> to vector<5x160xf32>
    %69 = arith.maximumf %67, %68 : vector<5x160xf32>
    %70 = arith.maximumf %65, %69 : vector<5x160xf32>
    %71 = vector.broadcast %5 : vector<1x160xf32> to vector<5x160xf32>
    %72 = arith.addf %70, %71 : vector<5x160xf32>
    %cst_22 = arith.constant 0.000000e+00 : f32
    %73 = vector.broadcast %cst_22 : f32 to vector<5x160xf32>
    %74 = arith.maximumf %72, %73 : vector<5x160xf32>
    %75 = arith.truncf %74 : vector<5x160xf32> to vector<5x160xbf16>
    %76 = vector.extract_strided_slice %75 {offsets = [0, 0], sizes = [1, 160], strides = [1, 1]} : vector<5x160xbf16> to vector<1x160xbf16>
    %77 = vector.extract_strided_slice %75 {offsets = [1, 0], sizes = [1, 160], strides = [1, 1]} : vector<5x160xbf16> to vector<1x160xbf16>
    %78 = vector.extract_strided_slice %75 {offsets = [2, 0], sizes = [1, 160], strides = [1, 1]} : vector<5x160xbf16> to vector<1x160xbf16>
    %79 = vector.extract_strided_slice %75 {offsets = [3, 0], sizes = [1, 160], strides = [1, 1]} : vector<5x160xbf16> to vector<1x160xbf16>
    %80 = vector.extract_strided_slice %75 {offsets = [4, 0], sizes = [1, 160], strides = [1, 1]} : vector<5x160xbf16> to vector<1x160xbf16>
    %81 = tpu.concatenate %76, %77, %78, %79, %80 in 1 : vector<1x160xbf16>, vector<1x160xbf16>, vector<1x160xbf16>, vector<1x160xbf16>, vector<1x160xbf16> -> vector<1x800xbf16>
    %cst_23 = arith.constant dense<0.000000e+00> : vector<1x10xf32>
    %82 = tpu.matmul %81, %3, %cst_23 {dimension_numbers = #tpu.dot_dimension_numbers<[1], [0], [0], [1], [0, 0, 1, 1], [], []>} : vector<1x800xbf16>, vector<800x10xbf16>, vector<1x10xf32> -> vector<1x10xf32>
    %83 = arith.addf %82, %6 : vector<1x10xf32>
    %c0_24 = arith.constant 0 : index
    %c0_25 = arith.constant 0 : index
    %c0_26 = arith.constant 0 : index
    %84 = vector.load %arg8[%c0_24, %c0_25, %c0_26] : memref<1x1x10xf32, #tpu.memory_space<vmem>>, vector<1x1x10xf32>
    %85 = vector.shape_cast %84 : vector<1x1x10xf32> to vector<1x10xf32>
    %86 = vector.shape_cast %83 : vector<1x10xf32> to vector<1x1x10xf32>
    tpu.vector_store %arg8[%c0_24, %c0_25, %c0_26], %86 {strides = array<i32>} : memref<1x1x10xf32, #tpu.memory_space<vmem>>, vector<1x1x10xf32>,
    return
  }
  func.func @transform_0(%arg0: i32) -> (i32, i32, i32, i32) {
    %c0_i32 = arith.constant 0 : i32
    %c0_i32_0 = arith.constant 0 : i32
    %c0_i32_1 = arith.constant 0 : i32
    %c0_i32_2 = arith.constant 0 : i32
    return %arg0, %c0_i32, %c0_i32_0, %c0_i32_1 : i32, i32, i32, i32
  }
  func.func @transform_1(%arg0: i32) -> (i32, i32) {
    %c0_i32 = arith.constant 0 : i32
    %c0_i32_0 = arith.constant 0 : i32
    %c0_i32_1 = arith.constant 0 : i32
    return %c0_i32, %c0_i32_0 : i32, i32
  }
  func.func @transform_2(%arg0: i32) -> (i32, i32) {
    %c0_i32 = arith.constant 0 : i32
    %c0_i32_0 = arith.constant 0 : i32
    %c0_i32_1 = arith.constant 0 : i32
    return %c0_i32, %c0_i32_0 : i32, i32
  }
  func.func @transform_3(%arg0: i32) -> (i32, i32) {
    %c0_i32 = arith.constant 0 : i32
    %c0_i32_0 = arith.constant 0 : i32
    %c0_i32_1 = arith.constant 0 : i32
    return %c0_i32, %c0_i32_0 : i32, i32
  }
  func.func @transform_4(%arg0: i32) -> (i32, i32) {
    %c0_i32 = arith.constant 0 : i32
    %c0_i32_0 = arith.constant 0 : i32
    %c0_i32_1 = arith.constant 0 : i32
    return %c0_i32, %c0_i32_0 : i32, i32
  }
  func.func @transform_5(%arg0: i32) -> (i32, i32) {
    %c0_i32 = arith.constant 0 : i32
    %c0_i32_0 = arith.constant 0 : i32
    %c0_i32_1 = arith.constant 0 : i32
    return %c0_i32, %c0_i32_0 : i32, i32
  }
  func.func @transform_6(%arg0: i32) -> (i32, i32) {
    %c0_i32 = arith.constant 0 : i32
    %c0_i32_0 = arith.constant 0 : i32
    %c0_i32_1 = arith.constant 0 : i32
    return %c0_i32, %c0_i32_0 : i32, i32
  }
  func.func @transform_7(%arg0: i32) -> (i32, i32, i32) {
    %c0_i32 = arith.constant 0 : i32
    %c0_i32_0 = arith.constant 0 : i32
    %c0_i32_1 = arith.constant 0 : i32
    return %arg0, %c0_i32, %c0_i32_0 : i32, i32, i32
  }
}

</mosaic_0001>

<bundles_post_ra>
// kernel: cnn_forward.1
= control target key start
LH: loop header
LB: loop body
LE: loop exit
PB: predicated region body
PF: predicated region fallthrough
CT: control target
= control target key end

     0   :  { %12 = vsyncpa [#allocation3], 0  ;;  %s9522_s0 = inlined_call_operand.vmem [shape: bf16[2,4,7,28], index: 0, kind: input, shape index: {}]   ;;  %s9523_s1 = inlined_call_operand.vmem [shape: bf16[84,832], index: 1, kind: input, shape index: {}]   ;;  %s9524_s2 = inlined_call_operand.vmem [shape: f32[1,416], index: 2, kind: input, shape index: {}]   ;;  %s9525_s3 = inlined_call_operand.vmem [shape: bf16[1248,320], index: 3, kind: input, shape index: {}]   ;;  %s9526_s4 = inlined_call_operand.vmem [shape: f32[1,160], index: 4, kind: input, shape index: {}]   ;;  %s9527_s5 = inlined_call_operand.vmem [shape: bf16[800,10], index: 5, kind: input, shape index: {}]   ;;  %s9528_s6 = inlined_call_operand.vmem [shape: f32[1,10], index: 6, kind: input, shape index: {}]   ;;  %s9529_s7 = inlined_call_operand.hbm [shape: f32[2,1,10], index: 7, kind: output, shape index: {}]  }
   0x1   :  { %14 = vsyncpa [#allocation3 + $0x1], 0  ;;  %s6050_s24 = smov 0   ;;  %s6052_s25 = smov 0  }
   0x2   :  { %s6054_s26 = smov 0   ;;  %s6056_s27 = smov 0  }
   0x3 LB: > { %s6071_s28 = sadd.s32 4294967295, %s6003_s27   ;;  %s4258_s29 = sadd.s32 4294967294, %s6003_s27   ;;  %s6003_s27 = sphi %s6056_s27, %s10068_s27   ;;  %s5999_s26 = sphi %s6054_s26, %s10067_s26   ;;  %s5995_s25 = sphi %s6052_s25, %s10066_s25   ;;  %s5991_s24 = sphi %s6050_s24, %s10065_s24  }
   0x4   : > { %s6075_s30 = sadd.s32 1, %s6003_s27   ;;  %s179_s8 = sadd.s32 1, %s5999_s26 }
   0x5   : > { %s176_s9 = ssub.s32 %s6003_s27, %s6075_s30  ;;  %p189_p0 = scmp.ne.s32.totalorder %s5999_s26, %s5995_s25 }
   0x6   : > { %p177_p1 = scmp.eq.s32.totalorder %s176_s9, 0  ;;  %p190_p2 = scmp.eq.s32.totalorder %s6071_s28, 1 }
   0x7   : > { %p195_p3 = scmp.ne.s32.totalorder %s5995_s25, %s5991_s24  ;;  %p196_p4 = scmp.eq.s32.totalorder %s4258_s29, 1 }
   0x8   : > { %s6086_s10 = scalar_select %p177_p1, %s5999_s26, %s179_s8  }
   0x9   : > { %p6088_p5 = por %p190_p2, %p189_p0  ;;  %p6092_p6 = por %p196_p4, %p195_p3 }
   0xa   : > { %p4261_p7 = scmp.ge.s32.totalorder %s6003_s27, 1  ;;  %p240_p8 = scmp.lt.s32.totalorder %s6003_s27, 3 }
   0xc   : > { %p241_p9 = pnand %p4261_p7, %p240_p8 }
   0xe   : > { %244 = sbr.rel (%p241_p9) target bundleno = 1597 (0x63d), region = 48 }
  0x13   : > { %p271_p10 = scmp.lt.s32.totalorder %s6071_s28, 1  ;;  %v321_v0 = vld [vmem:[%s9523_s1 + $0x118] sm:$0x33]  ;;  %v322_v3 = vld [vmem:[%s9523_s1 + $0x120] sm:$0x33]  ;;  %vm1005_vm0 = vcmask 1041408   ;;  %s4199_s23 = scalar_lea.hbm %s9529_s7, %s6071_s28 }
  0x14   : > { %v918_v1 = vunpack.c.l.b16 %v321_v0  ;;  %v919_v2 = vunpack.c.h.b16 %v321_v0  ;;  %v4378_v4 = vld [vmem:[%s9523_s1 + $0xe0] sm:$0xf]  ;;  %v920_v5 = vunpack.c.l.b16 %v322_v3  ;;  %v921_v6 = vunpack.c.h.b16 %v322_v3  ;;  %v5609_v7 = vld [vmem:[%s9523_s1 + $0xf8] sm:$0xf0]  ;;  %v5606_v8 = vld [vmem:[%s9523_s1 + $0xe4] sm:$0xf] }
  0x15   : > { %s272_s19 = scalar_select %p271_p10, %s6071_s28, 1  ;;  %v4380_v11 = vld [vmem:[%s9523_s1 + $0xfc] sm:$0xf0]  ;;  %v4386_v12 = vld [vmem:[%s9523_s1 + $0xe8] sm:$0xf]  ;;  %v6153_v25 = vor.u32 %v5609_v7, %v4378_v4  ;;  %vm750_vm1 = vcmask 228352  }
  0x16   : > { %v960_v9 = vpack.c.b16 %v918_v1, %v918_v1  ;;  %v961_v10 = vpack.c.b16 %v919_v2, %v919_v2  ;;  %v5610_v13 = vld [vmem:[%s9523_s1 + $0x100] sm:$0xf0]  ;;  %v962_v14 = vpack.c.b16 %v920_v5, %v920_v5  ;;  %v963_v15 = vpack.c.b16 %v921_v6, %v921_v6  ;;  %v5607_v16 = vld [vmem:[%s9523_s1 + $0xec] sm:$0xf]  ;;  %v4388_v17 = vld [vmem:[%s9523_s1 + $0x104] sm:$0xf0] }
  0x17   : > { %s5577_s16 = sshll.u32 %s272_s19, 4  ;;  %v4350_v20 = vld [vmem:[%s9523_s1 + $0xa8] sm:$0xf]  ;;  %v5602_v21 = vld [vmem:[%s9523_s1 + $0xc0] sm:$0xf0]  ;;  %v6155_v26 = vor.u32 %v5606_v8, %v4380_v11  ;;  %v6173_v35 = vor.u32 %v5610_v13, %v4386_v12  ;;  %v6181_v39 = vor.u32 %v5607_v16, %v4388_v17  ;;  %s6006_s8 = smov 56  }
  0x18   : > { %s275_s29 = scalar_lea.vmem %s9522_s0, %s5577_s16  ;;  %v6134_v18 = vsel %vm1005_vm0, %v960_v9, 0  ;;  %v6137_v19 = vsel %vm1005_vm0, %v961_v10, 0  ;;  %v6163_v31 = vsel %vm1005_vm0, %v962_v14, 0  ;;  %v5599_v32 = vld [vmem:[%s9523_s1 + $0xac] sm:$0xf]  ;;  %v6171_v34 = vsel %vm1005_vm0, %v963_v15, 0 }
  0x19   : > { %v6145_v22 = vld [vmem:[%s275_s29 + $0x4] sm:$0xf]  ;;  %v6147_v23 = vld [vmem:[%s275_s29 + $0x8] sm:$0xf]  ;;  %v6149_v24 = vld [vmem:[%s275_s29 + $0xc] sm:$0xf]  ;;  %1029 = vmatpush.bf16.msra.mxu0 %v6134_v18  ;;  %1042 = vmatpush.bf16.msra.mxu1 %v6137_v19  ;;  %v6183_v40 = vor.u32 %v5602_v21, %v4350_v20 }
  0x1a   : > { %v741_v27 = vunpack.c.l.b16 %v6145_v22  ;;  %v746_v28 = vunpack.c.l.b16 %v6147_v23  ;;  %v758_v29 = vunpack.c.l.b16 %v6149_v24  ;;  %v6160_v30 = vld [vmem:[%s275_s29] sm:$0xf]  ;;  %1055 = vmatpush.bf16.msra.mxu2 %v6163_v31  ;;  %v4352_v36 = vld [vmem:[%s9523_s1 + $0xc4] sm:$0xf0]  ;;  %1068 = vmatpush.bf16.msra.mxu3 %v6171_v34  ;;  %v4358_v41 = vld [vmem:[%s9523_s1 + $0xb0] sm:$0xf] }
  0x1b   : > { %v763_v33 = vunpack.c.l.b16 %v6160_v30  ;;  %v5603_v42 = vld [vmem:[%s9523_s1 + $0xc8] sm:$0xf0]  ;;  %v5600_v43 = vld [vmem:[%s9523_s1 + $0xb4] sm:$0xf]  ;;  %v6196_v46 = vor.u32 %v5599_v32, %v4352_v36  ;;  %v4360_v47 = vld [vmem:[%s9523_s1 + $0xcc] sm:$0xf0] }
  0x1c   : > { %v6178_v37 = vpack.c.b16 %v741_v27, %v741_v27  ;;  %v747_v38 = vpack.c.b16 %v746_v28, %v746_v28  ;;  %v759_v44 = vpack.c.b16 %v758_v29, %v758_v29  ;;  %v4322_v48 = vld [vmem:[%s9523_s1 + $0x70] sm:$0xf]  ;;  %v5595_v49 = vld [vmem:[%s9523_s1 + $0x88] sm:$0xf0]  ;;  %s6005_s16 = smov 28   ;;  %v6218_v54 = vor.u32 %v5603_v42, %v4358_v41  ;;  %s6007_s20 = smov 96  }
  0x1d   : > { %v764_v45 = vpack.c.b16 %v763_v33, %v763_v33  ;;  %1030 = vmatpush.bf16.msra.mxu0 %v6153_v25  ;;  %1043 = vmatpush.bf16.msra.mxu1 %v6155_v26  ;;  %v5592_v50 = vld [vmem:[%s9523_s1 + $0x74] sm:$0xf]  ;;  %v4324_v51 = vld [vmem:[%s9523_s1 + $0x8c] sm:$0xf0]  ;;  %v6221_v55 = vor.u32 %v5600_v43, %v4360_v47  ;;  %v4330_v56 = vld [vmem:[%s9523_s1 + $0x78] sm:$0xf]  ;;  %v6234_v60 = vor.u32 %v5595_v49, %v4322_v48 }
  0x1e   : > { %743 = vrot.lane.b32.xlu0 %v6178_v37, %s6005_s16  ;;  %779 = vrot.lane.b32.xlu1 %v747_v38, %s6005_s16  ;;  %v5596_v57 = vld [vmem:[%s9523_s1 + $0x90] sm:$0xf0]  ;;  %v5593_v58 = vld [vmem:[%s9523_s1 + $0x7c] sm:$0xf]  ;;  %v6236_v61 = vor.u32 %v5592_v50, %v4324_v51  ;;  %v793_v63 = vshll.u32 %v6178_v37, 16  ;;  %v791_v16 = vshrl.u32 %v6178_v37, 16 }
  0x1f   : > { %760 = vrot.lane.b32.xlu2 %v759_v44, %s6005_s16  ;;  %v766_v52 = vshrl.u32 %v764_v45, 16  ;;  %v768_v53 = vshll.u32 %v764_v45, 16  ;;  %1056 = vmatpush.bf16.msra.mxu2 %v6173_v35  ;;  %v4332_v62 = vld [vmem:[%s9523_s1 + $0x94] sm:$0xf0]  ;;  %v5588_v1 = vld [vmem:[%s9523_s1 + $0x50] sm:$0xf0]  ;;  %v6255_v5 = vor.u32 %v5596_v57, %v4330_v56 }
  0x20   : > { %1069 = vmatpush.bf16.msra.mxu3 %v6181_v39  ;;  %v4294_v0 = vld [vmem:[%s9523_s1 + $0x38] sm:$0xf]  ;;  %v5585_v2 = vld [vmem:[%s9523_s1 + $0x3c] sm:$0xf]  ;;  %v4302_v6 = vld [vmem:[%s9523_s1 + $0x40] sm:$0xf]  ;;  %v6261_v7 = vor.u32 %v5593_v58, %v4332_v62 }
  0x21   : > { %v770_v59 = vrot.slane %v768_v53, 1  ;;  %1031 = vmatpush.bf16.msra.mxu0 %v6183_v40  ;;  %1044 = vmatpush.bf16.msra.mxu1 %v6196_v46  ;;  %v4296_v3 = vld [vmem:[%s9523_s1 + $0x54] sm:$0xf0]  ;;  %v5589_v8 = vld [vmem:[%s9523_s1 + $0x58] sm:$0xf0]  ;;  %v6274_v11 = vor.u32 %v5588_v1, %v4294_v0  ;;  %v795_v17 = vrot.slane %v793_v63, 1 }
  0x22   : > { %v5586_v9 = vld [vmem:[%s9523_s1 + $0x44] sm:$0xf]  ;;  %v4304_v10 = vld [vmem:[%s9523_s1 + $0x5c] sm:$0xf0]  ;;  %v6276_v12 = vor.u32 %v5585_v2, %v4296_v3  ;;  %v5581_v14 = vld [vmem:[%s9523_s1 + $0x18] sm:$0xf0]  ;;  %v6298_v27 = vor.u32 %v5589_v8, %v4302_v6 }
  0x23   : > { %v771_v4 = vor.u32 %v770_v59, %v766_v52  ;;  %1057 = vmatpush.bf16.msra.mxu2 %v6218_v54  ;;  %v4266_v13 = vld [vmem:[%s9523_s1] sm:$0xf]  ;;  %v5578_v15 = vld [vmem:[%s9523_s1 + $0x4] sm:$0xf]  ;;  %v323_v21 = vld [vmem:[%s9523_s1 + $0x128] sm:$0x33]  ;;  %v6304_v33 = vor.u32 %v5586_v9, %v4304_v10  ;;  %v796_v48 = vor.u32 %v795_v17, %v791_v16 }
  0x24   : > { %1070 = vmatpush.bf16.msra.mxu3 %v6221_v55  ;;  %v4268_v20 = vld [vmem:[%s9523_s1 + $0x1c] sm:$0xf0]  ;;  %v922_v28 = vunpack.c.l.b16 %v323_v21  ;;  %v923_v29 = vunpack.c.h.b16 %v323_v21  ;;  %v324_v32 = vld [vmem:[%s9523_s1 + $0x130] sm:$0x3]  ;;  %v6306_v36 = vor.u32 %v5581_v14, %v4266_v13  ;;  %v4274_v37 = vld [vmem:[%s9523_s1 + $0x8] sm:$0xf] }
  0x25   : > { %1032 = vmatpush.bf16.msra.mxu0 %v6234_v60  ;;  %1045 = vmatpush.bf16.msra.mxu1 %v6236_v61  ;;  %v924_v41 = vunpack.c.l.b16 %v324_v32  ;;  %v6316_v42 = vor.u32 %v5578_v15, %v4268_v20  ;;  %v5579_v43 = vld [vmem:[%s9523_s1 + $0xc] sm:$0xf]  ;;  %v4394_v53 = vld [vmem:[%s9523_s1 + $0xf0] sm:$0xf]  ;;  %v5608_v58 = vld [vmem:[%s9523_s1 + $0xf4] sm:$0xf] }
  0x26   : > { %748 = vrot.lane.b32.xlu0 %v747_v38, %s6006_s8  ;;  %781 = vrot.lane.b32.xlu1 %v759_v44, %s6006_s8  ;;  %v5582_v38 = vld [vmem:[%s9523_s1 + $0x20] sm:$0xf0]  ;;  %v4276_v44 = vld [vmem:[%s9523_s1 + $0x24] sm:$0xf0]  ;;  %v964_v45 = vpack.c.b16 %v922_v28, %v922_v28  ;;  %v965_v47 = vpack.c.b16 %v923_v29, %v923_v29  ;;  %vm754_vm2 = vcmask 457728   ;;  %vm1002_vm3 = vcmask 687104  }
  0x27   : > { %772 = vrot.lane.b32.xlu2 %v771_v4, %s6006_s8  ;;  %1058 = vmatpush.bf16.msra.mxu2 %v6255_v5  ;;  %v966_v49 = vpack.c.b16 %v924_v41, %v924_v41  ;;  %v6325_v50 = vor.u32 %v5582_v38, %v4274_v37  ;;  %v6328_v51 = vor.u32 %v5579_v43, %v4276_v44  ;;  %v5611_v56 = vld [vmem:[%s9523_s1 + $0x108] sm:$0xf0]  ;;  %v4396_v59 = vld [vmem:[%s9523_s1 + $0x10c] sm:$0xf0]  ;;  %v4402_v63 = vld [vmem:[%s9523_s1 + $0xf8] sm:$0xf] }
  0x28   : > { %1071 = vmatpush.bf16.msra.mxu3 %v6261_v7  ;;  %v6331_v52 = vsel %vm1005_vm0, %v964_v45, 0  ;;  %v6342_v57 = vsel %vm1005_vm0, %v965_v47, 0  ;;  %v5612_v0 = vld [vmem:[%s9523_s1 + $0x110] sm:$0xf0]  ;;  %v6363_v1 = vor.u32 %v5611_v56, %v4394_v53  ;;  %v6367_v2 = vor.u32 %v5608_v58, %v4396_v59  ;;  %v4366_v3 = vld [vmem:[%s9523_s1 + $0xb8] sm:$0xf] }
  0x29   : > { %1033 = vmatpush.bf16.msra.mxu0 %v6274_v11  ;;  %1046 = vmatpush.bf16.msra.mxu1 %v6276_v12  ;;  %v6353_v62 = vsel %vm1005_vm0, %v966_v49, 0  ;;  %v6377_v6 = vor.u32 %v5612_v0, %v4402_v63  ;;  %v5601_v8 = vld [vmem:[%s9523_s1 + $0xbc] sm:$0xf]  ;;  %v4368_v9 = vld [vmem:[%s9523_s1 + $0xd4] sm:$0xf0]  ;;  %vm1130_vm4 = vcmask 785408  }
  0x2a   : > { %v4374_v10 = vld [vmem:[%s9523_s1 + $0xc0] sm:$0xf]  ;;  %v5605_v13 = vld [vmem:[%s9523_s1 + $0xd8] sm:$0xf0]  ;;  %v6395_v15 = vor.u32 %v5601_v8, %v4368_v9  ;;  %v5594_v21 = vld [vmem:[%s9523_s1 + $0x84] sm:$0xf] }
  0x2b   : > { %1059 = vmatpush.bf16.msra.mxu2 %v6298_v27  ;;  %v6399_v16 = vor.u32 %v5605_v13, %v4374_v10  ;;  %v4338_v17 = vld [vmem:[%s9523_s1 + $0x80] sm:$0xf]  ;;  %v5597_v20 = vld [vmem:[%s9523_s1 + $0x98] sm:$0xf0]  ;;  %v4346_v32 = vld [vmem:[%s9523_s1 + $0x88] sm:$0xf] }
  0x2c   : > { %1072 = vmatpush.bf16.msra.mxu3 %v6304_v33  ;;  %v6417_v28 = vor.u32 %v5597_v20, %v4338_v17  ;;  %v4340_v29 = vld [vmem:[%s9523_s1 + $0x9c] sm:$0xf0]  ;;  %v5598_v37 = vld [vmem:[%s9523_s1 + $0xa0] sm:$0xf0]  ;;  %v4310_v43 = vld [vmem:[%s9523_s1 + $0x48] sm:$0xf] }
  0x2d   : > { %1034 = vmatpush.bf16.msra.mxu0 %v6306_v36  ;;  %1047 = vmatpush.bf16.msra.mxu1 %v6316_v42  ;;  %v6428_v38 = vor.u32 %v5594_v21, %v4340_v29  ;;  %v6430_v41 = vor.u32 %v5598_v37, %v4346_v32  ;;  %v5590_v44 = vld [vmem:[%s9523_s1 + $0x60] sm:$0xf0]  ;;  %v5587_v45 = vld [vmem:[%s9523_s1 + $0x4c] sm:$0xf]  ;;  %v4318_v49 = vld [vmem:[%s9523_s1 + $0x50] sm:$0xf] }
  0x2e   : > { %788 = vrot.lane.b32.xlu0 %v771_v4, %s6005_s16  ;;  %797 = vrot.lane.b32.xlu1 %v796_v48, %s6006_s8  ;;  %v5604_v4 = vld [vmem:[%s9523_s1 + $0xd0] sm:$0xf0]  ;;  %v6444_v47 = vor.u32 %v5590_v44, %v4310_v43  ;;  %v4312_v48 = vld [vmem:[%s9523_s1 + $0x64] sm:$0xf0]  ;;  %s6008_s16 = smov 32   ;;  %s9592_s8 = smov 64  }
  0x2f   : > { %1060 = vmatpush.bf16.msra.mxu2 %v6325_v50  ;;  %v6392_v14 = vor.u32 %v5604_v4, %v4366_v3  ;;  %v5591_v53 = vld [vmem:[%s9523_s1 + $0x68] sm:$0xf0]  ;;  %v6455_v56 = vor.u32 %v5587_v45, %v4312_v48  ;;  %v4282_v59 = vld [vmem:[%s9523_s1 + $0x10] sm:$0xf]  ;;  %v5580_v0 = vld [vmem:[%s9523_s1 + $0x14] sm:$0xf] }
  0x30   : > { %1073 = vmatpush.bf16.msra.mxu3 %v6328_v51  ;;  %v6457_v58 = vor.u32 %v5591_v53, %v4318_v49  ;;  %v5583_v63 = vld [vmem:[%s9523_s1 + $0x28] sm:$0xf0]  ;;  %v4284_v4 = vld [vmem:[%s9523_s1 + $0x2c] sm:$0xf0]  ;;  %v4290_v8 = vld [vmem:[%s9523_s1 + $0x18] sm:$0xf] }
  0x31   : > { %1081 = vmatpush.bf16.msrb.mxu0 %v6331_v52  ;;  %1094 = vmatpush.bf16.msrb.mxu1 %v6342_v57  ;;  %v6471_v3 = vor.u32 %v5583_v63, %v4282_v59  ;;  %v5584_v9 = vld [vmem:[%s9523_s1 + $0x30] sm:$0xf0]  ;;  %v6482_v10 = vor.u32 %v5580_v0, %v4284_v4  ;;  %vm1558_vm5 = vcmask 261120   ;;  %vm1600_vm6 = vcmask 523264   ;;  %s10064_s21 = smov 64   ;;  %s269_s18 = sand.u32 1, %s5995_s25  }
  0x32   : > { %v6484_v13 = vor.u32 %v5584_v9, %v4290_v8  ;;  %s270_s29 = scalar_lea.vmem [#allocation2], %s269_s18  ;;  %vm4188_vm7 = vcmask 73728   ;;  %s4191_s9 = scalar_lea.sflag [#allocation3], %s269_s18 }
  0x33   : > { %1107 = vmatpush.bf16.msrb.mxu2 %v6353_v62  ;;  %s4201_s19 = sshll.u32 %s270_s29, 4  ;;  %s5961_s15 = scalar_lea.hbm %s9529_s7, 2  ;;  %s4202_s19 = int_to_ptr.vmem [resolvable:$true] %s4201_s19 }
  0x34   : > { %1146 = vmatpush.bf16.msrb.mxu3 %v6134_v18 }
  0x35   : > { %1082 = vmatpush.bf16.msrb.mxu0 %v6363_v1  ;;  %1095 = vmatpush.bf16.msrb.mxu1 %v6367_v2 }
  0x37   : > { %1108 = vmatpush.bf16.msrb.mxu2 %v6377_v6 }
  0x38   : > { %1147 = vmatpush.bf16.msrb.mxu3 %v6153_v25 }
  0x39   : > { %1083 = vmatpush.bf16.msrb.mxu0 %v6392_v14  ;;  %1096 = vmatpush.bf16.msrb.mxu1 %v6395_v15 }
  0x3b   : > { %1109 = vmatpush.bf16.msrb.mxu2 %v6399_v16 }
  0x3c   : > { %1148 = vmatpush.bf16.msrb.mxu3 %v6183_v40 }
  0x3d   : > { %1084 = vmatpush.bf16.msrb.mxu0 %v6417_v28  ;;  %1097 = vmatpush.bf16.msrb.mxu1 %v6428_v38 }
  0x3f   : > { %1110 = vmatpush.bf16.msrb.mxu2 %v6430_v41 }
  0x40   : > { %1149 = vmatpush.bf16.msrb.mxu3 %v6234_v60 }
  0x41   : > { %1085 = vmatpush.bf16.msrb.mxu0 %v6444_v47  ;;  %1098 = vmatpush.bf16.msrb.mxu1 %v6455_v56 }
  0x43   : > { %1111 = vmatpush.bf16.msrb.mxu2 %v6457_v58 }
  0x44   : > { %1150 = vmatpush.bf16.msrb.mxu3 %v6274_v11 }
  0x45   : > { %1086 = vmatpush.bf16.msrb.mxu0 %v6471_v3  ;;  %1099 = vmatpush.bf16.msrb.mxu1 %v6482_v10 }
  0x47   : > { %1112 = vmatpush.bf16.msrb.mxu2 %v6484_v13 }
  0x48   : > { %1151 = vmatpush.bf16.msrb.mxu3 %v6306_v36 }
  0x90   : > { %v744_v17 = vpop.permute.xlu0 %743  ;;  %v780_v32 = vpop.permute.xlu1 %779 }
  0x91   : > { %v753_v20 = vsel %vm750_vm1, %v6160_v30, %v744_v17  ;;  %v785_v30 = vsel %vm750_vm1, %v6145_v22, %v780_v32  ;;  %v761_v22 = vpop.permute.xlu2 %760 }
  0x92   : > { %v776_v44 = vsel %vm750_vm1, %v6147_v23, %v761_v22  ;;  %v4518_v22 = vld [vmem:[%s9525_s3 + $0xa8] sm:$0xf] }
  0x98   : > { %v749_v21 = vpop.permute.xlu0 %748  ;;  %v782_v37 = vpop.permute.xlu1 %781 }
  0x99   : > { %v756_v29 = vsel %vm754_vm2, %v753_v20, %v749_v21  ;;  %v787_v43 = vsel %vm754_vm2, %v785_v30, %v782_v37  ;;  %v773_v45 = vpop.permute.xlu2 %772 }
  0x9a   : > { %4404 = vmatmul.msk.bf16.vlgmr.msra.gmra.mxu0 %vm1002_vm3, %v756_v29  ;;  %4405 = vmatmul.msk.bf16.vlgmr.msra.gmra.mxu1 %vm1002_vm3, %v756_v29  ;;  %v778_v48 = vsel %vm754_vm2, %v776_v44, %v773_v45  ;;  %v5635_v44 = vld [vmem:[%s9525_s3 + $0xb0] sm:$0xf0]  ;;  %v4614_v45 = vld [vmem:[%s9525_s3 + $0x168] sm:$0xf] }
  0x9b   : > { %4406 = vmatmul.msk.bf16.vlgmr.msra.gmra.mxu2 %vm1002_vm3, %v756_v29  ;;  %4407 = vmatmul.msk.bf16.vlgmr.msra.gmra.mxu3 %vm1002_vm3, %v756_v29 }
  0x9c   : > { %1159 = vmatpush.bf16.msra.mxu0 %v6137_v19  ;;  %1172 = vmatpush.bf16.msra.mxu1 %v6163_v31 }
  0x9d   : > { %1185 = vmatpush.bf16.msra.mxu2 %v6171_v34  ;;  %1198 = vmatpush.bf16.msra.mxu3 %v6331_v52 }
  0xa0   : > { %1160 = vmatpush.bf16.msra.mxu0 %v6155_v26  ;;  %1173 = vmatpush.bf16.msra.mxu1 %v6173_v35  ;;  %v789_v23 = vpop.permute.xlu0 %788  ;;  %v798_v53 = vpop.permute.xlu1 %797 }
  0xa1   : > { %1186 = vmatpush.bf16.msra.mxu2 %v6181_v39  ;;  %1199 = vmatpush.bf16.msra.mxu3 %v6363_v1  ;;  %v801_v49 = vsel %vm750_vm1, %v6149_v24, %v789_v23  ;;  %v5659_v23 = vld [vmem:[%s9525_s3 + $0x170] sm:$0xf0] }
  0xa2   : > { %v6579_v59 = vsel %vm754_vm2, %v801_v49, %v798_v53  ;;  %v6724_v49 = vor.u32 %v5659_v23, %v4614_v45  ;;  %v4506_v53 = vld [vmem:[%s9525_s3 + $0x90] sm:$0xf]  ;;  %v4446_v23 = vld [vmem:[%s9525_s3 + $0x18] sm:$0xf] }
  0xa4   : > { %1161 = vmatpush.bf16.msra.mxu0 %v6196_v46  ;;  %1174 = vmatpush.bf16.msra.mxu1 %v6218_v54 }
  0xa5   : > { %1187 = vmatpush.bf16.msra.mxu2 %v6221_v55  ;;  %1200 = vmatpush.bf16.msra.mxu3 %v6392_v14 }
  0xa8   : > { %1162 = vmatpush.bf16.msra.mxu0 %v6236_v61  ;;  %1175 = vmatpush.bf16.msra.mxu1 %v6255_v5 }
  0xa9   : > { %1188 = vmatpush.bf16.msra.mxu2 %v6261_v7  ;;  %1201 = vmatpush.bf16.msra.mxu3 %v6417_v28 }
  0xaa   : > { %4408 = vmatmul.msk.bf16.vlgmr.msrb.gmra.mxu0 %vm1002_vm3, %v756_v29  ;;  %4409 = vmatmul.msk.bf16.vlgmr.msrb.gmra.mxu1 %vm1002_vm3, %v756_v29 }
  0xab   : > { %4410 = vmatmul.msk.bf16.vlgmr.msrb.gmra.mxu2 %vm1002_vm3, %v756_v29  ;;  %4411 = vmatmul.msk.bf16.vlgmr.msrb.gmra.mxu3 %vm1002_vm3, %v787_v43 }
  0xac   : > { %1163 = vmatpush.bf16.msra.mxu0 %v6276_v12  ;;  %1176 = vmatpush.bf16.msra.mxu1 %v6298_v27 }
  0xad   : > { %1189 = vmatpush.bf16.msra.mxu2 %v6304_v33  ;;  %1202 = vmatpush.bf16.msra.mxu3 %v6444_v47 }
  0xb0   : > { %1164 = vmatpush.bf16.msra.mxu0 %v6316_v42  ;;  %1177 = vmatpush.bf16.msra.mxu1 %v6325_v50 }
  0xb1   : > { %1190 = vmatpush.bf16.msra.mxu2 %v6328_v51  ;;  %1203 = vmatpush.bf16.msra.mxu3 %v6471_v3 }
  0xb4   : > { %1211 = vmatpush.bf16.msrb.mxu0 %v6342_v57  ;;  %1224 = vmatpush.bf16.msrb.mxu1 %v6353_v62 }
  0xb5   : > { %1266 = vmatpush.bf16.msrb.mxu2 %v6134_v18  ;;  %1279 = vmatpush.bf16.msrb.mxu3 %v6137_v19 }
  0xb8   : > { %1212 = vmatpush.bf16.msrb.mxu0 %v6367_v2  ;;  %1225 = vmatpush.bf16.msrb.mxu1 %v6377_v6 }
  0xb9   : > { %1267 = vmatpush.bf16.msrb.mxu2 %v6153_v25  ;;  %1280 = vmatpush.bf16.msrb.mxu3 %v6155_v26 }
  0xba   : > { %4412 = vmatmul.msk.bf16.vlgmr.msra.gmra.mxu0 %vm1002_vm3, %v787_v43  ;;  %4413 = vmatmul.msk.bf16.vlgmr.msra.gmra.mxu1 %vm1002_vm3, %v787_v43 }
  0xbb   : > { %4414 = vmatmul.msk.bf16.vlgmr.msra.gmra.mxu2 %vm1002_vm3, %v787_v43  ;;  %4415 = vmatmul.msk.bf16.vlgmr.msra.gmra.mxu3 %vm1002_vm3, %v787_v43 }
  0xbc   : > { %1213 = vmatpush.bf16.msrb.mxu0 %v6395_v15  ;;  %1226 = vmatpush.bf16.msrb.mxu1 %v6399_v16 }
  0xbd   : > { %1268 = vmatpush.bf16.msrb.mxu2 %v6183_v40  ;;  %1281 = vmatpush.bf16.msrb.mxu3 %v6196_v46 }
  0xc0   : > { %1214 = vmatpush.bf16.msrb.mxu0 %v6428_v38  ;;  %1227 = vmatpush.bf16.msrb.mxu1 %v6430_v41 }
  0xc1   : > { %1269 = vmatpush.bf16.msrb.mxu2 %v6234_v60  ;;  %1282 = vmatpush.bf16.msrb.mxu3 %v6236_v61 }
  0xc4   : > { %1215 = vmatpush.bf16.msrb.mxu0 %v6455_v56  ;;  %1228 = vmatpush.bf16.msrb.mxu1 %v6457_v58 }
  0xc5   : > { %1270 = vmatpush.bf16.msrb.mxu2 %v6274_v11  ;;  %1283 = vmatpush.bf16.msrb.mxu3 %v6276_v12 }
  0xc8   : > { %1216 = vmatpush.bf16.msrb.mxu0 %v6482_v10  ;;  %1229 = vmatpush.bf16.msrb.mxu1 %v6484_v13 }
  0xc9   : > { %1271 = vmatpush.bf16.msrb.mxu2 %v6306_v36  ;;  %1284 = vmatpush.bf16.msrb.mxu3 %v6316_v42 }
  0xcb   : > { %4416 = vmatmul.msk.bf16.vlgmr.msrb.gmra.mxu0 %vm1002_vm3, %v787_v43  ;;  %4417 = vmatmul.msk.bf16.vlgmr.msrb.gmra.mxu1 %vm1002_vm3, %v787_v43 }
  0xcc   : > { %1292 = vmatpush.bf16.msra.mxu0 %v6163_v31  ;;  %1305 = vmatpush.bf16.msra.mxu1 %v6171_v34 }
  0xcd   : > { %1318 = vmatpush.bf16.msra.mxu2 %v6331_v52  ;;  %1331 = vmatpush.bf16.msra.mxu3 %v6342_v57 }
  0xce   : > { %4418 = vmatmul.msk.bf16.vlgmr.msrb.gmra.mxu2 %vm1002_vm3, %v778_v48  ;;  %4419 = vmatmul.msk.bf16.vlgmr.msrb.gmra.mxu3 %vm1002_vm3, %v778_v48 }
  0xd0   : > { %1293 = vmatpush.bf16.msra.mxu0 %v6173_v35  ;;  %1306 = vmatpush.bf16.msra.mxu1 %v6181_v39 }
  0xd1   : > { %1319 = vmatpush.bf16.msra.mxu2 %v6363_v1  ;;  %1332 = vmatpush.bf16.msra.mxu3 %v6367_v2 }
  0xd4   : > { %1294 = vmatpush.bf16.msra.mxu0 %v6218_v54  ;;  %1307 = vmatpush.bf16.msra.mxu1 %v6221_v55 }
  0xd5   : > { %1320 = vmatpush.bf16.msra.mxu2 %v6392_v14  ;;  %1333 = vmatpush.bf16.msra.mxu3 %v6395_v15 }
  0xd8   : > { %1295 = vmatpush.bf16.msra.mxu0 %v6255_v5  ;;  %1308 = vmatpush.bf16.msra.mxu1 %v6261_v7 }
  0xd9   : > { %1321 = vmatpush.bf16.msra.mxu2 %v6417_v28  ;;  %1334 = vmatpush.bf16.msra.mxu3 %v6428_v38 }
  0xdc   : > { %1296 = vmatpush.bf16.msra.mxu0 %v6298_v27  ;;  %1309 = vmatpush.bf16.msra.mxu1 %v6304_v33 }
  0xdd   : > { %1322 = vmatpush.bf16.msra.mxu2 %v6444_v47  ;;  %1335 = vmatpush.bf16.msra.mxu3 %v6455_v56 }
  0xe0   : > { %1297 = vmatpush.bf16.msra.mxu0 %v6325_v50  ;;  %1310 = vmatpush.bf16.msra.mxu1 %v6328_v51 }
  0xe1   : > { %1323 = vmatpush.bf16.msra.mxu2 %v6471_v3  ;;  %1336 = vmatpush.bf16.msra.mxu3 %v6482_v10 }
  0xe3   : > { %4420 = vmatmul.msk.bf16.vlgmr.msra.gmra.mxu0 %vm1002_vm3, %v778_v48  ;;  %4421 = vmatmul.msk.bf16.vlgmr.msra.gmra.mxu1 %vm1002_vm3, %v778_v48 }
  0xe4   : > { %1344 = vmatpush.bf16.msrb.mxu0 %v6353_v62  ;;  %1382 = vmatpush.bf16.msrb.mxu1 %v6134_v18 }
  0xe5   : > { %1395 = vmatpush.bf16.msrb.mxu2 %v6137_v19  ;;  %1408 = vmatpush.bf16.msrb.mxu3 %v6163_v31 }
  0xe6   : > { %4422 = vmatmul.msk.bf16.vlgmr.msra.gmra.mxu2 %vm1002_vm3, %v778_v48  ;;  %4423 = vmatmul.msk.bf16.vlgmr.msra.gmra.mxu3 %vm1002_vm3, %v778_v48 }
  0xe8   : > { %1345 = vmatpush.bf16.msrb.mxu0 %v6377_v6  ;;  %1383 = vmatpush.bf16.msrb.mxu1 %v6153_v25 }
  0xe9   : > { %1396 = vmatpush.bf16.msrb.mxu2 %v6155_v26  ;;  %1409 = vmatpush.bf16.msrb.mxu3 %v6173_v35 }
  0xec   : > { %1346 = vmatpush.bf16.msrb.mxu0 %v6399_v16  ;;  %1384 = vmatpush.bf16.msrb.mxu1 %v6183_v40 }
  0xed   : > { %1397 = vmatpush.bf16.msrb.mxu2 %v6196_v46  ;;  %1410 = vmatpush.bf16.msrb.mxu3 %v6218_v54 }
  0xf0   : > { %1347 = vmatpush.bf16.msrb.mxu0 %v6430_v41  ;;  %1385 = vmatpush.bf16.msrb.mxu1 %v6234_v60 }
  0xf1   : > { %1398 = vmatpush.bf16.msrb.mxu2 %v6236_v61  ;;  %1411 = vmatpush.bf16.msrb.mxu3 %v6255_v5 }
  0xf4   : > { %1348 = vmatpush.bf16.msrb.mxu0 %v6457_v58  ;;  %1386 = vmatpush.bf16.msrb.mxu1 %v6274_v11 }
  0xf5   : > { %1399 = vmatpush.bf16.msrb.mxu2 %v6276_v12  ;;  %1412 = vmatpush.bf16.msrb.mxu3 %v6298_v27 }
  0xf8   : > { %1349 = vmatpush.bf16.msrb.mxu0 %v6484_v13  ;;  %1387 = vmatpush.bf16.msrb.mxu1 %v6306_v36 }
  0xf9   : > { %1400 = vmatpush.bf16.msrb.mxu2 %v6316_v42  ;;  %1413 = vmatpush.bf16.msrb.mxu3 %v6325_v50 }
  0xfb   : > { %4424 = vmatmul.msk.bf16.vlgmr.msrb.gmra.mxu0 %vm1002_vm3, %v778_v48  ;;  %4425 = vmatmul.msk.bf16.vlgmr.msrb.gmra.mxu1 %vm1002_vm3, %v6579_v59  ;;  %v6719_v48 = vor.u32 %v5635_v44, %v4518_v22  ;;  %v5674_v22 = vld [vmem:[%s9525_s3 + $0x1e8] sm:$0xf0] }
  0xfc   : > { %1421 = vmatpush.bf16.msra.mxu0 %v6171_v34  ;;  %1434 = vmatpush.bf16.msra.mxu1 %v6331_v52 }
  0xfd   : > { %1447 = vmatpush.bf16.msra.mxu2 %v6342_v57  ;;  %1460 = vmatpush.bf16.msra.mxu3 %v6353_v62 }
  0xfe   : > { %4426 = vmatmul.msk.bf16.vlgmr.msrb.gmra.mxu2 %vm1002_vm3, %v6579_v59  ;;  %4427 = vmatmul.msk.bf16.vlgmr.msrb.gmra.mxu3 %vm1002_vm3, %v6579_v59 }
 0x100   : > { %1422 = vmatpush.bf16.msra.mxu0 %v6181_v39  ;;  %1435 = vmatpush.bf16.msra.mxu1 %v6363_v1 }
 0x101   : > { %1448 = vmatpush.bf16.msra.mxu2 %v6367_v2  ;;  %1461 = vmatpush.bf16.msra.mxu3 %v6377_v6 }
 0x104   : > { %1423 = vmatpush.bf16.msra.mxu0 %v6221_v55  ;;  %1436 = vmatpush.bf16.msra.mxu1 %v6392_v14 }
 0x105   : > { %1449 = vmatpush.bf16.msra.mxu2 %v6395_v15  ;;  %1462 = vmatpush.bf16.msra.mxu3 %v6399_v16 }
 0x108   : > { %1424 = vmatpush.bf16.msra.mxu0 %v6261_v7  ;;  %1437 = vmatpush.bf16.msra.mxu1 %v6417_v28 }
 0x109   : > { %1450 = vmatpush.bf16.msra.mxu2 %v6428_v38  ;;  %1463 = vmatpush.bf16.msra.mxu3 %v6430_v41 }
 0x10c   : > { %1425 = vmatpush.bf16.msra.mxu0 %v6304_v33  ;;  %1438 = vmatpush.bf16.msra.mxu1 %v6444_v47 }
 0x10d   : > { %1451 = vmatpush.bf16.msra.mxu2 %v6455_v56  ;;  %1464 = vmatpush.bf16.msra.mxu3 %v6457_v58 }
 0x110   : > { %1426 = vmatpush.bf16.msra.mxu0 %v6328_v51  ;;  %1439 = vmatpush.bf16.msra.mxu1 %v6471_v3 }
 0x111   : > { %1452 = vmatpush.bf16.msra.mxu2 %v6482_v10  ;;  %1465 = vmatpush.bf16.msra.mxu3 %v6484_v13 }
 0x113   : > { %4428 = vmatmul.msk.bf16.vlgmr.msra.gmra.mxu0 %vm1002_vm3, %v6579_v59  ;;  %4429 = vmatmul.msk.bf16.vlgmr.msra.gmra.mxu1 %vm1002_vm3, %v6579_v59 }
 0x114   : > { %4430 = vmatmul.msk.bf16.vlgmr.msra.gmra.mxu2 %vm1002_vm3, %v6579_v59  ;;  %4431 = vmatmul.msk.bf16.vlgmr.msra.gmra.mxu3 %vm1002_vm3, %v6579_v59  ;;  %v5632_v59 = vld [vmem:[%s9525_s3 + $0x98] sm:$0xf0] }
 0x115   : > { %2930 = vmatpush.bf16.msrb.mxu0 %v6719_v48  ;;  %2943 = vmatpush.bf16.msrb.mxu1 %v6724_v49 }
 0x117   : > { %v6658_v18 = vpop.f32.mrf.mxu0  ;;  %v6660_v19 = vpop.f32.mrf.mxu1 }
 0x11e   : > { %v6662_v24 = vpop.f32.mrf.mxu2  ;;  %v6664_v25 = vpop.f32.mrf.mxu3 }
 0x11f   : > { %v1038_v26 = vpop.f32.mrf.mxu0  ;;  %v1051_v31 = vpop.f32.mrf.mxu1 }
 0x120   : > { %v4602_v26 = vld [vmem:[%s9525_s3 + $0x150] sm:$0xf]  ;;  %v6737_v31 = vor.u32 %v5632_v59, %v4506_v53  ;;  %v5617_v53 = vld [vmem:[%s9525_s3 + $0x20] sm:$0xf0] }
 0x121   : > { %v6862_v59 = vor.u32 %v5617_v53, %v4446_v23 }
 0x122   : > { %2931 = vmatpush.bf16.msrb.mxu0 %v6737_v31 }
 0x126   : > { %v1064_v34 = vpop.f32.mrf.mxu2  ;;  %v1077_v35 = vpop.f32.mrf.mxu3 }
 0x127   : > { %v1088_v39 = vpop.f32.mrf.mxu0  ;;  %v1101_v40 = vpop.f32.mrf.mxu1  ;;  %v5656_v34 = vld [vmem:[%s9525_s3 + $0x158] sm:$0xf0] }
 0x128   : > { %v6742_v35 = vor.u32 %v5656_v34, %v4602_v26  ;;  %v4542_v26 = vld [vmem:[%s9525_s3 + $0xd8] sm:$0xf]  ;;  %v5641_v34 = vld [vmem:[%s9525_s3 + $0xe0] sm:$0xf0] }
 0x12a   : > { %2944 = vmatpush.bf16.msrb.mxu1 %v6742_v35 }
 0x12e   : > { %v1114_v46 = vpop.f32.mrf.mxu2  ;;  %v6666_v54 = vpop.f32.mrf.mxu3 }
 0x12f   : > { %v1090_v55 = vpop.f32.mrf.mxu0  ;;  %v1103_v60 = vpop.f32.mrf.mxu1 }
 0x130   : > { %v4590_v55 = vld [vmem:[%s9525_s3 + $0x138] sm:$0xf] }
 0x136   : > { %v1116_v61 = vpop.f32.mrf.mxu2  ;;  %v1155_v5 = vpop.f32.mrf.mxu3 }
 0x137   : > { %v6668_v7 = vpop.f32.mrf.mxu0  ;;  %v6670_v11 = vpop.f32.mrf.mxu1  ;;  %v5653_v61 = vld [vmem:[%s9525_s3 + $0x140] sm:$0xf0]  ;;  %v4710_v5 = vld [vmem:[%s9525_s3 + $0x228] sm:$0xf] }
 0x13e   : > { %v6672_v12 = vpop.f32.mrf.mxu2  ;;  %v1205_v27 = vpop.f32.mrf.mxu3 }
 0x13f   : > { %v1168_v33 = vpop.f32.mrf.mxu0  ;;  %v1181_v36 = vpop.f32.mrf.mxu1 }
 0x140   : > { %v6768_v33 = vor.u32 %v5653_v61, %v4590_v55  ;;  %v6873_v61 = vor.u32 %v5641_v34, %v4542_v26 }
 0x142   : > { %2945 = vmatpush.bf16.msrb.mxu1 %v6768_v33 }
 0x146   : > { %v1194_v42 = vpop.f32.mrf.mxu2  ;;  %v1207_v50 = vpop.f32.mrf.mxu3 }
 0x147   : > { %v4482_v42 = vld [vmem:[%s9525_s3 + $0x60] sm:$0xf]  ;;  %v5626_v50 = vld [vmem:[%s9525_s3 + $0x68] sm:$0xf0] }
 0x148   : > { %v1218_v51 = vpop.f32.mrf.mxu0  ;;  %v1231_v52 = vpop.f32.mrf.mxu1 }
 0x150   : > { %v1220_v1 = vpop.f32.mrf.mxu0  ;;  %v1233_v2 = vpop.f32.mrf.mxu1 }
 0x151   : > { %v6674_v57 = vpop.f32.mrf.mxu2  ;;  %v6676_v62 = vpop.f32.mrf.mxu3  ;;  %v5650_v1 = vld [vmem:[%s9525_s3 + $0x128] sm:$0xf0]  ;;  %v4698_v2 = vld [vmem:[%s9525_s3 + $0x210] sm:$0xf] }
 0x159   : > { %v1275_v6 = vpop.f32.mrf.mxu2  ;;  %v1288_v14 = vpop.f32.mrf.mxu3 }
 0x15a   : > { %v5680_v6 = vld [vmem:[%s9525_s3 + $0x218] sm:$0xf0] }
 0x160   : > { %v6678_v15 = vpop.f32.mrf.mxu0  ;;  %v6680_v16 = vpop.f32.mrf.mxu1 }
 0x161   : > { %1359 = vrot.lane.b32.xlu2 %v6680_v16, %s6007_s20 }
 0x168   : > { %v1301_v41 = vpop.f32.mrf.mxu0  ;;  %v1314_v47 = vpop.f32.mrf.mxu1 }
 0x169   : > { %v1325_v28 = vpop.f32.mrf.mxu2  ;;  %v1338_v38 = vpop.f32.mrf.mxu3  ;;  %v4470_v41 = vld [vmem:[%s9525_s3 + $0x48] sm:$0xf]  ;;  %v5623_v47 = vld [vmem:[%s9525_s3 + $0x50] sm:$0xf0] }
 0x16a   : > { %1363 = vrot.lane.b32.xlu1 %v1338_v38, %s6007_s20  ;;  %1361 = vrot.lane.b32.xlu0 %v1325_v28, %s6007_s20  ;;  %v6797_v28 = vor.u32 %v5680_v6, %v4698_v2  ;;  %v4530_v2 = vld [vmem:[%s9525_s3 + $0xc0] sm:$0xf] }
 0x171   : > { %v1327_v56 = vpop.f32.mrf.mxu2  ;;  %v1340_v58 = vpop.f32.mrf.mxu3 }
 0x172   : > { %v4566_v56 = vld [vmem:[%s9525_s3 + $0x108] sm:$0xf]  ;;  %v6811_v58 = vor.u32 %v5623_v47, %v4470_v41  ;;  %v5638_v41 = vld [vmem:[%s9525_s3 + $0xc8] sm:$0xf0]  ;;  %v4650_v47 = vld [vmem:[%s9525_s3 + $0x1b0] sm:$0xf] }
 0x178   : > { %v1351_v63 = vpop.f32.mrf.mxu0  ;;  %v6686_v0 = vpop.f32.mrf.mxu1 }
 0x180   : > { %v1353_v8 = vpop.f32.mrf.mxu0  ;;  %v1391_v9 = vpop.f32.mrf.mxu1 }
 0x181   : > { %v6688_v3 = vpop.f32.mrf.mxu2  ;;  %v6690_v4 = vpop.f32.mrf.mxu3  ;;  %v4686_v8 = vld [vmem:[%s9525_s3 + $0x1f8] sm:$0xf]  ;;  %v5677_v9 = vld [vmem:[%s9525_s3 + $0x200] sm:$0xf0] }
 0x189   : > { %v1404_v10 = vpop.f32.mrf.mxu2  ;;  %v1417_v13 = vpop.f32.mrf.mxu3 }
 0x18a   : > { %v6824_v13 = vor.u32 %v5677_v9, %v4686_v8  ;;  %v6907_v8 = vor.u32 %v5638_v41, %v4530_v2  ;;  %v6914_v9 = vld [vmem:[%s9524_s2] sm:$0xf] }
 0x190   : > { %v6692_v17 = vpop.f32.mrf.mxu0  ;;  %v1441_v20 = vpop.f32.mrf.mxu1 }
 0x191   : > { %1477 = vrot.lane.b32.xlu0 %v1441_v20, %s6007_s20  ;;  %1475 = vrot.lane.b32.xlu2 %v6692_v17, %s6007_s20 }
 0x197   : > { %v1454_v21 = vpop.f32.mrf.mxu2  ;;  %v1467_v29 = vpop.f32.mrf.mxu3 }
 0x198   : > { %1479 = vrot.lane.b32.xlu1 %v1454_v21, %s6007_s20  ;;  %v1430_v32 = vpop.f32.mrf.mxu0  ;;  %v1443_v30 = vpop.f32.mrf.mxu1  ;;  %v4458_v21 = vld [vmem:[%s9525_s3 + $0x30] sm:$0xf] }
 0x199   : > { %1124 = vrot.lane.b32.xlu0 %v1088_v39, %s6007_s20  ;;  %1122 = vrot.lane.b32.xlu2 %v6664_v25, %s6007_s20  ;;  %v4554_v32 = vld [vmem:[%s9525_s3 + $0xf0] sm:$0xf] }
 0x19f   : > { %v1456_v37 = vpop.f32.mrf.mxu2  ;;  %v1469_v43 = vpop.f32.mrf.mxu3 }
 0x1a0   : > { %1126 = vrot.lane.b32.xlu1 %v1101_v40, %s6007_s20  ;;  %v4494_v40 = vld [vmem:[%s9525_s3 + $0x78] sm:$0xf]  ;;  %v5644_v37 = vld [vmem:[%s9525_s3 + $0xf8] sm:$0xf0]  ;;  %v4674_v43 = vld [vmem:[%s9525_s3 + $0x1e0] sm:$0xf] }
 0x1a1   : > { %1241 = vrot.lane.b32.xlu0 %v1205_v27, %s6007_s20  ;;  %1239 = vrot.lane.b32.xlu2 %v6672_v12, %s6007_s20  ;;  %v5683_v27 = vld [vmem:[%s9525_s3 + $0x230] sm:$0xf0]  ;;  %v6849_v44 = vor.u32 %v5644_v37, %v4554_v32  ;;  %v6851_v45 = vor.u32 %v5674_v22, %v4674_v43  ;;  %v1499_v43 = vperm.slane %v6914_v9, 0 }
 0x1a2   : > { %v6770_v36 = vor.u32 %v5683_v27, %v4710_v5  ;;  %v5671_v5 = vld [vmem:[%s9525_s3 + $0x1d0] sm:$0xf0] }
 0x1a4   : > { %2956 = vmatpush.bf16.msrb.mxu2 %v6770_v36 }
 0x1a8   : > { %1243 = vrot.lane.b32.xlu1 %v1218_v51, %s6007_s20  ;;  %v4578_v51 = vld [vmem:[%s9525_s3 + $0x120] sm:$0xf]  ;;  %2957 = vmatpush.bf16.msrb.mxu2 %v6797_v28 }
 0x1a9   : > { %1481 = vrot.lane.b32.xlu0 %v1467_v29, %s6007_s20  ;;  %1365 = vrot.lane.b32.xlu2 %v1351_v63, %s6007_s20  ;;  %v6795_v14 = vor.u32 %v5650_v1, %v4578_v51  ;;  %v5647_v63 = vld [vmem:[%s9525_s3 + $0x110] sm:$0xf0]  ;;  %v5620_v29 = vld [vmem:[%s9525_s3 + $0x38] sm:$0xf0] }
 0x1aa   : > { %v6822_v10 = vor.u32 %v5647_v63, %v4566_v56  ;;  %v6838_v30 = vor.u32 %v5620_v29, %v4458_v21  ;;  %v4434_v51 = vld [vmem:[%s9525_s3] sm:$0xf]  ;;  %v5614_v1 = vld [vmem:[%s9525_s3 + $0x8] sm:$0xf0]  ;;  %v5668_v56 = vld [vmem:[%s9525_s3 + $0x1b8] sm:$0xf0] }
 0x1ab   : > { %2946 = vmatpush.bf16.msrb.mxu1 %v6795_v14  ;;  %v4638_v29 = vld [vmem:[%s9525_s3 + $0x198] sm:$0xf] }
 0x1ac   : > { %2958 = vmatpush.bf16.msrb.mxu2 %v6824_v13 }
 0x1af   : > { %2947 = vmatpush.bf16.msrb.mxu1 %v6822_v10 }
 0x1b0   : > { %1128 = vrot.lane.b32.xlu1 %v1114_v46, %s6007_s20  ;;  %v5629_v46 = vld [vmem:[%s9525_s3 + $0x80] sm:$0xf0]  ;;  %2959 = vmatpush.bf16.msrb.mxu2 %v6851_v45 }
 0x1b1   : > { %1245 = vrot.lane.b32.xlu2 %v1231_v52, %s6007_s20  ;;  %v6757_v60 = vor.u32 %v5629_v46, %v4494_v40  ;;  %v6784_v52 = vor.u32 %v5626_v50, %v4482_v42  ;;  %v4662_v40 = vld [vmem:[%s9525_s3 + $0x1c8] sm:$0xf] }
 0x1b2   : > { %v6879_v42 = vor.u32 %v5671_v5, %v4662_v40  ;;  %v1500_v40 = vperm.slane %v6914_v9, 1 }
 0x1b3   : > { %2932 = vmatpush.bf16.msrb.mxu0 %v6757_v60  ;;  %2948 = vmatpush.bf16.msrb.mxu1 %v6849_v44 }
 0x1b4   : > { %2960 = vmatpush.bf16.msrb.mxu2 %v6879_v42 }
 0x1b7   : > { %2933 = vmatpush.bf16.msrb.mxu0 %v6784_v52  ;;  %2949 = vmatpush.bf16.msrb.mxu1 %v6873_v61 }
 0x1bb   : > { %v6745_v39 = vpop.permute.xlu2 %1359  ;;  %2934 = vmatpush.bf16.msrb.mxu0 %v6811_v58  ;;  %2950 = vmatpush.bf16.msrb.mxu1 %v6907_v8 }
 0x1bf   : > { %2935 = vmatpush.bf16.msrb.mxu0 %v6838_v30 }
 0x1c3   : > { %2936 = vmatpush.bf16.msrb.mxu0 %v6862_v59 }
 0x1dc   : > { %v1362_v20 = vpop.permute.xlu0 %1361  ;;  %v1364_v46 = vpop.permute.xlu1 %1363 }
 0x1dd   : > { %v1367_v6 = vsel %vm1130_vm4, %v6745_v39, %v1362_v20  ;;  %v6909_v39 = vor.u32 %v5668_v56, %v4650_v47  ;;  %v1368_v32 = vsel %vm1130_vm4, %v1362_v20, %v1364_v46  ;;  %v4626_v20 = vld [vmem:[%s9525_s3 + $0x180] sm:$0xf] }
 0x1de   : > { %v1374_v21 = vmax.f32 %v6674_v57, %v1367_v6  ;;  %v1375_v26 = vmax.f32 %v6676_v62, %v1368_v32 }
 0x1df   : > { %9712 = vst [vmem:[#allocation5_spill] sm:$0xff] %v6909_v39  ;;  %2961 = vmatpush.bf16.msrb.mxu2 %v6909_v39 }
 0x1eb   : > { %v1476_v38 = vpop.permute.xlu2 %1475 }
 0x1f3   : > { %v1123_v55 = vpop.permute.xlu2 %1122 }
 0x1fb   : > { %v1240_v34 = vpop.permute.xlu2 %1239 }
 0x203   : > { %v1478_v27 = vpop.permute.xlu0 %1477 }
 0x204   : > { %v1483_v50 = vsel %vm1130_vm4, %v1476_v38, %v1478_v27  ;;  %v6895_v38 = vor.u32 %v5614_v1, %v4434_v51 }
 0x205   : > { %v1490_v63 = vmax.f32 %v6686_v0, %v1483_v50  ;;  %v5665_v0 = vld [vmem:[%s9525_s3 + $0x1a0] sm:$0xf0]  ;;  %v5662_v50 = vld [vmem:[%s9525_s3 + $0x188] sm:$0xf0] }
 0x206   : > { %2937 = vmatpush.bf16.msrb.mxu0 %v6895_v38  ;;  %v6927_v37 = vor.u32 %v5665_v0, %v4638_v29  ;;  %v6941_v51 = vor.u32 %v5662_v50, %v4626_v20 }
 0x207   : > { %v1494_v22 = vmax.f32 %v1374_v21, %v1490_v63  ;;  %v1366_v21 = vpop.permute.xlu2 %1365 }
 0x208   : > { %9713 = vst [vmem:[#allocation6_spill] sm:$0xff] %v6927_v37  ;;  %2962 = vmatpush.bf16.msrb.mxu2 %v6927_v37 }
 0x209   : > { %9714 = vst [vmem:[#allocation7_spill] sm:$0xff] %v6941_v51 }
 0x20a   : > { %v1480_v57 = vpop.permute.xlu1 %1479 }
 0x20b   : > { %v1484_v23 = vsel %vm1130_vm4, %v1478_v27, %v1480_v57  ;;  %v1125_v53 = vpop.permute.xlu0 %1124  ;;  %v1517_v27 = vadd.f32 %v1499_v43, %v1494_v22 }
 0x20c   : > { %v1491_v5 = vmax.f32 %v6688_v3, %v1484_v23  ;;  %2963 = vmatpush.bf16.msrb.mxu2 %v6941_v51  ;;  %v1131_v63 = vsel %vm1130_vm4, %v1123_v55, %v1125_v53  ;;  %v1377_v55 = vmax.f32 %v6680_v16, %v1366_v21  ;;  %v5689_v51 = vld [vmem:[%s9525_s3 + $0x260] sm:$0xf0] }
 0x20d   : > { %v1521_v2 = vmax.f32 %v1517_v27, 0.0  ;;  %v1138_v22 = vmax.f32 %v6658_v18, %v1131_v63 }
 0x20e   : > { %v1495_v1 = vmax.f32 %v1375_v26, %v1491_v5  ;;  %v1369_v26 = vsel %vm1130_vm4, %v1364_v46, %v1366_v21 }
 0x20f   : > { %v1246_v63 = vpop.permute.xlu2 %1245 }
 0x210   : > { %v1518_v62 = vadd.f32 %v1500_v40, %v1495_v1  ;;  %v1376_v1 = vmax.f32 %v6678_v15, %v1369_v26  ;;  %v1257_v15 = vmax.f32 %v6672_v12, %v1246_v63 }
 0x212   : > { %v1522_v6 = vmax.f32 %v1518_v62, 0.0  ;;  %v1127_v3 = vpop.permute.xlu1 %1126  ;;  %v1501_v62 = vperm.slane %v6914_v9, 2 }
 0x213   : > { %v1242_v41 = vpop.permute.xlu0 %1241  ;;  %v1132_v23 = vsel %vm1130_vm4, %v1125_v53, %v1127_v3 }
 0x214   : > { %v6944_v47 = vpack.c.bf16 %v1522_v6, %v1521_v2  ;;  %v1247_v56 = vsel %vm1130_vm4, %v1240_v34, %v1242_v41  ;;  %v1139_v27 = vmax.f32 %v6660_v19, %v1132_v23 }
 0x215   : > { %v1254_v0 = vmax.f32 %v6666_v54, %v1247_v56  ;;  %v1502_v54 = vperm.slane %v6914_v9, 3 }
 0x216   : > { %v1542_v29 = vunpack.c.l.b16 %v6944_v47 }
 0x217   : > { %v1258_v5 = vmax.f32 %v1138_v22, %v1254_v0 }
 0x218   : > { %v6950_v32 = vpack.c.b16 %v1542_v29, %v1542_v29 }
 0x219   : > { %v1507_v16 = vadd.f32 %v1499_v43, %v1258_v5 }
 0x21a   : > { %v1244_v20 = vpop.permute.xlu1 %1243  ;;  %1550 = vrot.lane.b32.xlu0 %v6950_v32, %s6008_s16 }
 0x21b   : > { %v1248_v34 = vsel %vm1130_vm4, %v1242_v41, %v1244_v20  ;;  %v1482_v50 = vpop.permute.xlu0 %1481  ;;  %v1249_v19 = vsel %vm1130_vm4, %v1244_v20, %v1246_v63  ;;  %v1511_v0 = vmax.f32 %v1507_v16, 0.0 }
 0x21c   : > { %v1255_v18 = vmax.f32 %v6668_v7, %v1248_v34  ;;  %v1485_v53 = vsel %vm1130_vm4, %v1480_v57, %v1482_v50  ;;  %v1493_v46 = vmax.f32 %v6692_v17, %v1482_v50  ;;  %v1256_v43 = vmax.f32 %v6670_v11, %v1249_v19 }
 0x21d   : > { %v1492_v2 = vmax.f32 %v6690_v4, %v1485_v53 }
 0x21e   : > { %v1259_v6 = vmax.f32 %v1139_v27, %v1255_v18  ;;  %v1497_v41 = vmax.f32 %v1377_v55, %v1493_v46 }
 0x21f   : > { %v1496_v56 = vmax.f32 %v1376_v1, %v1492_v2 }
 0x220   : > { %v1508_v21 = vadd.f32 %v1500_v40, %v1259_v6  ;;  %v1520_v29 = vadd.f32 %v1502_v54, %v1497_v41 }
 0x221   : > { %v1519_v7 = vadd.f32 %v1501_v62, %v1496_v56 }
 0x222   : > { %v1512_v57 = vmax.f32 %v1508_v21, 0.0  ;;  %v1524_v22 = vmax.f32 %v1520_v29, 0.0  ;;  %v1129_v17 = vpop.permute.xlu1 %1128 }
 0x223   : > { %v1523_v23 = vmax.f32 %v1519_v7, 0.0  ;;  %v1133_v9 = vsel %vm1130_vm4, %v1127_v3, %v1129_v17  ;;  %v1141_v4 = vmax.f32 %v6664_v25, %v1129_v17  ;;  %v4806_v7 = vld [vmem:[%s9525_s3 + $0x2e8] sm:$0xf]  ;;  %v4794_v17 = vld [vmem:[%s9525_s3 + $0x2d0] sm:$0xf] }
 0x224   : > { %v1515_v26 = vpack.c.bf16 %v1512_v57, %v1511_v0  ;;  %v1140_v40 = vmax.f32 %v6662_v24, %v1133_v9  ;;  %v5707_v0 = vld [vmem:[%s9525_s3 + $0x2f0] sm:$0xf0]  ;;  %v1543_v57 = vunpack.c.h.b16 %v6944_v47 }
 0x225   : > { %v1526_v5 = vpack.c.bf16 %v1524_v22, %v1523_v23  ;;  %v1261_v55 = vmax.f32 %v1141_v4, %v1257_v15  ;;  %v5704_v15 = vld [vmem:[%s9525_s3 + $0x2d8] sm:$0xf0]  ;;  %v7014_v9 = vor.u32 %v5707_v0, %v4806_v7  ;;  %v4902_v4 = vld [vmem:[%s9525_s3 + $0x3a8] sm:$0xf]  ;;  %v5731_v47 = vld [vmem:[%s9525_s3 + $0x3b0] sm:$0xf0] }
 0x226   : > { %v1529_v20 = vunpack.c.l.b16 %v1515_v26  ;;  %v1530_v34 = vunpack.c.h.b16 %v1515_v26  ;;  %v1260_v50 = vmax.f32 %v1140_v40, %v1256_v43  ;;  %v7023_v40 = vor.u32 %v5731_v47, %v4902_v4  ;;  %v4998_v7 = vld [vmem:[%s9525_s3 + $0x468] sm:$0xf]  ;;  %v5755_v0 = vld [vmem:[%s9525_s3 + $0x470] sm:$0xf0]  ;;  %v4986_v47 = vld [vmem:[%s9525_s3 + $0x450] sm:$0xf] }
 0x227   : > { %v1544_v27 = vunpack.c.l.b16 %v1526_v5  ;;  %v1510_v18 = vadd.f32 %v1502_v54, %v1261_v55  ;;  %v1545_v23 = vunpack.c.h.b16 %v1526_v5  ;;  %v4890_v55 = vld [vmem:[%s9525_s3 + $0x390] sm:$0xf]  ;;  %2969 = vmatpush.bf16.msrb.mxu3 %v7014_v9  ;;  %v5695_v4 = vld [vmem:[%s9525_s3 + $0x290] sm:$0xf0] }
 0x228   : > { %v6973_v53 = vpack.c.b16 %v1529_v20, %v1529_v20  ;;  %v6975_v12 = vpack.c.b16 %v1530_v34, %v1530_v34  ;;  %v1509_v46 = vadd.f32 %v1501_v62, %v1260_v50  ;;  %v7030_v20 = vor.u32 %v5704_v15, %v4794_v17  ;;  %v5728_v34 = vld [vmem:[%s9525_s3 + $0x398] sm:$0xf0]  ;;  %2982 = vmatpush.bf16.msra.mxu0 %v7023_v40 }
 0x229   : > { %v6977_v3 = vpack.c.b16 %v1544_v27, %v1544_v27  ;;  %v1514_v25 = vmax.f32 %v1510_v18, 0.0  ;;  %v7035_v50 = vpack.c.b16 %v1543_v57, %v1543_v57  ;;  %v4782_v18 = vld [vmem:[%s9525_s3 + $0x2b8] sm:$0xf]  ;;  %v7085_v17 = vor.u32 %v5755_v0, %v4998_v7  ;;  %v5692_v7 = vld [vmem:[%s9525_s3 + $0x278] sm:$0xf0] }
 0x22a   : > { %v1513_v1 = vmax.f32 %v1509_v46, 0.0  ;;  %2938 = vmatmul.bf16.vlgmr.msrb.gmra.mxu0 %v6973_v53  ;;  %2951 = vmatmul.bf16.vlgmr.msrb.gmra.mxu1 %v6975_v12  ;;  %v1574_v24 = vshll.u32 %v6975_v12, 16  ;;  %v1567_v11 = vshll.u32 %v6973_v53, 16  ;;  %v1572_v2 = vshrl.u32 %v6975_v12, 16  ;;  %v5701_v46 = vld [vmem:[%s9525_s3 + $0x2c0] sm:$0xf0] }
 0x22b   : > { %9715 = vst [vmem:[#allocation8_spill] sm:$0xff] %v6977_v3  ;;  %1554 = vrot.lane.b32.xlu0 %v6977_v3, %s6008_s16  ;;  %v1565_v62 = vshrl.u32 %v6973_v53, 16  ;;  %2970 = vmatpush.bf16.msrb.mxu3 %v7030_v20 }
 0x22c   : > { %v1516_v54 = vpack.c.bf16 %v1514_v25, %v1513_v1  ;;  %v1576_v16 = vrot.slane %v1574_v24, 1  ;;  %v1569_v6 = vrot.slane %v1567_v11, 1  ;;  %9716 = vst [vmem:[#allocation9_spill] sm:$0xff] %v7035_v50  ;;  %v7044_v25 = vor.u32 %v5728_v34, %v4890_v55  ;;  %v4878_v24 = vld [vmem:[%s9525_s3 + $0x378] sm:$0xf]  ;;  %2995 = vmatpush.bf16.msra.mxu1 %v7085_v17 }
 0x22d   : > { %v7046_v1 = vpack.c.b16 %v1545_v23, %v1545_v23  ;;  %v5725_v11 = vld [vmem:[%s9525_s3 + $0x380] sm:$0xf0]  ;;  %v4758_v23 = vld [vmem:[%s9525_s3 + $0x288] sm:$0xf] }
 0x22e   : > { %v1531_v41 = vunpack.c.l.b16 %v1516_v54  ;;  %v1532_v56 = vunpack.c.h.b16 %v1516_v54  ;;  %v6987_v63 = vor.u32 %v1576_v16, %v1572_v2  ;;  %v6989_v21 = vor.u32 %v1569_v6, %v1565_v62  ;;  %2983 = vmatpush.bf16.msra.mxu0 %v7044_v25  ;;  %v4770_v16 = vld [vmem:[%s9525_s3 + $0x2a0] sm:$0xf]  ;;  %v5698_v62 = vld [vmem:[%s9525_s3 + $0x2a8] sm:$0xf0]  ;;  %v5094_v55 = vld [vmem:[%s9525_s3 + $0x528] sm:$0xf] }
 0x22f   : > { %9717 = vst [vmem:[#allocation10_spill] sm:$0xff] %v7046_v1  ;;  %v7060_v2 = vor.u32 %v5701_v46, %v4782_v18  ;;  %v7069_v6 = vor.u32 %v5725_v11, %v4878_v24  ;;  %v7088_v15 = vor.u32 %v5698_v62, %v4770_v16  ;;  %v4854_v18 = vld [vmem:[%s9525_s3 + $0x348] sm:$0xf]  ;;  %v5719_v46 = vld [vmem:[%s9525_s3 + $0x350] sm:$0xf0]  ;;  %v7130_v62 = vor.u32 %v5695_v4, %v4758_v23 }
 0x230   : > { %v6991_v29 = vpack.c.b16 %v1531_v41, %v1531_v41  ;;  %1594 = vrot.lane.b32.xlu2 %v6987_v63, %s9592_s8  ;;  %1592 = vrot.lane.b32.xlu1 %v6989_v21, %s9592_s8  ;;  %v6997_v19 = vpack.c.b16 %v1532_v56, %v1532_v56  ;;  %v4866_v41 = vld [vmem:[%s9525_s3 + $0x360] sm:$0xf]  ;;  %v5722_v56 = vld [vmem:[%s9525_s3 + $0x368] sm:$0xf0]  ;;  %v7148_v0 = vor.u32 %v5719_v46, %v4854_v18 }
 0x231   : > { %2971 = vmatpush.bf16.msrb.mxu3 %v7060_v2  ;;  %9720 = vst [vmem:[#allocation13_spill] sm:$0xff] %v7130_v62  ;;  %v5716_v23 = vld [vmem:[%s9525_s3 + $0x338] sm:$0xf0]  ;;  %v5070_v18 = vld [vmem:[%s9525_s3 + $0x4f8] sm:$0xf] }
 0x232   : > { %2964 = vmatmul.bf16.vlgmr.msrb.gmra.mxu2 %v6991_v29  ;;  %v1581_v22 = vshll.u32 %v6991_v29, 16  ;;  %v1579_v43 = vshrl.u32 %v6991_v29, 16  ;;  %v1588_v5 = vshll.u32 %v6997_v19, 16  ;;  %v1586_v57 = vshrl.u32 %v6997_v19, 16  ;;  %2984 = vmatpush.bf16.msra.mxu0 %v7069_v6  ;;  %v5773_v46 = vld [vmem:[%s9525_s3 + $0x500] sm:$0xf0] }
 0x234   : > { %v1583_v26 = vrot.slane %v1581_v22, 1  ;;  %v1590_v54 = vrot.slane %v1588_v5, 1  ;;  %v1634_v22 = vshll.u32 %v6950_v32, 16  ;;  %v5779_v5 = vld [vmem:[%s9525_s3 + $0x530] sm:$0xf0] }
 0x235   : > { %v7120_v11 = vor.u32 %v5779_v5, %v5094_v55  ;;  %2972 = vmatpush.bf16.msrb.mxu3 %v7088_v15  ;;  %v1632_v55 = vshrl.u32 %v6950_v32, 16  ;;  %v1641_v5 = vshll.u32 %v7035_v50, 16 }
 0x236   : > { %v1584_v27 = vor.u32 %v1583_v26, %v1579_v43  ;;  %v7100_v43 = vor.u32 %v5722_v56, %v4866_v41  ;;  %v5752_v26 = vld [vmem:[%s9525_s3 + $0x458] sm:$0xf0]  ;;  %v1591_v34 = vor.u32 %v1590_v54, %v1586_v57  ;;  %v1636_v16 = vrot.slane %v1634_v22, 1  ;;  %v4974_v54 = vld [vmem:[%s9525_s3 + $0x438] sm:$0xf] }
 0x237   : > { %v7118_v24 = vor.u32 %v5752_v26, %v4986_v47  ;;  %9719 = vst [vmem:[#allocation12_spill] sm:$0xff] %v7120_v11  ;;  %v5749_v41 = vld [vmem:[%s9525_s3 + $0x440] sm:$0xf0]  ;;  %v4746_v56 = vld [vmem:[%s9525_s3 + $0x270] sm:$0xf]  ;;  %3008 = vmatpush.bf16.msra.mxu2 %v7120_v11 }
 0x238   : > { %1552 = vrot.lane.b32.xlu2 %v7035_v50, %s6008_s16  ;;  %1596 = vrot.lane.b32.xlu0 %v1584_v27, %s9592_s8  ;;  %v4842_v57 = vld [vmem:[%s9525_s3 + $0x330] sm:$0xf]  ;;  %v7154_v22 = vor.u32 %v5749_v41, %v4974_v54  ;;  %v4962_v47 = vld [vmem:[%s9525_s3 + $0x420] sm:$0xf]  ;;  %v1655_v54 = vshll.u32 %v7046_v1, 16  ;;  %v1648_v41 = vshll.u32 %v6977_v3, 16 }
 0x239   : > { %1556 = vrot.lane.b32.xlu1 %v7046_v1, %s6008_s16  ;;  %9718 = vst [vmem:[#allocation11_spill] sm:$0xff] %v7118_v24  ;;  %2985 = vmatpush.bf16.msra.mxu0 %v7100_v43  ;;  %v5746_v26 = vld [vmem:[%s9525_s3 + $0x428] sm:$0xf0]  ;;  %v4734_v11 = vld [vmem:[%s9525_s3 + $0x258] sm:$0xf]  ;;  %v7188_v37 = vor.u32 %v5716_v23, %v4842_v57 }
 0x23a   : > { %2996 = vmatpush.bf16.msra.mxu1 %v7118_v24  ;;  %9721 = vst [vmem:[#allocation14_spill] sm:$0xff] %v7154_v22  ;;  %2973 = vmatpush.bf16.msrb.mxu3 %v7130_v62  ;;  %v4830_v24 = vld [vmem:[%s9525_s3 + $0x318] sm:$0xf]  ;;  %v4950_v57 = vld [vmem:[%s9525_s3 + $0x408] sm:$0xf]  ;;  %v1646_v62 = vshrl.u32 %v6977_v3, 16 }
 0x23b   : > { %v5743_v23 = vld [vmem:[%s9525_s3 + $0x410] sm:$0xf0] }
 0x23d   : > { %2986 = vmatpush.bf16.msra.mxu0 %v7148_v0 }
 0x23e   : > { %2997 = vmatpush.bf16.msra.mxu1 %v7154_v22  ;;  %v5686_v22 = vld [vmem:[%s9525_s3 + $0x248] sm:$0xf0] }
 0x240   : > { %1620 = vrot.lane.b32.xlu2 %v6987_v63, %s6008_s16  ;;  %1622 = vrot.lane.b32.xlu0 %v1584_v27, %s6008_s16  ;;  %v5082_v63 = vld [vmem:[%s9525_s3 + $0x510] sm:$0xf]  ;;  %v5776_v27 = vld [vmem:[%s9525_s3 + $0x518] sm:$0xf0] }
 0x241   : > { %1598 = vrot.lane.b32.xlu1 %v1591_v34, %s9592_s8  ;;  %v7160_v4 = vor.u32 %v5776_v27, %v5082_v63  ;;  %v7179_v63 = vor.u32 %v5692_v7, %v4746_v56  ;;  %v1637_v27 = vor.u32 %v1636_v16, %v1632_v55  ;;  %v7194_v56 = vor.u32 %v5746_v26, %v4962_v47  ;;  %v5713_v16 = vld [vmem:[%s9525_s3 + $0x320] sm:$0xf0]  ;;  %v5058_v55 = vld [vmem:[%s9525_s3 + $0x4e0] sm:$0xf] }
 0x242   : > { %v7200_v7 = vor.u32 %v5773_v46, %v5070_v18  ;;  %v1639_v47 = vshrl.u32 %v7035_v50, 16  ;;  %v1643_v26 = vrot.slane %v1641_v5, 1  ;;  %v5770_v18 = vld [vmem:[%s9525_s3 + $0x4e8] sm:$0xf0]  ;;  %v1653_v46 = vshrl.u32 %v7046_v1, 16  ;;  %2987 = vmatpush.bf16.msra.mxu0 %v7188_v37 }
 0x243   : > { %9722 = vst [vmem:[#allocation15_spill] sm:$0xff] %v7160_v4  ;;  %3009 = vmatpush.bf16.msra.mxu2 %v7160_v4  ;;  %v1657_v4 = vrot.slane %v1655_v54, 1  ;;  %2974 = vmatpush.bf16.msrb.mxu3 %v7179_v63  ;;  %v4722_v5 = vld [vmem:[%s9525_s3 + $0x240] sm:$0xf]  ;;  %v5803_v54 = vld [vmem:[%s9525_s3 + $0x5f0] sm:$0xf0] }
 0x244   : > { %9723 = vst [vmem:[#allocation16_spill] sm:$0xff] %v7179_v63  ;;  %2998 = vmatpush.bf16.msra.mxu1 %v7194_v56  ;;  %v5710_v1 = vld [vmem:[%s9525_s3 + $0x308] sm:$0xf0]  ;;  %v5286_v63 = vld [vmem:[%s9525_s3 + $0x6a8] sm:$0xf] }
 0x245   : > { %9724 = vst [vmem:[#allocation17_spill] sm:$0xff] %v7194_v56  ;;  %v1644_v56 = vor.u32 %v1643_v26, %v1639_v47  ;;  %v1658_v50 = vor.u32 %v1657_v4, %v1653_v46  ;;  %v5178_v47 = vld [vmem:[%s9525_s3 + $0x5d0] sm:$0xf]  ;;  %v5824_v46 = vld [vmem:[%s9525_s3 + $0x698] sm:$0xf0] }
 0x246   : > { %9725 = vst [vmem:[#allocation18_spill] sm:$0xff] %v7200_v7  ;;  %v5274_v4 = vld [vmem:[%s9525_s3 + $0x690] sm:$0xf] }
 0x247   : > { %3010 = vmatpush.bf16.msra.mxu2 %v7200_v7  ;;  %v7264_v7 = vor.u32 %v5686_v22, %v4722_v5  ;;  %v5800_v5 = vld [vmem:[%s9525_s3 + $0x5d8] sm:$0xf0] }
 0x248   : > { %1624 = vrot.lane.b32.xlu2 %v1591_v34, %s6008_s16  ;;  %1659 = vrot.lane.b32.xlu0 %v1637_v27, %s9592_s8  ;;  %v1650_v34 = vrot.slane %v1648_v41, 1  ;;  %v7221_v27 = vor.u32 %v5689_v51, %v4734_v11  ;;  %v7236_v51 = vor.u32 %v5713_v16, %v4830_v24  ;;  %v7239_v11 = vor.u32 %v5743_v23, %v4950_v57  ;;  %v4818_v41 = vld [vmem:[%s9525_s3 + $0x300] sm:$0xf]  ;;  %v5827_v16 = vld [vmem:[%s9525_s3 + $0x6b0] sm:$0xf0] }
 0x249   : > { %1618 = vrot.lane.b32.xlu1 %v6989_v21, %s6008_s16  ;;  %v5190_v21 = vld [vmem:[%s9525_s3 + $0x5e8] sm:$0xf]  ;;  %v7251_v24 = vor.u32 %v5770_v18, %v5058_v55  ;;  %v4938_v57 = vld [vmem:[%s9525_s3 + $0x3f0] sm:$0xf]  ;;  %v5740_v23 = vld [vmem:[%s9525_s3 + $0x3f8] sm:$0xf0]  ;;  %v7278_v26 = vor.u32 %v5710_v1, %v4818_v41  ;;  %v7284_v3 = vor.u32 %v5827_v16, %v5286_v63  ;;  %v7324_v16 = vor.u32 %v5824_v46, %v5274_v4 }
 0x24a   : > { %9726 = vst [vmem:[#allocation19_spill] sm:$0xff] %v7221_v27  ;;  %2975 = vmatpush.bf16.msrb.mxu3 %v7221_v27  ;;  %v5046_v55 = vld [vmem:[%s9525_s3 + $0x4c8] sm:$0xf]  ;;  %v5767_v18 = vld [vmem:[%s9525_s3 + $0x4d0] sm:$0xf0]  ;;  %v7272_v39 = vor.u32 %v5803_v54, %v5190_v21  ;;  %2988 = vmatpush.bf16.msra.mxu0 %v7236_v51  ;;  %v1651_v22 = vor.u32 %v1650_v34, %v1646_v62 }
 0x24b   : > { %9727 = vst [vmem:[#allocation20_spill] sm:$0xff] %v7239_v11  ;;  %2999 = vmatpush.bf16.msra.mxu1 %v7239_v11  ;;  %3011 = vmatpush.bf16.msra.mxu2 %v7251_v24  ;;  %v7293_v1 = vor.u32 %v5740_v23, %v4938_v57  ;;  %v7297_v62 = vor.u32 %v5767_v18, %v5046_v55  ;;  %v4926_v63 = vld [vmem:[%s9525_s3 + $0x3d8] sm:$0xf]  ;;  %v5737_v34 = vld [vmem:[%s9525_s3 + $0x3e0] sm:$0xf0] }
 0x24c   : > { %9728 = vst [vmem:[#allocation21_spill] sm:$0xff] %v7251_v24  ;;  %v7314_v21 = vor.u32 %v5800_v5, %v5178_v47  ;;  %v5166_v54 = vld [vmem:[%s9525_s3 + $0x5b8] sm:$0xf]  ;;  %v5797_v41 = vld [vmem:[%s9525_s3 + $0x5c0] sm:$0xf0]  ;;  %v7330_v23 = vor.u32 %v5737_v34, %v4926_v63 }
 0x24d   : > { %9729 = vst [vmem:[#allocation22_spill] sm:$0xff] %v7264_v7  ;;  %v5262_v57 = vld [vmem:[%s9525_s3 + $0x678] sm:$0xf]  ;;  %v5821_v55 = vld [vmem:[%s9525_s3 + $0x680] sm:$0xf0]  ;;  %v7345_v5 = vor.u32 %v5797_v41, %v5166_v54 }
 0x24e   : > { %9730 = vst [vmem:[#allocation23_spill] sm:$0xff] %v7272_v39  ;;  %2976 = vmatpush.bf16.msrb.mxu3 %v7264_v7  ;;  %2989 = vmatpush.bf16.msra.mxu0 %v7278_v26  ;;  %v4914_v47 = vld [vmem:[%s9525_s3 + $0x3c0] sm:$0xf]  ;;  %v5794_v46 = vld [vmem:[%s9525_s3 + $0x5a8] sm:$0xf0]  ;;  %v7354_v63 = vor.u32 %v5821_v55, %v5262_v57 }
 0x24f   : > { %9731 = vst [vmem:[#allocation24_spill] sm:$0xff] %v7278_v26  ;;  %3000 = vmatpush.bf16.msra.mxu1 %v7293_v1  ;;  %3012 = vmatpush.bf16.msra.mxu2 %v7297_v62  ;;  %v5154_v4 = vld [vmem:[%s9525_s3 + $0x5a0] sm:$0xf]  ;;  %v5142_v41 = vld [vmem:[%s9525_s3 + $0x588] sm:$0xf] }
 0x250   : > { %9732 = vst [vmem:[#allocation25_spill] sm:$0xff] %v7284_v3  ;;  %1665 = vrot.lane.b32.xlu2 %v1658_v50, %s9592_s8  ;;  %1661 = vrot.lane.b32.xlu0 %v1644_v56, %s9592_s8  ;;  %v5034_v50 = vld [vmem:[%s9525_s3 + $0x4b0] sm:$0xf]  ;;  %v5764_v56 = vld [vmem:[%s9525_s3 + $0x4b8] sm:$0xf0]  ;;  %v7367_v54 = vor.u32 %v5794_v46, %v5154_v4 }
 0x251   : > { %9733 = vst [vmem:[#allocation26_spill] sm:$0xff] %v7293_v1  ;;  %1663 = vrot.lane.b32.xlu1 %v1651_v22, %s9592_s8  ;;  %v7336_v18 = vor.u32 %v5764_v56, %v5034_v50  ;;  %v5734_v22 = vld [vmem:[%s9525_s3 + $0x3c8] sm:$0xf0]  ;;  %v5250_v50 = vld [vmem:[%s9525_s3 + $0x660] sm:$0xf] }
 0x252   : > { %9734 = vst [vmem:[#allocation27_spill] sm:$0xff] %v7297_v62  ;;  %3021 = vmatpush.bf16.msra.mxu3 %v7272_v39  ;;  %3034 = vmatpush.bf16.msrb.mxu0 %v7284_v3  ;;  %v7357_v34 = vor.u32 %v5734_v22, %v4914_v47  ;;  %v5818_v56 = vld [vmem:[%s9525_s3 + $0x668] sm:$0xf0]  ;;  %v5791_v57 = vld [vmem:[%s9525_s3 + $0x590] sm:$0xf0] }
 0x253   : > { %9735 = vst [vmem:[#allocation28_spill] sm:$0xff] %v7314_v21  ;;  %3001 = vmatpush.bf16.msra.mxu1 %v7330_v23  ;;  %3013 = vmatpush.bf16.msra.mxu2 %v7336_v18  ;;  %v7376_v55 = vor.u32 %v5818_v56, %v5250_v50  ;;  %v5238_v47 = vld [vmem:[%s9525_s3 + $0x648] sm:$0xf]  ;;  %v5815_v22 = vld [vmem:[%s9525_s3 + $0x650] sm:$0xf0]  ;;  %v7386_v4 = vor.u32 %v5791_v57, %v5142_v41 }
 0x254   : > { %9736 = vst [vmem:[#allocation29_spill] sm:$0xff] %v7324_v16  ;;  %v5130_v46 = vld [vmem:[%s9525_s3 + $0x570] sm:$0xf]  ;;  %v5788_v50 = vld [vmem:[%s9525_s3 + $0x578] sm:$0xf0]  ;;  %v7395_v56 = vor.u32 %v5815_v22, %v5238_v47 }
 0x255   : > { %9737 = vst [vmem:[#allocation30_spill] sm:$0xff] %v7330_v23  ;;  %v5118_v41 = vld [vmem:[%s9525_s3 + $0x558] sm:$0xf]  ;;  %v5785_v57 = vld [vmem:[%s9525_s3 + $0x560] sm:$0xf0] }
 0x256   : > { %9738 = vst [vmem:[#allocation31_spill] sm:$0xff] %v7336_v18  ;;  %3022 = vmatpush.bf16.msra.mxu3 %v7314_v21  ;;  %3035 = vmatpush.bf16.msrb.mxu0 %v7324_v16  ;;  %v7398_v18 = vor.u32 %v5788_v50, %v5130_v46  ;;  %v5022_v47 = vld [vmem:[%s9525_s3 + $0x498] sm:$0xf]  ;;  %v5761_v22 = vld [vmem:[%s9525_s3 + $0x4a0] sm:$0xf0] }
 0x257   : > { %9739 = vst [vmem:[#allocation32_spill] sm:$0xff] %v7345_v5  ;;  %3002 = vmatpush.bf16.msra.mxu1 %v7357_v34  ;;  %v5226_v46 = vld [vmem:[%s9525_s3 + $0x630] sm:$0xf]  ;;  %v7420_v50 = vor.u32 %v5761_v22, %v5022_v47  ;;  %v5106_v47 = vld [vmem:[%s9525_s3 + $0x540] sm:$0xf] }
 0x258   : > { %9740 = vst [vmem:[#allocation33_spill] sm:$0xff] %v7354_v63  ;;  %v5782_v22 = vld [vmem:[%s9525_s3 + $0x548] sm:$0xf0]  ;;  %v5703_v24 = vld [vmem:[%s9525_s3 + $0x2d4] sm:$0xf] }
 0x259   : > { %9741 = vst [vmem:[#allocation34_spill] sm:$0xff] %v7357_v34  ;;  %v7408_v34 = vor.u32 %v5785_v57, %v5118_v41  ;;  %v5812_v41 = vld [vmem:[%s9525_s3 + $0x638] sm:$0xf0]  ;;  %v5358_v57 = vld [vmem:[%s9525_s3 + $0x738] sm:$0xf]  ;;  %3014 = vmatpush.bf16.msra.mxu2 %v7420_v50 }
 0x25a   : > { %3023 = vmatpush.bf16.msra.mxu3 %v7345_v5  ;;  %9742 = vst [vmem:[#allocation35_spill] sm:$0xff] %v7367_v54  ;;  %3036 = vmatpush.bf16.msrb.mxu0 %v7354_v63  ;;  %v4532_v11 = vld [vmem:[%s9525_s3 + $0xcc] sm:$0xf0]  ;;  %v5730_v27 = vld [vmem:[%s9525_s3 + $0x3ac] sm:$0xf] }
 0x25b   : > { %9743 = vst [vmem:[#allocation36_spill] sm:$0xff] %v7376_v55  ;;  %v4904_v16 = vld [vmem:[%s9525_s3 + $0x3b4] sm:$0xf0] }
 0x25c   : > { %9744 = vst [vmem:[#allocation37_spill] sm:$0xff] %v7386_v4  ;;  %v5192_v3 = vld [vmem:[%s9525_s3 + $0x5f4] sm:$0xf0] }
 0x25d   : > { %9745 = vst [vmem:[#allocation38_spill] sm:$0xff] %v7395_v56 }
 0x25e   : > { %3024 = vmatpush.bf16.msra.mxu3 %v7367_v54  ;;  %3037 = vmatpush.bf16.msrb.mxu0 %v7376_v55  ;;  %9746 = vst [vmem:[#allocation39_spill] sm:$0xff] %v7398_v18  ;;  %v5637_v55 = vld [vmem:[%s9525_s3 + $0xc4] sm:$0xf] }
 0x25f   : > { %9747 = vst [vmem:[#allocation40_spill] sm:$0xff] %v7408_v34  ;;  %v7780_v39 = vor.u32 %v5637_v55, %v4532_v11  ;;  %v5751_v55 = vld [vmem:[%s9525_s3 + $0x454] sm:$0xf] }
 0x260   : > { %9748 = vst [vmem:[#allocation41_spill] sm:$0xff] %v7420_v50  ;;  %v5842_v50 = vld [vmem:[%s9525_s3 + $0x728] sm:$0xf0] }
 0x261   : > { %9784 = vst [vmem:[#allocation77_spill] sm:$0xff] %v7780_v39 }
 0x262   : > { %3025 = vmatpush.bf16.msra.mxu3 %v7386_v4  ;;  %3038 = vmatpush.bf16.msrb.mxu0 %v7395_v56  ;;  %v7431_v4 = vor.u32 %v5812_v41, %v5226_v46  ;;  %v5758_v46 = vld [vmem:[%s9525_s3 + $0x488] sm:$0xf0]  ;;  %v5214_v41 = vld [vmem:[%s9525_s3 + $0x618] sm:$0xf]  ;;  %v4556_v56 = vld [vmem:[%s9525_s3 + $0xfc] sm:$0xf0] }
 0x264   : > { %9749 = vst [vmem:[#allocation42_spill] sm:$0xff] %v7431_v4 }
 0x266   : > { %3026 = vmatpush.bf16.msra.mxu3 %v7398_v18  ;;  %v5845_v18 = vld [vmem:[%s9525_s3 + $0x740] sm:$0xf0]  ;;  %3039 = vmatpush.bf16.msrb.mxu0 %v7431_v4 }
 0x267   : > { %v7433_v54 = vor.u32 %v5845_v18, %v5358_v57  ;;  %v5010_v18 = vld [vmem:[%s9525_s3 + $0x480] sm:$0xf] }
 0x268   : > { %v7456_v57 = vor.u32 %v5758_v46, %v5010_v18  ;;  %v5634_v18 = vld [vmem:[%s9525_s3 + $0xac] sm:$0xf]  ;;  %v4520_v46 = vld [vmem:[%s9525_s3 + $0xb4] sm:$0xf0] }
 0x269   : > { %9750 = vst [vmem:[#allocation43_spill] sm:$0xff] %v7433_v54  ;;  %3049 = vmatpush.bf16.msrb.mxu1 %v7433_v54 }
 0x26a   : > { %3027 = vmatpush.bf16.msra.mxu3 %v7408_v34  ;;  %v7442_v34 = vor.u32 %v5782_v22, %v5106_v47  ;;  %9752 = vst [vmem:[#allocation45_spill] sm:$0xff] %v7456_v57  ;;  %v5809_v47 = vld [vmem:[%s9525_s3 + $0x620] sm:$0xf0]  ;;  %v5346_v22 = vld [vmem:[%s9525_s3 + $0x720] sm:$0xf]  ;;  %3015 = vmatpush.bf16.msra.mxu2 %v7456_v57 }
 0x26b   : > { %v7467_v54 = vor.u32 %v5809_v47, %v5214_v41  ;;  %v7469_v62 = vor.u32 %v5842_v50, %v5346_v22  ;;  %v5202_v50 = vld [vmem:[%s9525_s3 + $0x600] sm:$0xf]  ;;  %v5806_v41 = vld [vmem:[%s9525_s3 + $0x608] sm:$0xf0]  ;;  %v5334_v47 = vld [vmem:[%s9525_s3 + $0x708] sm:$0xf] }
 0x26c   : > { %9751 = vst [vmem:[#allocation44_spill] sm:$0xff] %v7442_v34  ;;  %v7492_v22 = vor.u32 %v5806_v41, %v5202_v50  ;;  %v4508_v57 = vld [vmem:[%s9525_s3 + $0x9c] sm:$0xf0]  ;;  %v5322_v50 = vld [vmem:[%s9525_s3 + $0x6f0] sm:$0xf] }
 0x26d   : > { %9753 = vst [vmem:[#allocation46_spill] sm:$0xff] %v7467_v54  ;;  %3040 = vmatpush.bf16.msrb.mxu0 %v7467_v54  ;;  %3050 = vmatpush.bf16.msrb.mxu1 %v7469_v62  ;;  %v5836_v41 = vld [vmem:[%s9525_s3 + $0x6f8] sm:$0xf0] }
 0x26e   : > { %3028 = vmatpush.bf16.msra.mxu3 %v7442_v34  ;;  %9754 = vst [vmem:[#allocation47_spill] sm:$0xff] %v7469_v62  ;;  %v7478_v34 = vor.u32 %v5634_v18, %v4520_v46  ;;  %v5839_v18 = vld [vmem:[%s9525_s3 + $0x710] sm:$0xf0] }
 0x26f   : > { %9756 = vst [vmem:[#allocation49_spill] sm:$0xff] %v7492_v22  ;;  %v5631_v46 = vld [vmem:[%s9525_s3 + $0x94] sm:$0xf]  ;;  %v7503_v62 = vor.u32 %v5839_v18, %v5334_v47  ;;  %v4496_v47 = vld [vmem:[%s9525_s3 + $0x84] sm:$0xf0] }
 0x270   : > { %9755 = vst [vmem:[#allocation48_spill] sm:$0xff] %v7478_v34  ;;  %3060 = vmatpush.bf16.msrb.mxu2 %v7478_v34  ;;  %v7505_v54 = vor.u32 %v5631_v46, %v4508_v57  ;;  %v7516_v34 = vor.u32 %v5836_v41, %v5322_v50  ;;  %v5628_v57 = vld [vmem:[%s9525_s3 + $0x7c] sm:$0xf]  ;;  %v5310_v46 = vld [vmem:[%s9525_s3 + $0x6d8] sm:$0xf] }
 0x271   : > { %9757 = vst [vmem:[#allocation50_spill] sm:$0xff] %v7503_v62  ;;  %3041 = vmatpush.bf16.msrb.mxu0 %v7492_v22  ;;  %3051 = vmatpush.bf16.msrb.mxu1 %v7503_v62  ;;  %v7524_v18 = vor.u32 %v5628_v57, %v4496_v47  ;;  %v5833_v50 = vld [vmem:[%s9525_s3 + $0x6e0] sm:$0xf0]  ;;  %v4484_v57 = vld [vmem:[%s9525_s3 + $0x6c] sm:$0xf0] }
 0x272   : > { %9758 = vst [vmem:[#allocation51_spill] sm:$0xff] %v7505_v54  ;;  %v7534_v41 = vor.u32 %v5833_v50, %v5310_v46  ;;  %v5830_v46 = vld [vmem:[%s9525_s3 + $0x6c8] sm:$0xf0]  ;;  %v5655_v22 = vld [vmem:[%s9525_s3 + $0x154] sm:$0xf] }
 0x273   : > { %9759 = vst [vmem:[#allocation52_spill] sm:$0xff] %v7516_v34 }
 0x274   : > { %3061 = vmatpush.bf16.msrb.mxu2 %v7505_v54  ;;  %9760 = vst [vmem:[#allocation53_spill] sm:$0xff] %v7524_v18  ;;  %v5625_v54 = vld [vmem:[%s9525_s3 + $0x64] sm:$0xf] }
 0x275   : > { %3052 = vmatpush.bf16.msrb.mxu1 %v7516_v34  ;;  %9761 = vst [vmem:[#allocation54_spill] sm:$0xff] %v7534_v41  ;;  %v7542_v47 = vor.u32 %v5625_v54, %v4484_v57  ;;  %v5298_v34 = vld [vmem:[%s9525_s3 + $0x6c0] sm:$0xf]  ;;  %v4472_v54 = vld [vmem:[%s9525_s3 + $0x54] sm:$0xf0] }
 0x276   : > { %v7552_v50 = vor.u32 %v5830_v46, %v5298_v34  ;;  %v4460_v34 = vld [vmem:[%s9525_s3 + $0x3c] sm:$0xf0] }
 0x277   : > { %9762 = vst [vmem:[#allocation55_spill] sm:$0xff] %v7542_v47 }
 0x278   : > { %3062 = vmatpush.bf16.msrb.mxu2 %v7524_v18  ;;  %9763 = vst [vmem:[#allocation56_spill] sm:$0xff] %v7552_v50  ;;  %v5622_v18 = vld [vmem:[%s9525_s3 + $0x4c] sm:$0xf] }
 0x279   : > { %3053 = vmatpush.bf16.msrb.mxu1 %v7534_v41  ;;  %v7560_v57 = vor.u32 %v5622_v18, %v4472_v54  ;;  %v5616_v18 = vld [vmem:[%s9525_s3 + $0x1c] sm:$0xf]  ;;  %v4448_v54 = vld [vmem:[%s9525_s3 + $0x24] sm:$0xf0] }
 0x27b   : > { %9764 = vst [vmem:[#allocation57_spill] sm:$0xff] %v7560_v57 }
 0x27c   : > { %3063 = vmatpush.bf16.msrb.mxu2 %v7542_v47  ;;  %v5619_v47 = vld [vmem:[%s9525_s3 + $0x34] sm:$0xf] }
 0x27d   : > { %3054 = vmatpush.bf16.msrb.mxu1 %v7552_v50  ;;  %v7570_v46 = vor.u32 %v5619_v47, %v4460_v34  ;;  %v5658_v50 = vld [vmem:[%s9525_s3 + $0x16c] sm:$0xf]  ;;  %v4616_v47 = vld [vmem:[%s9525_s3 + $0x174] sm:$0xf0] }
 0x27f   : > { %9765 = vst [vmem:[#allocation58_spill] sm:$0xff] %v7570_v46 }
 0x280   : > { %3064 = vmatpush.bf16.msrb.mxu2 %v7560_v57  ;;  %v7579_v57 = vor.u32 %v5616_v18, %v4448_v54  ;;  %v4436_v18 = vld [vmem:[%s9525_s3 + $0xc] sm:$0xf0]  ;;  %v7596_v54 = vor.u32 %v5658_v50, %v4616_v47  ;;  %v5706_v50 = vld [vmem:[%s9525_s3 + $0x2ec] sm:$0xf] }
 0x282   : > { %9766 = vst [vmem:[#allocation59_spill] sm:$0xff] %v7579_v57 }
 0x283   : > { %9767 = vst [vmem:[#allocation60_spill] sm:$0xff] %v7596_v54 }
 0x284   : > { %3065 = vmatpush.bf16.msrb.mxu2 %v7570_v46  ;;  %v5613_v46 = vld [vmem:[%s9525_s3 + $0x4] sm:$0xf] }
 0x285   : > { %v7598_v41 = vor.u32 %v5613_v46, %v4436_v18  ;;  %v4808_v46 = vld [vmem:[%s9525_s3 + $0x2f4] sm:$0xf0]  ;;  %v4592_v18 = vld [vmem:[%s9525_s3 + $0x144] sm:$0xf0] }
 0x286   : > { %v7627_v23 = vor.u32 %v5706_v50, %v4808_v46  ;;  %v5649_v50 = vld [vmem:[%s9525_s3 + $0x124] sm:$0xf]  ;;  %v4580_v46 = vld [vmem:[%s9525_s3 + $0x12c] sm:$0xf0] }
 0x287   : > { %9768 = vst [vmem:[#allocation61_spill] sm:$0xff] %v7598_v41 }
 0x288   : > { %3066 = vmatpush.bf16.msrb.mxu2 %v7579_v57  ;;  %v4604_v57 = vld [vmem:[%s9525_s3 + $0x15c] sm:$0xf0]  ;;  %9770 = vst [vmem:[#allocation63_spill] sm:$0xff] %v7627_v23 }
 0x289   : > { %v7619_v47 = vor.u32 %v5655_v22, %v4604_v57  ;;  %v4796_v22 = vld [vmem:[%s9525_s3 + $0x2dc] sm:$0xf0] }
 0x28a   : > { %v7587_v34 = vpop.permute.xlu2 %1594 }
 0x28b   : > { %9769 = vst [vmem:[#allocation62_spill] sm:$0xff] %v7619_v47 }
 0x28c   : > { %v1551_v62 = vpop.permute.xlu0 %1550  ;;  %3067 = vmatpush.bf16.msrb.mxu2 %v7598_v41 }
 0x28d   : > { %v7608_v4 = vsel %vm1558_vm5, %v6997_v19, %v1551_v62  ;;  %v5652_v19 = vld [vmem:[%s9525_s3 + $0x13c] sm:$0xf] }
 0x28e   : > { %2977 = vmatmul.bf16.vlgmr.msrb.gmra.mxu3 %v7608_v4  ;;  %v7639_v41 = vor.u32 %v5652_v19, %v4592_v18  ;;  %v4784_v19 = vld [vmem:[%s9525_s3 + $0x2c4] sm:$0xf0]  ;;  %v7658_v18 = vor.u32 %v5649_v50, %v4580_v46  ;;  %v4712_v50 = vld [vmem:[%s9525_s3 + $0x234] sm:$0xf0]  ;;  %v5697_v46 = vld [vmem:[%s9525_s3 + $0x2a4] sm:$0xf] }
 0x28f   : > { %3073 = vmatpush.bf16.msrb.mxu3 %v7596_v54  ;;  %v7649_v54 = vor.u32 %v5703_v24, %v4796_v22  ;;  %v4568_v24 = vld [vmem:[%s9525_s3 + $0x114] sm:$0xf0] }
 0x290   : > { %9771 = vst [vmem:[#allocation64_spill] sm:$0xff] %v7639_v41 }
 0x291   : > { %9772 = vst [vmem:[#allocation65_spill] sm:$0xff] %v7649_v54 }
 0x292   : > { %v1553_v5 = vpop.permute.xlu2 %1552  ;;  %9773 = vst [vmem:[#allocation66_spill] sm:$0xff] %v7658_v18 }
 0x293   : > { %3074 = vmatpush.bf16.msrb.mxu3 %v7619_v47  ;;  %v7637_v57 = vsel %vm1558_vm5, %v1551_v62, %v1553_v5  ;;  %v5700_v62 = vld [vmem:[%s9525_s3 + $0x2bc] sm:$0xf]  ;;  %v5646_v47 = vld [vmem:[%s9525_s3 + $0x10c] sm:$0xf] }
 0x294   : > { %2990 = vmatmul.bf16.vlgmr.msra.gmra.mxu0 %v7637_v57  ;;  %v7667_v22 = vor.u32 %v5700_v62, %v4784_v19  ;;  %v7682_v62 = vor.u32 %v5646_v47, %v4568_v24  ;;  %v5679_v47 = vld [vmem:[%s9525_s3 + $0x214] sm:$0xf] }
 0x295   : > { %3099 = vmatpush.bf16.msra.mxu0 %v7627_v23  ;;  %v5682_v23 = vld [vmem:[%s9525_s3 + $0x22c] sm:$0xf] }
 0x296   : > { %9774 = vst [vmem:[#allocation67_spill] sm:$0xff] %v7667_v22  ;;  %v7684_v19 = vor.u32 %v5682_v23, %v4712_v50  ;;  %v4700_v23 = vld [vmem:[%s9525_s3 + $0x21c] sm:$0xf0]  ;;  %v5694_v50 = vld [vmem:[%s9525_s3 + $0x28c] sm:$0xf] }
 0x297   : > { %3075 = vmatpush.bf16.msrb.mxu3 %v7639_v41  ;;  %v4772_v41 = vld [vmem:[%s9525_s3 + $0x2ac] sm:$0xf0]  ;;  %9775 = vst [vmem:[#allocation68_spill] sm:$0xff] %v7682_v62 }
 0x298   : > { %9776 = vst [vmem:[#allocation69_spill] sm:$0xff] %v7684_v19  ;;  %v7695_v21 = vor.u32 %v5697_v46, %v4772_v41  ;;  %v4760_v41 = vld [vmem:[%s9525_s3 + $0x294] sm:$0xf0] }
 0x299   : > { %3100 = vmatpush.bf16.msra.mxu0 %v7649_v54  ;;  %v5643_v54 = vld [vmem:[%s9525_s3 + $0xf4] sm:$0xf] }
 0x29a   : > { %9777 = vst [vmem:[#allocation70_spill] sm:$0xff] %v7695_v21  ;;  %v7715_v46 = vor.u32 %v5643_v54, %v4556_v56  ;;  %v5676_v56 = vld [vmem:[%s9525_s3 + $0x1fc] sm:$0xf]  ;;  %v4688_v54 = vld [vmem:[%s9525_s3 + $0x204] sm:$0xf0] }
 0x29b   : > { %3076 = vmatpush.bf16.msrb.mxu3 %v7658_v18  ;;  %v7718_v18 = vor.u32 %v5679_v47, %v4700_v23  ;;  %v5691_v47 = vld [vmem:[%s9525_s3 + $0x274] sm:$0xf]  ;;  %v4748_v23 = vld [vmem:[%s9525_s3 + $0x27c] sm:$0xf0] }
 0x29c   : > { %9778 = vst [vmem:[#allocation71_spill] sm:$0xff] %v7715_v46 }
 0x29d   : > { %3101 = vmatpush.bf16.msra.mxu0 %v7667_v22  ;;  %v7693_v1 = vpop.permute.xlu0 %1554  ;;  %9779 = vst [vmem:[#allocation72_spill] sm:$0xff] %v7718_v18  ;;  %v4544_v22 = vld [vmem:[%s9525_s3 + $0xe4] sm:$0xf0] }
 0x29e   : > { %v7705_v24 = vsel %vm1558_vm5, %v1553_v5, %v7693_v1  ;;  %v5640_v5 = vld [vmem:[%s9525_s3 + $0xdc] sm:$0xf] }
 0x29f   : > { %3077 = vmatpush.bf16.msrb.mxu3 %v7682_v62  ;;  %3003 = vmatmul.bf16.vlgmr.msra.gmra.mxu1 %v7705_v24  ;;  %v7727_v62 = vor.u32 %v5694_v50, %v4760_v41  ;;  %v7742_v50 = vor.u32 %v5640_v5, %v4544_v22  ;;  %v7759_v22 = vor.u32 %v5691_v47, %v4748_v23  ;;  %v5754_v5 = vld [vmem:[%s9525_s3 + $0x46c] sm:$0xf]  ;;  %v5688_v47 = vld [vmem:[%s9525_s3 + $0x25c] sm:$0xf]  ;;  %v4736_v23 = vld [vmem:[%s9525_s3 + $0x264] sm:$0xf0] }
 0x2a0   : > { %3086 = vmatpush.bf16.msra.mxu1 %v7684_v19  ;;  %v7796_v11 = vor.u32 %v5688_v47, %v4736_v23 }
 0x2a1   : > { %3102 = vmatpush.bf16.msra.mxu0 %v7695_v21  ;;  %9780 = vst [vmem:[#allocation73_spill] sm:$0xff] %v7727_v62  ;;  %v7749_v21 = vor.u32 %v5676_v56, %v4688_v54  ;;  %v5000_v56 = vld [vmem:[%s9525_s3 + $0x474] sm:$0xf0]  ;;  %v5673_v54 = vld [vmem:[%s9525_s3 + $0x1e4] sm:$0xf] }
 0x2a2   : > { %v1593_v19 = vpop.permute.xlu1 %1592  ;;  %9781 = vst [vmem:[#allocation74_spill] sm:$0xff] %v7742_v50  ;;  %v7785_v63 = vor.u32 %v5754_v5, %v5000_v56  ;;  %v5685_v56 = vld [vmem:[%s9525_s3 + $0x244] sm:$0xf] }
 0x2a3   : > { %3078 = vmatpush.bf16.msrb.mxu3 %v7715_v46  ;;  %v7746_v41 = vsel %vm1600_vm6, %v1593_v19, %v7587_v34  ;;  %9782 = vst [vmem:[#allocation75_spill] sm:$0xff] %v7749_v21  ;;  %v4676_v46 = vld [vmem:[%s9525_s3 + $0x1ec] sm:$0xf0] }
 0x2a4   : > { %3087 = vmatpush.bf16.msra.mxu1 %v7718_v18  ;;  %3029 = vmatmul.bf16.vlgmr.msra.gmra.mxu3 %v7746_v41  ;;  %9783 = vst [vmem:[#allocation76_spill] sm:$0xff] %v7759_v22 }
 0x2a5   : > { %3103 = vmatpush.bf16.msra.mxu0 %v7727_v62  ;;  %9785 = vst [vmem:[#allocation78_spill] sm:$0xff] %v7785_v63 }
 0x2a6   : > { %9787 = vst [vmem:[#allocation80_spill] sm:$0xff] %v7796_v11 }
 0x2a7   : > { %3079 = vmatpush.bf16.msrb.mxu3 %v7742_v50  ;;  %v2939_v18 = vpop.f32.mrf.mxu0  ;;  %v2952_v62 = vpop.f32.mrf.mxu1  ;;  %v7794_v50 = vor.u32 %v5673_v54, %v4676_v46  ;;  %v4664_v46 = vld [vmem:[%s9525_s3 + $0x1d4] sm:$0xf0]  ;;  %v4724_v54 = vld [vmem:[%s9525_s3 + $0x24c] sm:$0xf0] }
 0x2a8   : > { %v7782_v7 = vadd.f32 %v2952_v62, %v2939_v18  ;;  %3088 = vmatpush.bf16.msra.mxu1 %v7749_v21  ;;  %v4988_v18 = vld [vmem:[%s9525_s3 + $0x45c] sm:$0xf0]  ;;  %v5670_v62 = vld [vmem:[%s9525_s3 + $0x1cc] sm:$0xf]  ;;  %v7821_v21 = vor.u32 %v5730_v27, %v4904_v16  ;;  %v5727_v27 = vld [vmem:[%s9525_s3 + $0x394] sm:$0xf] }
 0x2a9   : > { %3104 = vmatpush.bf16.msra.mxu0 %v7759_v22  ;;  %9786 = vst [vmem:[#allocation79_spill] sm:$0xff] %v7794_v50  ;;  %v5802_v22 = vld [vmem:[%s9525_s3 + $0x5ec] sm:$0xf]  ;;  %v4892_v16 = vld [vmem:[%s9525_s3 + $0x39c] sm:$0xf0] }
 0x2aa   : > { %v1597_v5 = vpop.permute.xlu0 %1596  ;;  %9788 = vst [vmem:[#allocation81_spill] sm:$0xff] %v7821_v21 }
 0x2ab   : > { %3080 = vmatpush.bf16.msrb.mxu3 %v7780_v39  ;;  %v1557_v47 = vpop.permute.xlu1 %1556  ;;  %v7819_v23 = vsel %vm1600_vm6, %v7587_v34, %v1597_v5  ;;  %v7833_v39 = vor.u32 %v5751_v55, %v4988_v18  ;;  %v7846_v34 = vor.u32 %v5670_v62, %v4664_v46  ;;  %v5748_v55 = vld [vmem:[%s9525_s3 + $0x43c] sm:$0xf]  ;;  %v4976_v18 = vld [vmem:[%s9525_s3 + $0x444] sm:$0xf0]  ;;  %v7863_v46 = vor.u32 %v5727_v27, %v4892_v16 }
 0x2ac   : > { %v1561_v26 = vsel %vm1558_vm5, %v7693_v1, %v1557_v47  ;;  %3042 = vmatmul.bf16.vlgmr.msrb.gmra.mxu0 %v7819_v23  ;;  %3089 = vmatpush.bf16.msra.mxu1 %v7794_v50  ;;  %v7848_v47 = vor.u32 %v5685_v56, %v4724_v54  ;;  %v4652_v56 = vld [vmem:[%s9525_s3 + $0x1bc] sm:$0xf0]  ;;  %v5799_v54 = vld [vmem:[%s9525_s3 + $0x5d4] sm:$0xf]  ;;  %v5724_v27 = vld [vmem:[%s9525_s3 + $0x37c] sm:$0xf] }
 0x2ad   : > { %9789 = vst [vmem:[#allocation82_spill] sm:$0xff] %v7833_v39  ;;  %3105 = vmatpush.bf16.msra.mxu0 %v7796_v11  ;;  %v7844_v1 = vsel %vm1600_vm6, %v1561_v26, %v1593_v19  ;;  %v5667_v26 = vld [vmem:[%s9525_s3 + $0x1b4] sm:$0xf]  ;;  %v4880_v16 = vld [vmem:[%s9525_s3 + $0x384] sm:$0xf0] }
 0x2ae   : > { %9790 = vst [vmem:[#allocation83_spill] sm:$0xff] %v7846_v34  ;;  %3016 = vmatmul.bf16.vlgmr.msra.gmra.mxu2 %v7844_v1  ;;  %v4640_v50 = vld [vmem:[%s9525_s3 + $0x1a4] sm:$0xf0]  ;;  %v4844_v11 = vld [vmem:[%s9525_s3 + $0x33c] sm:$0xf0] }
 0x2af   : > { %3125 = vmatpush.bf16.msra.mxu3 %v7785_v63  ;;  %9791 = vst [vmem:[#allocation84_spill] sm:$0xff] %v7848_v47  ;;  %v7857_v63 = vor.u32 %v5802_v22, %v5192_v3  ;;  %3112 = vmatpush.bf16.msra.mxu2 %v7821_v21  ;;  %v2941_v19 = vpop.f32.mrf.mxu0  ;;  %v2954_v62 = vpop.f32.mrf.mxu1  ;;  %v5180_v3 = vld [vmem:[%s9525_s3 + $0x5dc] sm:$0xf0]  ;;  %v7875_v22 = vor.u32 %v5748_v55, %v4976_v18  ;;  %v4964_v55 = vld [vmem:[%s9525_s3 + $0x42c] sm:$0xf0] }
 0x2b0   : > { %9793 = vst [vmem:[#allocation86_spill] sm:$0xff] %v7863_v46  ;;  %3090 = vmatpush.bf16.msra.mxu1 %v7846_v34  ;;  %v5745_v19 = vld [vmem:[%s9525_s3 + $0x424] sm:$0xf]  ;;  %v7892_v18 = vor.u32 %v5667_v26, %v4652_v56  ;;  %v7894_v62 = vor.u32 %v5799_v54, %v5180_v3  ;;  %v7900_v34 = vor.u32 %v5724_v27, %v4880_v16  ;;  %v5796_v26 = vld [vmem:[%s9525_s3 + $0x5bc] sm:$0xf] }
 0x2b1   : > { %9792 = vst [vmem:[#allocation85_spill] sm:$0xff] %v7857_v63  ;;  %3106 = vmatpush.bf16.msra.mxu0 %v7848_v47  ;;  %v5168_v56 = vld [vmem:[%s9525_s3 + $0x5c4] sm:$0xf0]  ;;  %v7915_v3 = vor.u32 %v5745_v19, %v4964_v55  ;;  %v5721_v27 = vld [vmem:[%s9525_s3 + $0x364] sm:$0xf] }
 0x2b2   : > { %9794 = vst [vmem:[#allocation87_spill] sm:$0xff] %v7875_v22  ;;  %v4868_v16 = vld [vmem:[%s9525_s3 + $0x36c] sm:$0xf0] }
 0x2b3   : > { %3126 = vmatpush.bf16.msra.mxu3 %v7833_v39  ;;  %9795 = vst [vmem:[#allocation88_spill] sm:$0xff] %v7892_v18  ;;  %v5664_v39 = vld [vmem:[%s9525_s3 + $0x19c] sm:$0xf]  ;;  %3113 = vmatpush.bf16.msra.mxu2 %v7863_v46  ;;  %v1599_v21 = vpop.permute.xlu1 %1598  ;;  %v7945_v47 = vor.u32 %v5721_v27, %v4868_v16  ;;  %v5156_v27 = vld [vmem:[%s9525_s3 + $0x5ac] sm:$0xf0] }
 0x2b4   : > { %9796 = vst [vmem:[#allocation89_spill] sm:$0xff] %v7894_v62  ;;  %v7912_v54 = vsel %vm1600_vm6, %v1597_v5, %v1599_v21  ;;  %3081 = vmatmul.bf16.vlgmr.msrb.gmra.mxu3 %v6975_v12  ;;  %v5742_v21 = vld [vmem:[%s9525_s3 + $0x40c] sm:$0xf]  ;;  %v4952_v5 = vld [vmem:[%s9525_s3 + $0x414] sm:$0xf0]  ;;  %3091 = vmatpush.bf16.msra.mxu1 %v7892_v18  ;;  %v7937_v55 = vor.u32 %v5664_v39, %v4640_v50 }
 0x2b5   : > { %3151 = vmatpush.bf16.msrb.mxu0 %v7857_v63  ;;  %9797 = vst [vmem:[#allocation90_spill] sm:$0xff] %v7900_v34  ;;  %5368 = vmatmul.msk.bf16.vlgmr.msrb.gmra.mxu1 %vm1130_vm4, %v7912_v54  ;;  %v2965_v46 = vpop.f32.mrf.mxu2  ;;  %v5661_v63 = vld [vmem:[%s9525_s3 + $0x184] sm:$0xf]  ;;  %v4628_v18 = vld [vmem:[%s9525_s3 + $0x18c] sm:$0xf0]  ;;  %v7957_v50 = vor.u32 %v5742_v21, %v4952_v5 }
 0x2b6   : > { %9798 = vst [vmem:[#allocation91_spill] sm:$0xff] %v7915_v3  ;;  %v7934_v19 = vadd.f32 %v2965_v46, %v7782_v7  ;;  %v5718_v7 = vld [vmem:[%s9525_s3 + $0x34c] sm:$0xf]  ;;  %v4856_v39 = vld [vmem:[%s9525_s3 + $0x354] sm:$0xf0]  ;;  %v7979_v5 = vor.u32 %v5661_v63, %v4628_v18 }
 0x2b7   : > { %3127 = vmatpush.bf16.msra.mxu3 %v7875_v22  ;;  %9799 = vst [vmem:[#allocation92_spill] sm:$0xff] %v7937_v55  ;;  %v7939_v22 = vor.u32 %v5796_v26, %v5168_v56  ;;  %3114 = vmatpush.bf16.msra.mxu2 %v7900_v34  ;;  %v5778_v46 = vld [vmem:[%s9525_s3 + $0x52c] sm:$0xf]  ;;  %v5096_v26 = vld [vmem:[%s9525_s3 + $0x534] sm:$0xf0] }
 0x2b8   : > { %9801 = vst [vmem:[#allocation94_spill] sm:$0xff] %v7945_v47  ;;  %v5793_v56 = vld [vmem:[%s9525_s3 + $0x5a4] sm:$0xf]  ;;  %v5739_v16 = vld [vmem:[%s9525_s3 + $0x3f4] sm:$0xf]  ;;  %3092 = vmatpush.bf16.msra.mxu1 %v7937_v55  ;;  %v7984_v34 = vor.u32 %v5778_v46, %v5096_v26 }
 0x2b9   : > { %3152 = vmatpush.bf16.msrb.mxu0 %v7894_v62  ;;  %9800 = vst [vmem:[#allocation93_spill] sm:$0xff] %v7939_v22  ;;  %v4940_v21 = vld [vmem:[%s9525_s3 + $0x3fc] sm:$0xf0]  ;;  %v5715_v62 = vld [vmem:[%s9525_s3 + $0x334] sm:$0xf]  ;;  %v7994_v63 = vor.u32 %v5793_v56, %v5156_v27 }
 0x2ba   : > { %9802 = vst [vmem:[#allocation95_spill] sm:$0xff] %v7957_v50  ;;  %v7996_v18 = vor.u32 %v5739_v16, %v4940_v21  ;;  %v5790_v46 = vld [vmem:[%s9525_s3 + $0x58c] sm:$0xf]  ;;  %v5144_v56 = vld [vmem:[%s9525_s3 + $0x594] sm:$0xf0]  ;;  %v8020_v21 = vor.u32 %v5715_v62, %v4844_v11 }
 0x2bb   : > { %3128 = vmatpush.bf16.msra.mxu3 %v7915_v3  ;;  %9803 = vst [vmem:[#allocation96_spill] sm:$0xff] %v7979_v5  ;;  %3115 = vmatpush.bf16.msra.mxu2 %v7945_v47  ;;  %v7982_v3 = vor.u32 %v5718_v7, %v4856_v39  ;;  %v5775_v7 = vld [vmem:[%s9525_s3 + $0x514] sm:$0xf]  ;;  %v5084_v39 = vld [vmem:[%s9525_s3 + $0x51c] sm:$0xf0] }
 0x2bc   : > { %9805 = vst [vmem:[#allocation98_spill] sm:$0xff] %v7984_v34  ;;  %3107 = vmatmul.bf16.vlgmr.msra.gmra.mxu0 %v7608_v4  ;;  %v5736_v27 = vld [vmem:[%s9525_s3 + $0x3dc] sm:$0xf]  ;;  %v4928_v16 = vld [vmem:[%s9525_s3 + $0x3e4] sm:$0xf0]  ;;  %3093 = vmatpush.bf16.msra.mxu1 %v7979_v5  ;;  %v8032_v5 = vor.u32 %v5790_v46, %v5144_v56 }
 0x2bd   : > { %3153 = vmatpush.bf16.msrb.mxu0 %v7939_v22  ;;  %9804 = vst [vmem:[#allocation97_spill] sm:$0xff] %v7982_v3  ;;  %v2967_v26 = vpop.f32.mrf.mxu2  ;;  %v4832_v47 = vld [vmem:[%s9525_s3 + $0x324] sm:$0xf0]  ;;  %v5772_v11 = vld [vmem:[%s9525_s3 + $0x4fc] sm:$0xf] }
 0x2be   : > { %9806 = vst [vmem:[#allocation99_spill] sm:$0xff] %v7994_v63  ;;  %3068 = vmatmul.bf16.vlgmr.msrb.gmra.mxu2 %v6973_v53  ;;  %v8022_v26 = vor.u32 %v5775_v7, %v5084_v39  ;;  %v5072_v62 = vld [vmem:[%s9525_s3 + $0x504] sm:$0xf0]  ;;  %v5787_v7 = vld [vmem:[%s9525_s3 + $0x574] sm:$0xf] }
 0x2bf   : > { %3129 = vmatpush.bf16.msra.mxu3 %v7957_v50  ;;  %9807 = vst [vmem:[#allocation100_spill] sm:$0xff] %v7996_v18  ;;  %3116 = vmatpush.bf16.msra.mxu2 %v7982_v3  ;;  %v5712_v50 = vld [vmem:[%s9525_s3 + $0x31c] sm:$0xf]  ;;  %v8034_v3 = vor.u32 %v5736_v27, %v4928_v16  ;;  %v5132_v39 = vld [vmem:[%s9525_s3 + $0x57c] sm:$0xf0] }
 0x2c0   : > { %3138 = vmatpush.bf16.msrb.mxu1 %v7984_v34  ;;  %9808 = vst [vmem:[#allocation101_spill] sm:$0xff] %v8020_v21  ;;  %v5733_v46 = vld [vmem:[%s9525_s3 + $0x3c4] sm:$0xf]  ;;  %v4916_v56 = vld [vmem:[%s9525_s3 + $0x3cc] sm:$0xf0]  ;;  %v8064_v34 = vor.u32 %v5772_v11, %v5072_v62  ;;  %v8071_v55 = vor.u32 %v5787_v7, %v5132_v39 }
 0x2c1   : > { %9809 = vst [vmem:[#allocation102_spill] sm:$0xff] %v8022_v26  ;;  %3154 = vmatpush.bf16.msrb.mxu0 %v7994_v63  ;;  %v5844_v27 = vld [vmem:[%s9525_s3 + $0x73c] sm:$0xf]  ;;  %v5360_v16 = vld [vmem:[%s9525_s3 + $0x744] sm:$0xf0]  ;;  %v8073_v22 = vor.u32 %v5733_v46, %v4916_v56 }
 0x2c2   : > { %9810 = vst [vmem:[#allocation103_spill] sm:$0xff] %v8032_v5  ;;  %v5709_v63 = vld [vmem:[%s9525_s3 + $0x304] sm:$0xf]  ;;  %v8085_v11 = vor.u32 %v5844_v27, %v5360_v16  ;;  %v5784_v62 = vld [vmem:[%s9525_s3 + $0x55c] sm:$0xf] }
 0x2c3   : > { %3130 = vmatpush.bf16.msra.mxu3 %v7996_v18  ;;  %9811 = vst [vmem:[#allocation104_spill] sm:$0xff] %v8034_v3  ;;  %3117 = vmatpush.bf16.msra.mxu2 %v8020_v21  ;;  %v8062_v18 = vor.u32 %v5712_v50, %v4832_v47  ;;  %v4820_v21 = vld [vmem:[%s9525_s3 + $0x30c] sm:$0xf0]  ;;  %v5769_v47 = vld [vmem:[%s9525_s3 + $0x4e4] sm:$0xf] }
 0x2c4   : > { %3139 = vmatpush.bf16.msrb.mxu1 %v8022_v26  ;;  %9813 = vst [vmem:[#allocation106_spill] sm:$0xff] %v8064_v34  ;;  %v5060_v50 = vld [vmem:[%s9525_s3 + $0x4ec] sm:$0xf0]  ;;  %v5120_v7 = vld [vmem:[%s9525_s3 + $0x564] sm:$0xf0]  ;;  %v8107_v16 = vor.u32 %v5709_v63, %v4820_v21 }
 0x2c5   : > { %9812 = vst [vmem:[#allocation105_spill] sm:$0xff] %v8062_v18  ;;  %3155 = vmatpush.bf16.msrb.mxu0 %v8032_v5  ;;  %3094 = vmatmul.bf16.vlgmr.msra.gmra.mxu1 %v6991_v29  ;;  %v5826_v39 = vld [vmem:[%s9525_s3 + $0x6ac] sm:$0xf]  ;;  %v5288_v46 = vld [vmem:[%s9525_s3 + $0x6b4] sm:$0xf0]  ;;  %v8113_v26 = vor.u32 %v5784_v62, %v5120_v7 }
 0x2c6   : > { %9814 = vst [vmem:[#allocation107_spill] sm:$0xff] %v8073_v22  ;;  %v5841_v56 = vld [vmem:[%s9525_s3 + $0x724] sm:$0xf]  ;;  %v5348_v27 = vld [vmem:[%s9525_s3 + $0x72c] sm:$0xf0]  ;;  %v8122_v63 = vor.u32 %v5826_v39, %v5288_v46 }
 0x2c7   : > { %3131 = vmatpush.bf16.msra.mxu3 %v8034_v3  ;;  %9815 = vst [vmem:[#allocation108_spill] sm:$0xff] %v8085_v11  ;;  %3118 = vmatpush.bf16.msra.mxu2 %v8062_v18  ;;  %v8109_v3 = vor.u32 %v5769_v47, %v5060_v50  ;;  %v5766_v5 = vld [vmem:[%s9525_s3 + $0x4cc] sm:$0xf]  ;;  %v5048_v18 = vld [vmem:[%s9525_s3 + $0x4d4] sm:$0xf0]  ;;  %v8124_v21 = vor.u32 %v5841_v56, %v5348_v27 }
 0x2c8   : > { %3140 = vmatpush.bf16.msrb.mxu1 %v8064_v34  ;;  %9816 = vst [vmem:[#allocation109_spill] sm:$0xff] %v8107_v16  ;;  %v5781_v47 = vld [vmem:[%s9525_s3 + $0x544] sm:$0xf]  ;;  %v5108_v50 = vld [vmem:[%s9525_s3 + $0x54c] sm:$0xf0]  ;;  %v8146_v56 = vor.u32 %v5766_v5, %v5048_v18 }
 0x2c9   : > { %9817 = vst [vmem:[#allocation110_spill] sm:$0xff] %v8109_v3  ;;  %3156 = vmatpush.bf16.msrb.mxu0 %v8071_v55  ;;  %v5823_v62 = vld [vmem:[%s9525_s3 + $0x694] sm:$0xf]  ;;  %v5276_v7 = vld [vmem:[%s9525_s3 + $0x69c] sm:$0xf0] }
 0x2ca   : > { %9818 = vst [vmem:[#allocation111_spill] sm:$0xff] %v8113_v26  ;;  %v4718_v39 = vld [vmem:[%s9525_s3 + $0x230] sm:$0xf]  ;;  %v5684_v46 = vld [vmem:[%s9525_s3 + $0x238] sm:$0xf0]  ;;  %v8166_v18 = vor.u32 %v5823_v62, %v5276_v7 }
 0x2cb   : > { %3132 = vmatpush.bf16.msra.mxu3 %v8073_v22  ;;  %9819 = vst [vmem:[#allocation112_spill] sm:$0xff] %v8122_v63  ;;  %3119 = vmatpush.bf16.msra.mxu2 %v8107_v16  ;;  %v5838_v27 = vld [vmem:[%s9525_s3 + $0x70c] sm:$0xf]  ;;  %v8156_v22 = vor.u32 %v5781_v47, %v5108_v50  ;;  %v5763_v16 = vld [vmem:[%s9525_s3 + $0x4b4] sm:$0xf] }
 0x2cc   : > { %9820 = vst [vmem:[#allocation113_spill] sm:$0xff] %v8124_v21  ;;  %3141 = vmatpush.bf16.msrb.mxu1 %v8109_v3  ;;  %v5036_v5 = vld [vmem:[%s9525_s3 + $0x4bc] sm:$0xf0]  ;;  %v8168_v3 = vor.u32 %v5684_v46, %v4718_v39  ;;  %v5820_v47 = vld [vmem:[%s9525_s3 + $0x67c] sm:$0xf] }
 0x2cd   : > { %9821 = vst [vmem:[#allocation114_spill] sm:$0xff] %v8146_v56  ;;  %3157 = vmatpush.bf16.msrb.mxu0 %v8113_v26  ;;  %v5264_v34 = vld [vmem:[%s9525_s3 + $0x684] sm:$0xf0]  ;;  %v5681_v62 = vld [vmem:[%s9525_s3 + $0x220] sm:$0xf0]  ;;  %v8186_v7 = vor.u32 %v5763_v16, %v5036_v5 }
 0x2ce   : > { %3133 = vmatmul.bf16.vlgmr.msra.gmra.mxu3 %v7705_v24  ;;  %9822 = vst [vmem:[#allocation115_spill] sm:$0xff] %v8156_v22  ;;  %3120 = vmatmul.bf16.vlgmr.msra.gmra.mxu2 %v7637_v57  ;;  %v5324_v39 = vld [vmem:[%s9525_s3 + $0x6fc] sm:$0xf0]  ;;  %v5760_v46 = vld [vmem:[%s9525_s3 + $0x49c] sm:$0xf]  ;;  %v8203_v16 = vor.u32 %v5820_v47, %v5264_v34 }
 0x2cf   : > { %3179 = vmatpush.bf16.msrb.mxu3 %v8085_v11  ;;  %v5336_v11 = vld [vmem:[%s9525_s3 + $0x714] sm:$0xf0]  ;;  %3164 = vmatpush.bf16.msrb.mxu2 %v8122_v63  ;;  %9823 = vst [vmem:[#allocation116_spill] sm:$0xff] %v8166_v18  ;;  %v5817_v63 = vld [vmem:[%s9525_s3 + $0x664] sm:$0xf] }
 0x2d0   : > { %9824 = vst [vmem:[#allocation117_spill] sm:$0xff] %v8168_v3  ;;  %v8174_v50 = vor.u32 %v5838_v27, %v5336_v11  ;;  %3142 = vmatpush.bf16.msrb.mxu1 %v8146_v56  ;;  %v5835_v11 = vld [vmem:[%s9525_s3 + $0x6f4] sm:$0xf]  ;;  %v5024_v27 = vld [vmem:[%s9525_s3 + $0x4a4] sm:$0xf0] }
 0x2d1   : > { %9826 = vst [vmem:[#allocation119_spill] sm:$0xff] %v8186_v7  ;;  %3158 = vmatpush.bf16.msrb.mxu0 %v8156_v22  ;;  %v8211_v56 = vor.u32 %v5835_v11, %v5324_v39  ;;  %v5252_v22 = vld [vmem:[%s9525_s3 + $0x66c] sm:$0xf0]  ;;  %v5678_v34 = vld [vmem:[%s9525_s3 + $0x208] sm:$0xf0] }
 0x2d2   : > { %9825 = vst [vmem:[#allocation118_spill] sm:$0xff] %v8174_v50  ;;  %v5832_v47 = vld [vmem:[%s9525_s3 + $0x6dc] sm:$0xf]  ;;  %v5757_v11 = vld [vmem:[%s9525_s3 + $0x484] sm:$0xf] }
 0x2d3   : > { %3180 = vmatpush.bf16.msrb.mxu3 %v8124_v21  ;;  %v4706_v21 = vld [vmem:[%s9525_s3 + $0x218] sm:$0xf]  ;;  %3165 = vmatpush.bf16.msrb.mxu2 %v8166_v18  ;;  %9827 = vst [vmem:[#allocation120_spill] sm:$0xff] %v8203_v16  ;;  %v5012_v39 = vld [vmem:[%s9525_s3 + $0x48c] sm:$0xf0] }
 0x2d4   : > { %v8205_v5 = vor.u32 %v5681_v62, %v4706_v21  ;;  %9829 = vst [vmem:[#allocation122_spill] sm:$0xff] %v8211_v56  ;;  %3159 = vmatmul.bf16.vlgmr.msrb.gmra.mxu0 %v7746_v41  ;;  %3143 = vmatpush.bf16.msrb.mxu1 %v8186_v7  ;;  %v8224_v21 = vor.u32 %v5760_v46, %v5024_v27  ;;  %v5312_v62 = vld [vmem:[%s9525_s3 + $0x6e4] sm:$0xf0]  ;;  %v4526_v18 = vld [vmem:[%s9525_s3 + $0xb0] sm:$0xf] }
 0x2d5   : > { %3216 = vmatpush.bf16.msra.mxu0 %v8168_v3  ;;  %v4694_v3 = vld [vmem:[%s9525_s3 + $0x200] sm:$0xf]  ;;  %v8240_v46 = vor.u32 %v5817_v63, %v5252_v22  ;;  %v5636_v7 = vld [vmem:[%s9525_s3 + $0xb8] sm:$0xf0]  ;;  %v5240_v22 = vld [vmem:[%s9525_s3 + $0x654] sm:$0xf0] }
 0x2d6   : > { %9828 = vst [vmem:[#allocation121_spill] sm:$0xff] %v8205_v5  ;;  %v8242_v27 = vor.u32 %v5678_v34, %v4694_v3  ;;  %v4682_v3 = vld [vmem:[%s9525_s3 + $0x1e8] sm:$0xf]  ;;  %v5675_v63 = vld [vmem:[%s9525_s3 + $0x1f0] sm:$0xf0]  ;;  %v8266_v34 = vor.u32 %v5757_v11, %v5012_v39 }
 0x2d7   : > { %3181 = vmatpush.bf16.msrb.mxu3 %v8174_v50  ;;  %9830 = vst [vmem:[#allocation123_spill] sm:$0xff] %v8224_v21  ;;  %3166 = vmatpush.bf16.msrb.mxu2 %v8203_v16  ;;  %v5814_v50 = vld [vmem:[%s9525_s3 + $0x64c] sm:$0xf]  ;;  %v8254_v16 = vor.u32 %v5832_v47, %v5312_v62  ;;  %v5829_v47 = vld [vmem:[%s9525_s3 + $0x6c4] sm:$0xf]  ;;  %v8286_v39 = vor.u32 %v5675_v63, %v4682_v3 }
 0x2d8   : > { %9831 = vst [vmem:[#allocation124_spill] sm:$0xff] %v8240_v46  ;;  %3144 = vmatpush.bf16.msrb.mxu1 %v8224_v21  ;;  %v5300_v62 = vld [vmem:[%s9525_s3 + $0x6cc] sm:$0xf0]  ;;  %v5660_v21 = vld [vmem:[%s9525_s3 + $0x178] sm:$0xf0]  ;;  %v8284_v11 = vor.u32 %v5814_v50, %v5240_v22 }
 0x2d9   : > { %3217 = vmatpush.bf16.msra.mxu0 %v8205_v5  ;;  %9832 = vst [vmem:[#allocation125_spill] sm:$0xff] %v8242_v27  ;;  %v8274_v5 = vor.u32 %v5636_v7, %v4526_v18  ;;  %v5811_v18 = vld [vmem:[%s9525_s3 + $0x634] sm:$0xf]  ;;  %v4514_v7 = vld [vmem:[%s9525_s3 + $0x98] sm:$0xf] }
 0x2da   : > { %9833 = vst [vmem:[#allocation126_spill] sm:$0xff] %v8254_v16  ;;  %v5633_v26 = vld [vmem:[%s9525_s3 + $0xa0] sm:$0xf0]  ;;  %v5228_v50 = vld [vmem:[%s9525_s3 + $0x63c] sm:$0xf0] }
 0x2db   : > { %3182 = vmatpush.bf16.msrb.mxu3 %v8211_v56  ;;  %9834 = vst [vmem:[#allocation127_spill] sm:$0xff] %v8266_v34  ;;  %v4622_v56 = vld [vmem:[%s9525_s3 + $0x170] sm:$0xf]  ;;  %3167 = vmatpush.bf16.msrb.mxu2 %v8240_v46  ;;  %v8298_v46 = vor.u32 %v5829_v47, %v5300_v62  ;;  %v5672_v3 = vld [vmem:[%s9525_s3 + $0x1d8] sm:$0xf0]  ;;  %v8313_v47 = vor.u32 %v5633_v26, %v4514_v7 }
 0x2dc   : > { %9835 = vst [vmem:[#allocation128_spill] sm:$0xff] %v8274_v5  ;;  %v4670_v22 = vld [vmem:[%s9525_s3 + $0x1d0] sm:$0xf]  ;;  %3145 = vmatpush.bf16.msrb.mxu1 %v8266_v34  ;;  %v8310_v63 = vor.u32 %v5660_v21, %v4622_v56  ;;  %v4610_v62 = vld [vmem:[%s9525_s3 + $0x158] sm:$0xf] }
 0x2dd   : > { %3218 = vmatpush.bf16.msra.mxu0 %v8242_v27  ;;  %9836 = vst [vmem:[#allocation129_spill] sm:$0xff] %v8284_v11  ;;  %v5657_v27 = vld [vmem:[%s9525_s3 + $0x160] sm:$0xf0]  ;;  %v8325_v56 = vor.u32 %v5672_v3, %v4670_v22  ;;  %v5808_v26 = vld [vmem:[%s9525_s3 + $0x61c] sm:$0xf] }
 0x2de   : > { %9837 = vst [vmem:[#allocation130_spill] sm:$0xff] %v8286_v39  ;;  %v4502_v21 = vld [vmem:[%s9525_s3 + $0x80] sm:$0xf]  ;;  %v5630_v7 = vld [vmem:[%s9525_s3 + $0x88] sm:$0xf0]  ;;  %v8348_v3 = vor.u32 %v5657_v27, %v4610_v62 }
 0x2df   : > { %3183 = vmatpush.bf16.msrb.mxu3 %v8254_v16  ;;  %9838 = vst [vmem:[#allocation131_spill] sm:$0xff] %v8298_v46  ;;  %3168 = vmatpush.bf16.msrb.mxu2 %v8284_v11  ;;  %v8323_v16 = vor.u32 %v5811_v18, %v5228_v50  ;;  %v5216_v18 = vld [vmem:[%s9525_s3 + $0x624] sm:$0xf0]  ;;  %v4658_v50 = vld [vmem:[%s9525_s3 + $0x1b8] sm:$0xf] }
 0x2e0   : > { %9839 = vst [vmem:[#allocation132_spill] sm:$0xff] %v8310_v63  ;;  %3190 = vmatpush.bf16.msra.mxu1 %v8274_v5  ;;  %v5669_v22 = vld [vmem:[%s9525_s3 + $0x1c0] sm:$0xf0]  ;;  %v5654_v11 = vld [vmem:[%s9525_s3 + $0x148] sm:$0xf0]  ;;  %v8361_v5 = vor.u32 %v5808_v26, %v5216_v18 }
 0x2e1   : > { %9840 = vst [vmem:[#allocation133_spill] sm:$0xff] %v8313_v47  ;;  %3219 = vmatpush.bf16.msra.mxu0 %v8286_v39  ;;  %3146 = vmatmul.bf16.vlgmr.msrb.gmra.mxu1 %v7844_v1  ;;  %v8351_v39 = vor.u32 %v5630_v7, %v4502_v21  ;;  %v8363_v27 = vor.u32 %v5669_v22, %v4658_v50  ;;  %v5805_v62 = vld [vmem:[%s9525_s3 + $0x604] sm:$0xf]  ;;  %v4490_v21 = vld [vmem:[%s9525_s3 + $0x68] sm:$0xf] }
 0x2e2   : > { %9841 = vst [vmem:[#allocation134_spill] sm:$0xff] %v8323_v16  ;;  %v5627_v7 = vld [vmem:[%s9525_s3 + $0x70] sm:$0xf0]  ;;  %v5204_v26 = vld [vmem:[%s9525_s3 + $0x60c] sm:$0xf0] }
 0x2e3   : > { %9842 = vst [vmem:[#allocation135_spill] sm:$0xff] %v8325_v56  ;;  %3184 = vmatpush.bf16.msrb.mxu3 %v8298_v46  ;;  %v4598_v46 = vld [vmem:[%s9525_s3 + $0x140] sm:$0xf]  ;;  %3169 = vmatpush.bf16.msrb.mxu2 %v8323_v16  ;;  %v5666_v50 = vld [vmem:[%s9525_s3 + $0x1a8] sm:$0xf0] }
 0x2e4   : > { %9843 = vst [vmem:[#allocation136_spill] sm:$0xff] %v8348_v3  ;;  %3191 = vmatpush.bf16.msra.mxu1 %v8313_v47  ;;  %v4646_v18 = vld [vmem:[%s9525_s3 + $0x1a0] sm:$0xf]  ;;  %v8386_v22 = vor.u32 %v5654_v11, %v4598_v46  ;;  %v5708_v16 = vld [vmem:[%s9525_s3 + $0x2f8] sm:$0xf0]  ;;  %v8395_v47 = vor.u32 %v5627_v7, %v4490_v21  ;;  %v8405_v11 = vor.u32 %v5805_v62, %v5204_v26 }
 0x2e5   : > { %9844 = vst [vmem:[#allocation137_spill] sm:$0xff] %v8351_v39  ;;  %3220 = vmatpush.bf16.msra.mxu0 %v8325_v56  ;;  %v4814_v56 = vld [vmem:[%s9525_s3 + $0x2f0] sm:$0xf]  ;;  %v4586_v34 = vld [vmem:[%s9525_s3 + $0x128] sm:$0xf] }
 0x2e6   : > { %9845 = vst [vmem:[#allocation138_spill] sm:$0xff] %v8361_v5  ;;  %5369 = vmatmul.msk.bf16.vlgmr.msrb.gmra.mxu3 %vm1130_vm4, %v7912_v54  ;;  %v5651_v46 = vld [vmem:[%s9525_s3 + $0x130] sm:$0xf0]  ;;  %v4478_v21 = vld [vmem:[%s9525_s3 + $0x50] sm:$0xf] }
 0x2e7   : > { %3203 = vmatpush.bf16.msra.mxu3 %v8310_v63  ;;  %9846 = vst [vmem:[#allocation139_spill] sm:$0xff] %v8363_v27  ;;  %3170 = vmatpush.bf16.msrb.mxu2 %v8361_v5  ;;  %v5624_v7 = vld [vmem:[%s9525_s3 + $0x58] sm:$0xf0]  ;;  %v4634_v5 = vld [vmem:[%s9525_s3 + $0x188] sm:$0xf] }
 0x2e8   : > { %9847 = vst [vmem:[#allocation140_spill] sm:$0xff] %v8386_v22  ;;  %3192 = vmatpush.bf16.msra.mxu1 %v8351_v39  ;;  %v8415_v39 = vor.u32 %v5708_v16, %v4814_v56  ;;  %v5663_v62 = vld [vmem:[%s9525_s3 + $0x190] sm:$0xf0]  ;;  %v4802_v26 = vld [vmem:[%s9525_s3 + $0x2d8] sm:$0xf] }
 0x2e9   : > { %9848 = vst [vmem:[#allocation141_spill] sm:$0xff] %v8395_v47  ;;  %3221 = vmatpush.bf16.msra.mxu0 %v8363_v27  ;;  %v5705_v16 = vld [vmem:[%s9525_s3 + $0x2e0] sm:$0xf0]  ;;  %v5102_v56 = vld [vmem:[%s9525_s3 + $0x530] sm:$0xf]  ;;  %v8439_v27 = vor.u32 %v5624_v7, %v4478_v21 }
 0x2ea   : > { %9849 = vst [vmem:[#allocation142_spill] sm:$0xff] %v8405_v11  ;;  %v5621_v21 = vld [vmem:[%s9525_s3 + $0x40] sm:$0xf0]  ;;  %v8458_v7 = vor.u32 %v5705_v16, %v4802_v26 }
 0x2eb   : > { %3204 = vmatpush.bf16.msra.mxu3 %v8348_v3  ;;  %v8407_v3 = vor.u32 %v5666_v50, %v4646_v18  ;;  %9851 = vst [vmem:[#allocation144_spill] sm:$0xff] %v8415_v39  ;;  %v8427_v18 = vor.u32 %v5651_v46, %v4586_v34  ;;  %v5780_v50 = vld [vmem:[%s9525_s3 + $0x538] sm:$0xf0]  ;;  %v4574_v34 = vld [vmem:[%s9525_s3 + $0x110] sm:$0xf]  ;;  %3171 = vmatpush.bf16.msrb.mxu2 %v8405_v11 }
 0x2ec   : > { %3193 = vmatpush.bf16.msra.mxu1 %v8395_v47  ;;  %9852 = vst [vmem:[#allocation145_spill] sm:$0xff] %v8439_v27  ;;  %v5648_v46 = vld [vmem:[%s9525_s3 + $0x118] sm:$0xf0]  ;;  %v4466_v47 = vld [vmem:[%s9525_s3 + $0x38] sm:$0xf]  ;;  %v8460_v63 = vor.u32 %v5780_v50, %v5102_v56 }
 0x2ed   : > { %9850 = vst [vmem:[#allocation143_spill] sm:$0xff] %v8407_v3  ;;  %3222 = vmatpush.bf16.msra.mxu0 %v8407_v3  ;;  %v4790_v3 = vld [vmem:[%s9525_s3 + $0x2c0] sm:$0xf]  ;;  %v5777_v26 = vld [vmem:[%s9525_s3 + $0x520] sm:$0xf0]  ;;  %v8479_v16 = vor.u32 %v5621_v21, %v4466_v47 }
 0x2ee   : > { %9854 = vst [vmem:[#allocation147_spill] sm:$0xff] %v8458_v7  ;;  %3172 = vmatmul.bf16.vlgmr.msrb.gmra.mxu2 %v7819_v23  ;;  %v4562_v56 = vld [vmem:[%s9525_s3 + $0xf8] sm:$0xf]  ;;  %v5645_v50 = vld [vmem:[%s9525_s3 + $0x100] sm:$0xf0] }
 0x2ef   : > { %3205 = vmatpush.bf16.msra.mxu3 %v8386_v22  ;;  %v8449_v22 = vor.u32 %v5663_v62, %v4634_v5  ;;  %3229 = vmatpush.bf16.msra.mxu2 %v8415_v39  ;;  %9855 = vst [vmem:[#allocation148_spill] sm:$0xff] %v8460_v63  ;;  %v8466_v5 = vor.u32 %v5648_v46, %v4574_v34  ;;  %v5702_v62 = vld [vmem:[%s9525_s3 + $0x2c8] sm:$0xf0]  ;;  %v5090_v39 = vld [vmem:[%s9525_s3 + $0x518] sm:$0xf] }
 0x2f0   : > { %3194 = vmatpush.bf16.msra.mxu1 %v8439_v27  ;;  %9857 = vst [vmem:[#allocation150_spill] sm:$0xff] %v8479_v16  ;;  %v4454_v34 = vld [vmem:[%s9525_s3 + $0x20] sm:$0xf]  ;;  %v5618_v46 = vld [vmem:[%s9525_s3 + $0x28] sm:$0xf0]  ;;  %v8496_v47 = vor.u32 %v5702_v62, %v4790_v3  ;;  %v8498_v21 = vor.u32 %v5777_v26, %v5090_v39  ;;  %v8504_v11 = vor.u32 %v5645_v50, %v4562_v56 }
 0x2f1   : > { %9853 = vst [vmem:[#allocation146_spill] sm:$0xff] %v8449_v22  ;;  %3223 = vmatpush.bf16.msra.mxu0 %v8449_v22  ;;  %v4778_v22 = vld [vmem:[%s9525_s3 + $0x2a8] sm:$0xf]  ;;  %v5699_v27 = vld [vmem:[%s9525_s3 + $0x2b0] sm:$0xf0]  ;;  %v8517_v3 = vor.u32 %v5618_v46, %v4454_v34 }
 0x2f2   : > { %9856 = vst [vmem:[#allocation149_spill] sm:$0xff] %v8466_v5  ;;  %v5774_v39 = vld [vmem:[%s9525_s3 + $0x508] sm:$0xf0]  ;;  %v4550_v62 = vld [vmem:[%s9525_s3 + $0xe0] sm:$0xf]  ;;  %v8533_v50 = vor.u32 %v5699_v27, %v4778_v22 }
 0x2f3   : > { %3206 = vmatpush.bf16.msra.mxu3 %v8427_v18  ;;  %3230 = vmatpush.bf16.msra.mxu2 %v8458_v7  ;;  %9858 = vst [vmem:[#allocation151_spill] sm:$0xff] %v8496_v47  ;;  %v5642_v26 = vld [vmem:[%s9525_s3 + $0xe8] sm:$0xf0]  ;;  %v4442_v56 = vld [vmem:[%s9525_s3 + $0x8] sm:$0xf] }
 0x2f4   : > { %9859 = vst [vmem:[#allocation152_spill] sm:$0xff] %v8498_v21  ;;  %3224 = vmatmul.bf16.vlgmr.msra.gmra.mxu0 %v6991_v29  ;;  %3195 = vmatpush.bf16.msra.mxu1 %v8479_v16  ;;  %v5615_v29 = vld [vmem:[%s9525_s3 + $0x10] sm:$0xf0]  ;;  %v4766_v46 = vld [vmem:[%s9525_s3 + $0x290] sm:$0xf] }
 0x2f5   : > { %3268 = vmatpush.bf16.msrb.mxu0 %v8460_v63  ;;  %9860 = vst [vmem:[#allocation153_spill] sm:$0xff] %v8504_v11  ;;  %v5078_v63 = vld [vmem:[%s9525_s3 + $0x500] sm:$0xf]  ;;  %v4910_v7 = vld [vmem:[%s9525_s3 + $0x3b0] sm:$0xf] }
 0x2f6   : > { %9861 = vst [vmem:[#allocation154_spill] sm:$0xff] %v8517_v3  ;;  %v8535_v34 = vor.u32 %v5774_v39, %v5078_v63  ;;  %v5732_v16 = vld [vmem:[%s9525_s3 + $0x3b8] sm:$0xf0]  ;;  %v5066_v27 = vld [vmem:[%s9525_s3 + $0x4e8] sm:$0xf]  ;;  %v8559_v39 = vor.u32 %v5615_v29, %v4442_v56 }
 0x2f7   : > { %3207 = vmatpush.bf16.msra.mxu3 %v8466_v5  ;;  %3231 = vmatpush.bf16.msra.mxu2 %v8496_v47  ;;  %9862 = vst [vmem:[#allocation155_spill] sm:$0xff] %v8533_v50  ;;  %v8547_v47 = vor.u32 %v5642_v26, %v4550_v62  ;;  %v5696_v63 = vld [vmem:[%s9525_s3 + $0x298] sm:$0xf0]  ;;  %v5771_v22 = vld [vmem:[%s9525_s3 + $0x4f0] sm:$0xf0] }
 0x2f8   : > { %9863 = vst [vmem:[#allocation156_spill] sm:$0xff] %v8535_v34  ;;  %3196 = vmatpush.bf16.msra.mxu1 %v8517_v3  ;;  %v4538_v62 = vld [vmem:[%s9525_s3 + $0xc8] sm:$0xf]  ;;  %v5639_v26 = vld [vmem:[%s9525_s3 + $0xd0] sm:$0xf0]  ;;  %v8577_v56 = vor.u32 %v5696_v63, %v4766_v46  ;;  %v8579_v29 = vor.u32 %v5771_v22, %v5066_v27 }
 0x2f9   : > { %3269 = vmatpush.bf16.msrb.mxu0 %v8498_v21  ;;  %9864 = vst [vmem:[#allocation157_spill] sm:$0xff] %v8547_v47  ;;  %v8567_v21 = vor.u32 %v5732_v16, %v4910_v7  ;;  %v5756_v3 = vld [vmem:[%s9525_s3 + $0x478] sm:$0xf0]  ;;  %v4754_v7 = vld [vmem:[%s9525_s3 + $0x278] sm:$0xf] }
 0x2fa   : > { %9865 = vst [vmem:[#allocation158_spill] sm:$0xff] %v8559_v39  ;;  %v4898_v16 = vld [vmem:[%s9525_s3 + $0x398] sm:$0xf]  ;;  %v5729_v5 = vld [vmem:[%s9525_s3 + $0x3a0] sm:$0xf0] }
 0x2fb   : > { %3208 = vmatpush.bf16.msra.mxu3 %v8504_v11  ;;  %9866 = vst [vmem:[#allocation159_spill] sm:$0xff] %v8567_v21  ;;  %v5006_v11 = vld [vmem:[%s9525_s3 + $0x470] sm:$0xf]  ;;  %3232 = vmatpush.bf16.msra.mxu2 %v8533_v50  ;;  %v8591_v50 = vor.u32 %v5639_v26, %v4538_v62  ;;  %v5693_v46 = vld [vmem:[%s9525_s3 + $0x280] sm:$0xf0]  ;;  %v8606_v62 = vor.u32 %v5729_v5, %v4898_v16 }
 0x2fc   : > { %9867 = vst [vmem:[#allocation160_spill] sm:$0xff] %v8577_v56  ;;  %v5054_v63 = vld [vmem:[%s9525_s3 + $0x4d0] sm:$0xf]  ;;  %v5768_v27 = vld [vmem:[%s9525_s3 + $0x4d8] sm:$0xf0]  ;;  %3197 = vmatpush.bf16.msra.mxu1 %v8559_v39  ;;  %v8603_v22 = vor.u32 %v5756_v3, %v5006_v11 }
 0x2fd   : > { %3270 = vmatpush.bf16.msrb.mxu0 %v8535_v34  ;;  %9868 = vst [vmem:[#allocation161_spill] sm:$0xff] %v8579_v29  ;;  %v4994_v26 = vld [vmem:[%s9525_s3 + $0x458] sm:$0xf]  ;;  %v5753_v34 = vld [vmem:[%s9525_s3 + $0x460] sm:$0xf0]  ;;  %v8618_v11 = vor.u32 %v5768_v27, %v5054_v63 }
 0x2fe   : > { %9869 = vst [vmem:[#allocation162_spill] sm:$0xff] %v8606_v62  ;;  %v4742_v5 = vld [vmem:[%s9525_s3 + $0x260] sm:$0xf]  ;;  %v5726_v16 = vld [vmem:[%s9525_s3 + $0x388] sm:$0xf0]  ;;  %v8641_v27 = vor.u32 %v5753_v34, %v4994_v26 }
 0x2ff   : > { %3209 = vmatpush.bf16.msra.mxu3 %v8547_v47  ;;  %3233 = vmatpush.bf16.msra.mxu2 %v8577_v56  ;;  %v8616_v47 = vor.u32 %v5693_v46, %v4754_v7  ;;  %9871 = vst [vmem:[#allocation164_spill] sm:$0xff] %v8618_v11  ;;  %v4886_v3 = vld [vmem:[%s9525_s3 + $0x380] sm:$0xf]  ;;  %v5690_v7 = vld [vmem:[%s9525_s3 + $0x268] sm:$0xf0] }
 0x300   : > { %3242 = vmatpush.bf16.msrb.mxu1 %v8567_v21  ;;  %v5042_v46 = vld [vmem:[%s9525_s3 + $0x4b8] sm:$0xf]  ;;  %v5765_v63 = vld [vmem:[%s9525_s3 + $0x4c0] sm:$0xf0]  ;;  %v5750_v56 = vld [vmem:[%s9525_s3 + $0x448] sm:$0xf0]  ;;  %v8654_v21 = vor.u32 %v5690_v7, %v4742_v5 }
 0x301   : > { %3271 = vmatpush.bf16.msrb.mxu0 %v8579_v29  ;;  %9870 = vst [vmem:[#allocation163_spill] sm:$0xff] %v8616_v47  ;;  %3198 = vmatmul.bf16.vlgmr.msra.gmra.mxu1 %v6973_v53  ;;  %v8644_v53 = vor.u32 %v5726_v16, %v4886_v3  ;;  %v4982_v29 = vld [vmem:[%s9525_s3 + $0x440] sm:$0xf]  ;;  %v8656_v34 = vor.u32 %v5765_v63, %v5042_v46  ;;  %v4730_v26 = vld [vmem:[%s9525_s3 + $0x248] sm:$0xf] }
 0x302   : > { %9873 = vst [vmem:[#allocation166_spill] sm:$0xff] %v8654_v21  ;;  %v4874_v3 = vld [vmem:[%s9525_s3 + $0x368] sm:$0xf]  ;;  %v5723_v16 = vld [vmem:[%s9525_s3 + $0x370] sm:$0xf0]  ;;  %v8678_v63 = vor.u32 %v5750_v56, %v4982_v29 }
 0x303   : > { %3210 = vmatpush.bf16.msra.mxu3 %v8591_v50  ;;  %9872 = vst [vmem:[#allocation165_spill] sm:$0xff] %v8644_v53  ;;  %3234 = vmatpush.bf16.msra.mxu2 %v8616_v47  ;;  %v5687_v5 = vld [vmem:[%s9525_s3 + $0x250] sm:$0xf0]  ;;  %v5030_v7 = vld [vmem:[%s9525_s3 + $0x4a0] sm:$0xf]  ;;  %v8687_v47 = vor.u32 %v5723_v16, %v4874_v3 }
 0x304   : > { %3243 = vmatpush.bf16.msrb.mxu1 %v8606_v62  ;;  %9874 = vst [vmem:[#allocation167_spill] sm:$0xff] %v8656_v34  ;;  %v5762_v46 = vld [vmem:[%s9525_s3 + $0x4a8] sm:$0xf0]  ;;  %v4970_v62 = vld [vmem:[%s9525_s3 + $0x428] sm:$0xf]  ;;  %v8697_v29 = vor.u32 %v5687_v5, %v4730_v26 }
 0x305   : > { %3272 = vmatpush.bf16.msrb.mxu0 %v8618_v11  ;;  %v5804_v11 = vld [vmem:[%s9525_s3 + $0x5f8] sm:$0xf0]  ;;  %9875 = vst [vmem:[#allocation168_spill] sm:$0xff] %v8687_v47  ;;  %v5747_v56 = vld [vmem:[%s9525_s3 + $0x430] sm:$0xf0]  ;;  %v8699_v39 = vor.u32 %v5762_v46, %v5030_v7 }
 0x306   : > { %3211 = vmatmul.bf16.vlgmr.msra.gmra.mxu3 %v6975_v12  ;;  %v5198_v12 = vld [vmem:[%s9525_s3 + $0x5f0] sm:$0xf]  ;;  %9876 = vst [vmem:[#allocation169_spill] sm:$0xff] %v8697_v29  ;;  %v5720_v16 = vld [vmem:[%s9525_s3 + $0x358] sm:$0xf0]  ;;  %v8716_v5 = vor.u32 %v5747_v56, %v4970_v62 }
 0x307   : > { %3255 = vmatpush.bf16.msrb.mxu3 %v8603_v22  ;;  %3235 = vmatpush.bf16.msra.mxu2 %v8654_v21  ;;  %9877 = vst [vmem:[#allocation170_spill] sm:$0xff] %v8699_v39  ;;  %v4862_v3 = vld [vmem:[%s9525_s3 + $0x350] sm:$0xf]  ;;  %v5018_v21 = vld [vmem:[%s9525_s3 + $0x488] sm:$0xf] }
 0x308   : > { %3244 = vmatpush.bf16.msrb.mxu1 %v8644_v53  ;;  %v8707_v53 = vor.u32 %v5804_v11, %v5198_v12  ;;  %v5759_v26 = vld [vmem:[%s9525_s3 + $0x490] sm:$0xf0]  ;;  %v5186_v7 = vld [vmem:[%s9525_s3 + $0x5d8] sm:$0xf]  ;;  %v5801_v11 = vld [vmem:[%s9525_s3 + $0x5e0] sm:$0xf0]  ;;  %v8725_v46 = vor.u32 %v5720_v16, %v4862_v3 }
 0x309   : > { %3273 = vmatpush.bf16.msrb.mxu0 %v8656_v34  ;;  %v4958_v12 = vld [vmem:[%s9525_s3 + $0x410] sm:$0xf]  ;;  %v5744_v62 = vld [vmem:[%s9525_s3 + $0x418] sm:$0xf0]  ;;  %v8735_v56 = vor.u32 %v5759_v26, %v5018_v21  ;;  %v4850_v34 = vld [vmem:[%s9525_s3 + $0x338] sm:$0xf]  ;;  %v8744_v16 = vor.u32 %v5801_v11, %v5186_v7 }
 0x30a   : > { %9878 = vst [vmem:[#allocation171_spill] sm:$0xff] %v8707_v53  ;;  %v5717_v3 = vld [vmem:[%s9525_s3 + $0x340] sm:$0xf0]  ;;  %v5174_v21 = vld [vmem:[%s9525_s3 + $0x5c0] sm:$0xf] }
 0x30b   : > { %3256 = vmatpush.bf16.msrb.mxu3 %v8641_v27  ;;  %3236 = vmatpush.bf16.msra.mxu2 %v8697_v29  ;;  %9879 = vst [vmem:[#allocation172_spill] sm:$0xff] %v8735_v56  ;;  %v5798_v26 = vld [vmem:[%s9525_s3 + $0x5c8] sm:$0xf0]  ;;  %v4946_v7 = vld [vmem:[%s9525_s3 + $0x3f8] sm:$0xf] }
 0x30c   : > { %3245 = vmatpush.bf16.msrb.mxu1 %v8687_v47  ;;  %9880 = vst [vmem:[#allocation173_spill] sm:$0xff] %v8744_v16  ;;  %v8747_v47 = vor.u32 %v5744_v62, %v4958_v12  ;;  %v5741_v11 = vld [vmem:[%s9525_s3 + $0x400] sm:$0xf0]  ;;  %v4838_v12 = vld [vmem:[%s9525_s3 + $0x320] sm:$0xf] }
 0x30d   : > { %3274 = vmatpush.bf16.msrb.mxu0 %v8699_v39  ;;  %v8757_v39 = vor.u32 %v5717_v3, %v4850_v34  ;;  %v8774_v34 = vor.u32 %v5798_v26, %v5174_v21  ;;  %v8777_v62 = vor.u32 %v5741_v11, %v4946_v7  ;;  %v5162_v3 = vld [vmem:[%s9525_s3 + $0x5a8] sm:$0xf]  ;;  %v5738_v21 = vld [vmem:[%s9525_s3 + $0x3e8] sm:$0xf0]  ;;  %v5294_v11 = vld [vmem:[%s9525_s3 + $0x6b0] sm:$0xf] }
 0x30e   : > { %3237 = vmatmul.bf16.vlgmr.msra.gmra.mxu2 %v7608_v4  ;;  %v5714_v4 = vld [vmem:[%s9525_s3 + $0x328] sm:$0xf0]  ;;  %v4826_v26 = vld [vmem:[%s9525_s3 + $0x308] sm:$0xf] }
 0x30f   : > { %3257 = vmatpush.bf16.msrb.mxu3 %v8678_v63  ;;  %3281 = vmatpush.bf16.msrb.mxu2 %v8707_v53  ;;  %9881 = vst [vmem:[#allocation174_spill] sm:$0xff] %v8757_v39  ;;  %v4922_v53 = vld [vmem:[%s9525_s3 + $0x3c8] sm:$0xf] }
 0x310   : > { %3246 = vmatpush.bf16.msrb.mxu1 %v8725_v46  ;;  %9882 = vst [vmem:[#allocation175_spill] sm:$0xff] %v8774_v34 }
 0x311   : > { %3275 = vmatpush.bf16.msrb.mxu0 %v8735_v56  ;;  %v5795_v56 = vld [vmem:[%s9525_s3 + $0x5b0] sm:$0xf0] }
 0x312   : > { %v8803_v7 = vor.u32 %v5795_v56, %v5162_v3  ;;  %v2978_v56 = vpop.f32.mrf.mxu3  ;;  %v2991_v3 = vpop.f32.mrf.mxu0 }
 0x313   : > { %3258 = vmatpush.bf16.msrb.mxu3 %v8716_v5  ;;  %3282 = vmatpush.bf16.msrb.mxu2 %v8744_v16  ;;  %v8787_v16 = vor.u32 %v5714_v4, %v4838_v12  ;;  %v5828_v12 = vld [vmem:[%s9525_s3 + $0x6b8] sm:$0xf0] }
 0x314   : > { %3276 = vmatmul.bf16.vlgmr.msrb.gmra.mxu0 %v7844_v1  ;;  %3247 = vmatpush.bf16.msrb.mxu1 %v8757_v39  ;;  %v5711_v1 = vld [vmem:[%s9525_s3 + $0x310] sm:$0xf0]  ;;  %9884 = vst [vmem:[#allocation177_spill] sm:$0xff] %v8803_v7  ;;  %v8830_v29 = vor.u32 %v5828_v12, %v5294_v11  ;;  %v5825_v11 = vld [vmem:[%s9525_s3 + $0x6a0] sm:$0xf0] }
 0x315   : > { %3334 = vmatpush.bf16.msra.mxu0 %v6719_v48  ;;  %9883 = vst [vmem:[#allocation176_spill] sm:$0xff] %v8787_v16  ;;  %v4934_v48 = vld [vmem:[%s9525_s3 + $0x3e0] sm:$0xf]  ;;  %v8821_v39 = vor.u32 %v5711_v1, %v4826_v26  ;;  %v5846_v26 = vld [vmem:[%s9525_s3 + $0x748] sm:$0xf0] }
 0x316   : > { %v8812_v4 = vor.u32 %v5738_v21, %v4934_v48  ;;  %v5735_v48 = vld [vmem:[%s9525_s3 + $0x3d0] sm:$0xf0]  ;;  %v2979_v21 = vadd.f32 %v2978_v56, %v7934_v19  ;;  %v5282_v19 = vld [vmem:[%s9525_s3 + $0x698] sm:$0xf] }
 0x317   : > { %3259 = vmatpush.bf16.msrb.mxu3 %v8747_v47  ;;  %3283 = vmatpush.bf16.msrb.mxu2 %v8774_v34  ;;  %v5150_v34 = vld [vmem:[%s9525_s3 + $0x590] sm:$0xf]  ;;  %v8849_v56 = vor.u32 %v5735_v48, %v4922_v53  ;;  %v5354_v53 = vld [vmem:[%s9525_s3 + $0x728] sm:$0xf] }
 0x318   : > { %3248 = vmatpush.bf16.msrb.mxu1 %v8787_v16  ;;  %v5366_v16 = vld [vmem:[%s9525_s3 + $0x740] sm:$0xf]  ;;  %v2992_v12 = vadd.f32 %v2991_v3, %v2979_v21  ;;  %v5843_v3 = vld [vmem:[%s9525_s3 + $0x730] sm:$0xf0]  ;;  %v5822_v21 = vld [vmem:[%s9525_s3 + $0x688] sm:$0xf0] }
 0x319   : > { %3335 = vmatpush.bf16.msra.mxu0 %v6737_v31  ;;  %v5792_v31 = vld [vmem:[%s9525_s3 + $0x598] sm:$0xf0] }
 0x31a   : > { %v8840_v1 = vor.u32 %v5792_v31, %v5150_v34  ;;  %v8858_v34 = vor.u32 %v5846_v26, %v5366_v16  ;;  %v8861_v31 = vor.u32 %v5825_v11, %v5282_v19  ;;  %v5270_v16 = vld [vmem:[%s9525_s3 + $0x680] sm:$0xf]  ;;  %v2993_v19 = vpop.f32.mrf.mxu0  ;;  %v8888_v11 = vor.u32 %v5843_v3, %v5354_v53  ;;  %v5258_v53 = vld [vmem:[%s9525_s3 + $0x668] sm:$0xf]  ;;  %v5819_v3 = vld [vmem:[%s9525_s3 + $0x670] sm:$0xf0] }
 0x31b   : > { %3260 = vmatpush.bf16.msrb.mxu3 %v8777_v62  ;;  %3284 = vmatpush.bf16.msrb.mxu2 %v8803_v7  ;;  %v5138_v7 = vld [vmem:[%s9525_s3 + $0x578] sm:$0xf]  ;;  %v5126_v26 = vld [vmem:[%s9525_s3 + $0x560] sm:$0xf]  ;;  %v8920_v19 = vor.u32 %v5819_v3, %v5258_v53  ;;  %v5834_v3 = vld [vmem:[%s9525_s3 + $0x6e8] sm:$0xf0] }
 0x31c   : > { %9885 = vst [vmem:[#allocation178_spill] sm:$0xff] %v8840_v1  ;;  %3249 = vmatpush.bf16.msrb.mxu1 %v8821_v39 }
 0x31d   : > { %3336 = vmatpush.bf16.msra.mxu0 %v6757_v60  ;;  %v5789_v60 = vld [vmem:[%s9525_s3 + $0x580] sm:$0xf0]  ;;  %9886 = vst [vmem:[#allocation179_spill] sm:$0xff] %v8861_v31 }
 0x31e   : > { %v8871_v48 = vor.u32 %v5789_v60, %v5138_v7  ;;  %v2980_v7 = vpop.f32.mrf.mxu3  ;;  %v8891_v60 = vor.u32 %v5822_v21, %v5270_v16  ;;  %v3004_v16 = vpop.f32.mrf.mxu1  ;;  %v5114_v21 = vld [vmem:[%s9525_s3 + $0x548] sm:$0xf] }
 0x31f   : > { %3261 = vmatpush.bf16.msrb.mxu3 %v8812_v4  ;;  %3285 = vmatpush.bf16.msrb.mxu2 %v8840_v1  ;;  %v5840_v1 = vld [vmem:[%s9525_s3 + $0x718] sm:$0xf0] }
 0x320   : > { %3294 = vmatpush.bf16.msra.mxu1 %v8830_v29  ;;  %9887 = vst [vmem:[#allocation180_spill] sm:$0xff] %v8871_v48 }
 0x321   : > { %3337 = vmatpush.bf16.msra.mxu0 %v6784_v52  ;;  %3250 = vmatmul.bf16.vlgmr.msrb.gmra.mxu1 %v7637_v57  ;;  %v5786_v52 = vld [vmem:[%s9525_s3 + $0x568] sm:$0xf0]  ;;  %v5342_v57 = vld [vmem:[%s9525_s3 + $0x710] sm:$0xf] }
 0x322   : > { %v8901_v7 = vor.u32 %v5786_v52, %v5126_v26  ;;  %v3005_v26 = vadd.f32 %v3004_v16, %v2992_v12  ;;  %v8917_v52 = vor.u32 %v5840_v1, %v5342_v57  ;;  %v5246_v1 = vld [vmem:[%s9525_s3 + $0x650] sm:$0xf]  ;;  %v5816_v12 = vld [vmem:[%s9525_s3 + $0x658] sm:$0xf0]  ;;  %v5813_v16 = vld [vmem:[%s9525_s3 + $0x640] sm:$0xf0] }
 0x323   : > { %3262 = vmatpush.bf16.msrb.mxu3 %v8849_v56  ;;  %3286 = vmatpush.bf16.msrb.mxu2 %v8871_v48  ;;  %v5837_v48 = vld [vmem:[%s9525_s3 + $0x700] sm:$0xf0]  ;;  %v8942_v53 = vor.u32 %v5816_v12, %v5246_v1  ;;  %v5831_v1 = vld [vmem:[%s9525_s3 + $0x6d0] sm:$0xf0] }
 0x324   : > { %3295 = vmatpush.bf16.msra.mxu1 %v8861_v31 }
 0x325   : > { %3338 = vmatpush.bf16.msra.mxu0 %v6811_v58  ;;  %v5783_v58 = vld [vmem:[%s9525_s3 + $0x550] sm:$0xf0] }
 0x326   : > { %3263 = vmatmul.bf16.vlgmr.msrb.gmra.mxu3 %v7705_v24  ;;  %v5330_v24 = vld [vmem:[%s9525_s3 + $0x6f8] sm:$0xf]  ;;  %v8930_v31 = vor.u32 %v5783_v58, %v5114_v21  ;;  %v3006_v21 = vpop.f32.mrf.mxu1 }
 0x327   : > { %3309 = vmatpush.bf16.msra.mxu3 %v8858_v34  ;;  %3287 = vmatpush.bf16.msrb.mxu2 %v8901_v7  ;;  %v8939_v57 = vor.u32 %v5837_v48, %v5330_v24  ;;  %v5234_v48 = vld [vmem:[%s9525_s3 + $0x638] sm:$0xf]  ;;  %v5306_v24 = vld [vmem:[%s9525_s3 + $0x6c8] sm:$0xf]  ;;  %v3030_v12 = vpop.f32.mrf.mxu3 }
 0x328   : > { %3296 = vmatpush.bf16.msra.mxu1 %v8891_v60 }
 0x329   : > { %3339 = vmatpush.bf16.msra.mxu0 %v6838_v30  ;;  %v5318_v30 = vld [vmem:[%s9525_s3 + $0x6e0] sm:$0xf] }
 0x32a   : > { %v8960_v58 = vor.u32 %v5834_v3, %v5318_v30  ;;  %v3043_v30 = vpop.f32.mrf.mxu0  ;;  %v8982_v3 = vor.u32 %v5831_v1, %v5306_v24  ;;  %v9897_v1 = vld [vmem:[#allocation29_spill] sm:$0xff] }
 0x32b   : > { %3310 = vmatpush.bf16.msra.mxu3 %v8888_v11  ;;  %3288 = vmatpush.bf16.msrb.mxu2 %v8930_v31 }
 0x32c   : > { %3297 = vmatpush.bf16.msra.mxu1 %v8920_v19 }
 0x32d   : > { %3340 = vmatpush.bf16.msra.mxu0 %v6862_v59  ;;  %v8964_v59 = vor.u32 %v5813_v16, %v5234_v48  ;;  %v5210_v48 = vld [vmem:[%s9525_s3 + $0x608] sm:$0xf] }
 0x32e   : > { %3289 = vmatmul.bf16.vlgmr.msrb.gmra.mxu2 %v7746_v41  ;;  %v5810_v41 = vld [vmem:[%s9525_s3 + $0x628] sm:$0xf0] }
 0x32f   : > { %3311 = vmatpush.bf16.msra.mxu3 %v8917_v52  ;;  %3347 = vmatpush.bf16.msra.mxu2 %v6724_v49  ;;  %v5222_v49 = vld [vmem:[%s9525_s3 + $0x620] sm:$0xf]  ;;  %v3032_v16 = vpop.f32.mrf.mxu3 }
 0x330   : > { %3298 = vmatpush.bf16.msra.mxu1 %v8942_v53  ;;  %v9901_v16 = vld [vmem:[#allocation17_spill] sm:$0xff] }
 0x331   : > { %3341 = vmatpush.bf16.msra.mxu0 %v6895_v38  ;;  %v8986_v38 = vor.u32 %v5810_v41, %v5222_v49  ;;  %v3017_v21 = vpop.f32.mrf.mxu2  ;;  %v9898_v41 = vld [vmem:[#allocation7_spill] sm:$0xff] }
 0x332   : > { %v3018_v24 = vadd.f32 %v3017_v21, %v3005_v26  ;;  %v9896_v26 = vld [vmem:[#allocation14_spill] sm:$0xff]  ;;  %v9902_v21 = vld [vmem:[#allocation33_spill] sm:$0xff] }
 0x333   : > { %3312 = vmatpush.bf16.msra.mxu3 %v8939_v57  ;;  %3348 = vmatpush.bf16.msra.mxu2 %v6742_v35  ;;  %v5807_v35 = vld [vmem:[%s9525_s3 + $0x610] sm:$0xf0] }
 0x334   : > { %3342 = vmatmul.bf16.vlgmr.msra.gmra.mxu0 %v6950_v32  ;;  %3299 = vmatpush.bf16.msra.mxu1 %v8964_v59 }
 0x335   : > { %3386 = vmatpush.bf16.msrb.mxu0 %v7023_v40  ;;  %v8999_v40 = vor.u32 %v5807_v35, %v5210_v48  ;;  %v9900_v48 = vld [vmem:[#allocation12_spill] sm:$0xff]  ;;  %v1623_v35 = vpop.permute.xlu0 %1622 }
 0x337   : > { %3313 = vmatpush.bf16.msra.mxu3 %v8960_v58  ;;  %3349 = vmatpush.bf16.msra.mxu2 %v6768_v33  ;;  %v3045_v33 = vpop.f32.mrf.mxu0 }
 0x338   : > { %3300 = vmatpush.bf16.msra.mxu1 %v8986_v38  ;;  %v9903_v33 = vld [vmem:[#allocation8_spill] sm:$0xff] }
 0x339   : > { %3387 = vmatpush.bf16.msrb.mxu0 %v7044_v25  ;;  %v3056_v25 = vpop.f32.mrf.mxu1 }
 0x33b   : > { %3314 = vmatpush.bf16.msra.mxu3 %v8982_v3  ;;  %3350 = vmatpush.bf16.msra.mxu2 %v6795_v14 }
 0x33c   : > { %3301 = vmatpush.bf16.msra.mxu1 %v8999_v40 }
 0x33d   : > { %3388 = vmatpush.bf16.msrb.mxu0 %v7069_v6 }
 0x33e   : > { %5370 = vmatmul.msk.bf16.vlgmr.msra.gmra.mxu3 %vm1130_vm4, %v7912_v54 }
 0x33f   : > { %3360 = vmatpush.bf16.msrb.mxu3 %v6770_v36  ;;  %v3031_v36 = vadd.f32 %v3030_v12, %v3018_v24  ;;  %3351 = vmatpush.bf16.msra.mxu2 %v6822_v10  ;;  %v9017_v54 = vpop.f32.mrf.mxu0 }
 0x340   : > { %3373 = vmatpush.bf16.msrb.mxu1 %v7014_v9  ;;  %v3019_v9 = vpop.f32.mrf.mxu2 }
 0x341   : > { %3389 = vmatpush.bf16.msrb.mxu0 %v7100_v43  ;;  %3302 = vmatmul.bf16.vlgmr.msra.gmra.mxu1 %v7819_v23  ;;  %v3044_v14 = vadd.f32 %v3043_v30, %v3031_v36  ;;  %v3058_v10 = vpop.f32.mrf.mxu1  ;;  %v1619_v43 = vpop.permute.xlu1 %1618  ;;  %v9895_v23 = vld [vmem:[#allocation16_spill] sm:$0xff]  ;;  %v9899_v30 = vld [vmem:[#allocation19_spill] sm:$0xff] }
 0x342   : > { %v9905_v36 = vld [vmem:[#allocation15_spill] sm:$0xff]  ;;  %v9907_v10 = vld [vmem:[#allocation10_spill] sm:$0xff] }
 0x343   : > { %3361 = vmatpush.bf16.msrb.mxu3 %v6797_v28  ;;  %v9013_v6 = vadd.f32 %v3056_v25, %v3044_v14  ;;  %3352 = vmatpush.bf16.msra.mxu2 %v6849_v44  ;;  %v3082_v28 = vpop.f32.mrf.mxu3  ;;  %v9904_v25 = vld [vmem:[#allocation22_spill] sm:$0xff]  ;;  %v9906_v9 = vld [vmem:[#allocation23_spill] sm:$0xff] }
 0x344   : > { %3374 = vmatpush.bf16.msrb.mxu1 %v7030_v20  ;;  %v9888_v20 = vld [vmem:[#allocation5_spill] sm:$0xff] }
 0x345   : > { %3390 = vmatpush.bf16.msrb.mxu0 %v7148_v0  ;;  %v9892_v0 = vld [vmem:[#allocation11_spill] sm:$0xff] }
 0x347   : > { %3362 = vmatpush.bf16.msrb.mxu3 %v6824_v13  ;;  %3353 = vmatpush.bf16.msra.mxu2 %v6873_v61  ;;  %v9889_v61 = vld [vmem:[#allocation9_spill] sm:$0xff] }
 0x348   : > { %3375 = vmatpush.bf16.msrb.mxu1 %v7060_v2  ;;  %v3069_v44 = vpop.f32.mrf.mxu2 }
 0x349   : > { %3391 = vmatpush.bf16.msrb.mxu0 %v7188_v37  ;;  %v3095_v2 = vpop.f32.mrf.mxu1  ;;  %v9890_v37 = vld [vmem:[#allocation13_spill] sm:$0xff] }
 0x34b   : > { %3363 = vmatpush.bf16.msrb.mxu3 %v6851_v45  ;;  %3354 = vmatpush.bf16.msra.mxu2 %v6907_v8  ;;  %v3084_v13 = vpop.f32.mrf.mxu3  ;;  %v3110_v45 = vpop.f32.mrf.mxu0  ;;  %v9893_v8 = vld [vmem:[#allocation25_spill] sm:$0xff] }
 0x34c   : > { %3376 = vmatpush.bf16.msrb.mxu1 %v7088_v15  ;;  %v1621_v15 = vpop.permute.xlu2 %1620  ;;  %v9055_v13 = vsel %vm1558_vm5, %v9907_v10, %v1619_v43  ;;  %v9908_v45 = vld [vmem:[#allocation20_spill] sm:$0xff] }
 0x34d   : > { %3392 = vmatpush.bf16.msrb.mxu0 %v7236_v51  ;;  %v9035_v51 = vsel %vm1558_vm5, %v1619_v43, %v1621_v15 }
 0x34e   : > { %3355 = vmatmul.bf16.vlgmr.msra.gmra.mxu2 %v9889_v61 }
 0x34f   : > { %3364 = vmatpush.bf16.msrb.mxu3 %v6879_v42  ;;  %3399 = vmatpush.bf16.msrb.mxu2 %v7085_v17  ;;  %v9891_v42 = vld [vmem:[#allocation24_spill] sm:$0xff]  ;;  %v9894_v17 = vld [vmem:[#allocation6_spill] sm:$0xff] }
 0x350   : > { %3377 = vmatpush.bf16.msrb.mxu1 %v9890_v37  ;;  %v3071_v49 = vpop.f32.mrf.mxu2 }
 0x351   : > { %3393 = vmatpush.bf16.msrb.mxu0 %v9891_v42  ;;  %v3097_v12 = vpop.f32.mrf.mxu1  ;;  %v9910_v42 = vld [vmem:[#allocation18_spill] sm:$0xff]  ;;  %v9915_v49 = vld [vmem:[#allocation32_spill] sm:$0xff] }
 0x352   : > { %v9917_v12 = vld [vmem:[#allocation42_spill] sm:$0xff] }
 0x353   : > { %3365 = vmatpush.bf16.msrb.mxu3 %v9888_v20  ;;  %3400 = vmatpush.bf16.msrb.mxu2 %v9892_v0  ;;  %v3134_v24 = vpop.f32.mrf.mxu3  ;;  %v9050_v14 = vpop.f32.mrf.mxu0  ;;  %v9909_v20 = vld [vmem:[#allocation36_spill] sm:$0xff] }
 0x354   : > { %3394 = vmatmul.bf16.vlgmr.msrb.gmra.mxu0 %v9035_v51  ;;  %3378 = vmatpush.bf16.msrb.mxu1 %v9895_v23  ;;  %v9911_v0 = vld [vmem:[#allocation28_spill] sm:$0xff]  ;;  %v1660_v23 = vpop.permute.xlu0 %1659 }
 0x355   : > { %3438 = vmatpush.bf16.msra.mxu0 %v9893_v8  ;;  %v9912_v8 = vld [vmem:[#allocation26_spill] sm:$0xff] }
 0x357   : > { %3366 = vmatpush.bf16.msrb.mxu3 %v9894_v17  ;;  %3401 = vmatpush.bf16.msrb.mxu2 %v9896_v26  ;;  %v9913_v17 = vld [vmem:[#allocation38_spill] sm:$0xff] }
 0x358   : > { %3379 = vmatpush.bf16.msrb.mxu1 %v9899_v30  ;;  %v3121_v37 = vpop.f32.mrf.mxu2 }
 0x359   : > { %3439 = vmatpush.bf16.msra.mxu0 %v9897_v1  ;;  %v9914_v1 = vld [vmem:[#allocation21_spill] sm:$0xff] }
 0x35b   : > { %3367 = vmatpush.bf16.msrb.mxu3 %v9898_v41  ;;  %3402 = vmatpush.bf16.msrb.mxu2 %v9901_v16  ;;  %v3136_v26 = vpop.f32.mrf.mxu3  ;;  %v3162_v43 = vpop.f32.mrf.mxu0  ;;  %v9916_v41 = vld [vmem:[#allocation30_spill] sm:$0xff] }
 0x35c   : > { %3380 = vmatpush.bf16.msrb.mxu1 %v9904_v25  ;;  %v9919_v25 = vld [vmem:[#allocation35_spill] sm:$0xff]  ;;  %v9928_v43 = vld [vmem:[#allocation41_spill] sm:$0xff] }
 0x35d   : > { %3440 = vmatpush.bf16.msra.mxu0 %v9902_v21  ;;  %v9918_v21 = vld [vmem:[#allocation27_spill] sm:$0xff] }
 0x35e   : > { %3368 = vmatmul.bf16.vlgmr.msrb.gmra.mxu3 %v9903_v33  ;;  %v3147_v16 = vpop.f32.mrf.mxu1  ;;  %v9926_v26 = vld [vmem:[#allocation47_spill] sm:$0xff] }
 0x35f   : > { %3412 = vmatpush.bf16.msra.mxu3 %v9900_v48  ;;  %3403 = vmatpush.bf16.msrb.mxu2 %v9908_v45  ;;  %v3083_v48 = vadd.f32 %v3082_v28, %v3069_v44  ;;  %v9922_v45 = vld [vmem:[#allocation43_spill] sm:$0xff]  ;;  %v9924_v28 = vld [vmem:[#allocation37_spill] sm:$0xff] }
 0x360   : > { %3425 = vmatpush.bf16.msra.mxu1 %v9906_v9  ;;  %v3123_v30 = vpop.f32.mrf.mxu2  ;;  %v9921_v9 = vld [vmem:[#allocation46_spill] sm:$0xff]  ;;  %v9925_v44 = vld [vmem:[#allocation49_spill] sm:$0xff] }
 0x361   : > { %3441 = vmatpush.bf16.msra.mxu0 %v9909_v20  ;;  %3381 = vmatmul.bf16.vlgmr.msrb.gmra.mxu1 %v9055_v13  ;;  %v3096_v10 = vadd.f32 %v3095_v2, %v3083_v48  ;;  %v9074_v20 = vsel %vm1558_vm5, %v1621_v15, %v1623_v35  ;;  %v9927_v2 = vld [vmem:[#allocation63_spill] sm:$0xff]  ;;  %v9930_v30 = vld [vmem:[#allocation50_spill] sm:$0xff]  ;;  %v9931_v48 = vld [vmem:[#allocation65_spill] sm:$0xff] }
 0x363   : > { %3413 = vmatpush.bf16.msra.mxu3 %v9905_v36  ;;  %3404 = vmatpush.bf16.msrb.mxu2 %v9912_v8  ;;  %v9920_v36 = vld [vmem:[#allocation34_spill] sm:$0xff]  ;;  %v1664_v8 = vpop.permute.xlu1 %1663 }
 0x364   : > { %3426 = vmatpush.bf16.msra.mxu1 %v9911_v0  ;;  %v1662_v0 = vpop.permute.xlu0 %1661 }
 0x365   : > { %3442 = vmatpush.bf16.msra.mxu0 %v9913_v17  ;;  %v3109_v17 = vadd.f32 %v9017_v54, %v3096_v10  ;;  %v9932_v54 = vld [vmem:[#allocation45_spill] sm:$0xff] }
 0x366   : > { %v3149_v15 = vpop.f32.mrf.mxu1 }
 0x367   : > { %3414 = vmatpush.bf16.msra.mxu3 %v9910_v42  ;;  %3405 = vmatpush.bf16.msrb.mxu2 %v9916_v41  ;;  %v9923_v42 = vld [vmem:[#allocation31_spill] sm:$0xff]  ;;  %v9940_v15 = vld [vmem:[#allocation54_spill] sm:$0xff] }
 0x368   : > { %3427 = vmatpush.bf16.msra.mxu1 %v9915_v49  ;;  %v3122_v49 = vadd.f32 %v3121_v37, %v3109_v17  ;;  %v9929_v41 = vld [vmem:[#allocation39_spill] sm:$0xff] }
 0x369   : > { %3443 = vmatpush.bf16.msra.mxu0 %v9917_v12  ;;  %v3186_v12 = vpop.f32.mrf.mxu3  ;;  %v9938_v17 = vld [vmem:[#allocation51_spill] sm:$0xff] }
 0x36b   : > { %3415 = vmatpush.bf16.msra.mxu3 %v9914_v1  ;;  %3406 = vmatpush.bf16.msrb.mxu2 %v9920_v36  ;;  %v9084_v1 = vsel %vm1600_vm6, %v1662_v0, %v1664_v8  ;;  %v9933_v36 = vld [vmem:[#allocation40_spill] sm:$0xff] }
 0x36c   : > { %3428 = vmatpush.bf16.msra.mxu1 %v9919_v25  ;;  %v3135_v25 = vadd.f32 %v3134_v24, %v3122_v49 }
 0x36d   : > { %3444 = vmatpush.bf16.msra.mxu0 %v9921_v9  ;;  %v9934_v9 = vld [vmem:[#allocation48_spill] sm:$0xff] }
 0x36e   : > { %3407 = vmatmul.bf16.vlgmr.msrb.gmra.mxu2 %v9074_v20 }
 0x36f   : > { %3416 = vmatpush.bf16.msra.mxu3 %v9918_v21  ;;  %3453 = vmatpush.bf16.msra.mxu2 %v9922_v45  ;;  %v1625_v21 = vpop.permute.xlu2 %1624  ;;  %v3148_v45 = vadd.f32 %v3147_v16, %v3135_v25  ;;  %v9941_v16 = vld [vmem:[#allocation70_spill] sm:$0xff]  ;;  %v9946_v25 = vld [vmem:[#allocation69_spill] sm:$0xff] }
 0x370   : > { %3429 = vmatpush.bf16.msra.mxu1 %v9924_v28  ;;  %v1628_v10 = vsel %vm1558_vm5, %v1623_v35, %v1625_v21  ;;  %v9936_v28 = vld [vmem:[#allocation67_spill] sm:$0xff]  ;;  %v9107_v35 = vsel %vm1600_vm6, %v1660_v23, %v1662_v0  ;;  %v9944_v21 = vld [vmem:[#allocation56_spill] sm:$0xff] }
 0x371   : > { %3445 = vmatpush.bf16.msra.mxu0 %v9925_v44  ;;  %v9096_v37 = vsel %vm1600_vm6, %v1628_v10, %v1660_v23  ;;  %v9937_v44 = vld [vmem:[#allocation44_spill] sm:$0xff]  ;;  %v3188_v24 = vpop.f32.mrf.mxu3  ;;  %v3173_v49 = vpop.f32.mrf.mxu2  ;;  %v9945_v23 = vld [vmem:[#allocation73_spill] sm:$0xff] }
 0x372   : > { %v9949_v10 = vld [vmem:[#allocation76_spill] sm:$0xff]  ;;  %v9954_v24 = vld [vmem:[#allocation75_spill] sm:$0xff] }
 0x373   : > { %3417 = vmatpush.bf16.msra.mxu3 %v9923_v42  ;;  %3454 = vmatpush.bf16.msra.mxu2 %v9926_v26  ;;  %v9935_v42 = vld [vmem:[#allocation52_spill] sm:$0xff]  ;;  %v9103_v26 = vpop.f32.mrf.mxu0 }
 0x374   : > { %3446 = vmatmul.bf16.vlgmr.msra.gmra.mxu0 %v9084_v1  ;;  %3430 = vmatpush.bf16.msra.mxu1 %v9929_v41 }
 0x375   : > { %3503 = vmatpush.bf16.msrb.mxu0 %v9927_v2  ;;  %v9939_v2 = vld [vmem:[#allocation60_spill] sm:$0xff] }
 0x377   : > { %3418 = vmatpush.bf16.msra.mxu3 %v9928_v43  ;;  %3455 = vmatpush.bf16.msra.mxu2 %v9930_v30  ;;  %v3161_v43 = vadd.f32 %v9050_v14, %v3148_v45  ;;  %v9942_v30 = vld [vmem:[#allocation53_spill] sm:$0xff]  ;;  %v1666_v0 = vpop.permute.xlu2 %1665  ;;  %v9947_v14 = vld [vmem:[#allocation55_spill] sm:$0xff] }
 0x378   : > { %3431 = vmatpush.bf16.msra.mxu1 %v9933_v36  ;;  %v9121_v36 = vsel %vm1600_vm6, %v1664_v8, %v1666_v0  ;;  %v9952_v8 = vld [vmem:[#allocation66_spill] sm:$0xff]  ;;  %v9963_v0 = vld [vmem:[#allocation89_spill] sm:$0xff] }
 0x379   : > { %3504 = vmatpush.bf16.msrb.mxu0 %v9931_v48  ;;  %v3174_v41 = vadd.f32 %v3173_v49, %v3161_v43  ;;  %v9943_v48 = vld [vmem:[#allocation62_spill] sm:$0xff]  ;;  %v3175_v45 = vpop.f32.mrf.mxu2  ;;  %v9958_v43 = vld [vmem:[#allocation79_spill] sm:$0xff]  ;;  %v9959_v49 = vld [vmem:[#allocation85_spill] sm:$0xff] }
 0x37a   : > { %v9969_v45 = vld [vmem:[#allocation77_spill] sm:$0xff] }
 0x37b   : > { %3419 = vmatpush.bf16.msra.mxu3 %v9932_v54  ;;  %3456 = vmatpush.bf16.msra.mxu2 %v9935_v42  ;;  %v9115_v54 = vadd.f32 %v3186_v12, %v3174_v41  ;;  %v9948_v12 = vld [vmem:[#allocation64_spill] sm:$0xff] }
 0x37c   : > { %3432 = vmatpush.bf16.msra.mxu1 %v9937_v44  ;;  %v9950_v42 = vld [vmem:[#allocation72_spill] sm:$0xff]  ;;  %v9951_v44 = vld [vmem:[#allocation57_spill] sm:$0xff] }
 0x37d   : > { %3505 = vmatpush.bf16.msrb.mxu0 %v9936_v28  ;;  %3322 = vrot.lane.b32.xlu1 %v9115_v54, %s6007_s20 }
 0x37e   : > { %3420 = vmatmul.bf16.vlgmr.msra.gmra.mxu3 %v9096_v37  ;;  %v3199_v28 = vpop.f32.mrf.mxu1 }
 0x37f   : > { %3464 = vmatpush.bf16.msrb.mxu3 %v9934_v9  ;;  %3457 = vmatpush.bf16.msra.mxu2 %v9940_v15  ;;  %v3227_v9 = vpop.f32.mrf.mxu0  ;;  %v9956_v15 = vld [vmem:[#allocation68_spill] sm:$0xff] }
 0x380   : > { %3477 = vmatpush.bf16.msrb.mxu1 %v9939_v2  ;;  %v9955_v2 = vld [vmem:[#allocation58_spill] sm:$0xff]  ;;  %v9966_v9 = vld [vmem:[#allocation81_spill] sm:$0xff] }
 0x381   : > { %3506 = vmatpush.bf16.msrb.mxu0 %v9941_v16  ;;  %3433 = vmatmul.bf16.vlgmr.msra.gmra.mxu1 %v9107_v35  ;;  %v9957_v16 = vld [vmem:[#allocation84_spill] sm:$0xff] }
 0x383   : > { %3465 = vmatpush.bf16.msrb.mxu3 %v9938_v17  ;;  %3458 = vmatpush.bf16.msra.mxu2 %v9944_v21  ;;  %v9953_v17 = vld [vmem:[#allocation80_spill] sm:$0xff] }
 0x384   : > { %3478 = vmatpush.bf16.msrb.mxu1 %v9943_v48  ;;  %v9961_v48 = vld [vmem:[#allocation71_spill] sm:$0xff] }
 0x385   : > { %3507 = vmatpush.bf16.msrb.mxu0 %v9945_v23  ;;  %v9962_v23 = vld [vmem:[#allocation83_spill] sm:$0xff] }
 0x386   : > { %5371 = vmatmul.msk.bf16.vlgmr.msra.gmra.mxu2 %vm1130_vm4, %v9121_v36  ;;  %v3201_v41 = vpop.f32.mrf.mxu1 }
 0x387   : > { %3466 = vmatpush.bf16.msrb.mxu3 %v9942_v30  ;;  %3490 = vmatpush.bf16.msrb.mxu2 %v9946_v25  ;;  %v9960_v30 = vld [vmem:[#allocation59_spill] sm:$0xff]  ;;  %v9964_v25 = vld [vmem:[#allocation61_spill] sm:$0xff] }
 0x388   : > { %3479 = vmatpush.bf16.msrb.mxu1 %v9948_v12  ;;  %v9967_v12 = vld [vmem:[#allocation88_spill] sm:$0xff]  ;;  %v9977_v41 = vld [vmem:[#allocation103_spill] sm:$0xff] }
 0x389   : > { %3508 = vmatpush.bf16.msrb.mxu0 %v9949_v10  ;;  %v3212_v21 = vpop.f32.mrf.mxu3  ;;  %v9968_v10 = vld [vmem:[#allocation93_spill] sm:$0xff] }
 0x38b   : > { %3467 = vmatpush.bf16.msrb.mxu3 %v9947_v14  ;;  %3491 = vmatpush.bf16.msrb.mxu2 %v9950_v42  ;;  %v9965_v14 = vld [vmem:[#allocation74_spill] sm:$0xff] }
 0x38c   : > { %3480 = vmatpush.bf16.msrb.mxu1 %v9952_v8  ;;  %v9970_v42 = vld [vmem:[#allocation86_spill] sm:$0xff] }
 0x38d   : > { %3509 = vmatpush.bf16.msrb.mxu0 %v9953_v17  ;;  %v9971_v17 = vld [vmem:[#allocation78_spill] sm:$0xff] }
 0x38f   : > { %3468 = vmatpush.bf16.msrb.mxu3 %v9951_v44  ;;  %3492 = vmatpush.bf16.msrb.mxu2 %v9954_v24  ;;  %v9972_v24 = vld [vmem:[#allocation92_spill] sm:$0xff] }
 0x390   : > { %3481 = vmatpush.bf16.msrb.mxu1 %v9956_v15 }
 0x391   : > { %3510 = vmatpush.bf16.msrb.mxu0 %v9957_v16  ;;  %v3214_v44 = vpop.f32.mrf.mxu3  ;;  %v3277_v8 = vpop.f32.mrf.mxu0  ;;  %v9974_v16 = vld [vmem:[#allocation90_spill] sm:$0xff] }
 0x392   : > { %v3238_v15 = vpop.f32.mrf.mxu2  ;;  %v9986_v44 = vld [vmem:[#allocation101_spill] sm:$0xff] }
 0x393   : > { %3469 = vmatpush.bf16.msrb.mxu3 %v9955_v2  ;;  %3493 = vmatpush.bf16.msrb.mxu2 %v9958_v43  ;;  %v9973_v2 = vld [vmem:[#allocation99_spill] sm:$0xff]  ;;  %v9975_v43 = vld [vmem:[#allocation82_spill] sm:$0xff] }
 0x394   : > { %3511 = vmatmul.bf16.vlgmr.msrb.gmra.mxu0 %v9055_v13  ;;  %3482 = vmatpush.bf16.msrb.mxu1 %v9961_v48  ;;  %v9979_v48 = vld [vmem:[#allocation94_spill] sm:$0xff] }
 0x395   : > { %3555 = vmatpush.bf16.msra.mxu0 %v9959_v49  ;;  %v9976_v49 = vld [vmem:[#allocation96_spill] sm:$0xff] }
 0x397   : > { %3470 = vmatpush.bf16.msrb.mxu3 %v9960_v30  ;;  %3494 = vmatpush.bf16.msrb.mxu2 %v9962_v23  ;;  %v9978_v30 = vld [vmem:[#allocation98_spill] sm:$0xff] }
 0x398   : > { %3483 = vmatpush.bf16.msrb.mxu1 %v9965_v14  ;;  %v9981_v14 = vld [vmem:[#allocation102_spill] sm:$0xff] }
 0x399   : > { %3556 = vmatpush.bf16.msra.mxu0 %v9963_v0  ;;  %v3279_v23 = vpop.f32.mrf.mxu0  ;;  %v9980_v0 = vld [vmem:[#allocation87_spill] sm:$0xff] }
 0x39a   : > { %v3213_v23 = vadd.f32 %v3212_v21, %v3199_v28 }
 0x39b   : > { %3471 = vmatpush.bf16.msrb.mxu3 %v9964_v25  ;;  %3495 = vmatpush.bf16.msrb.mxu2 %v9967_v12  ;;  %v3240_v25 = vpop.f32.mrf.mxu2  ;;  %v9982_v12 = vld [vmem:[#allocation97_spill] sm:$0xff] }
 0x39c   : > { %3484 = vmatpush.bf16.msrb.mxu1 %v9969_v45  ;;  %v9984_v45 = vld [vmem:[#allocation111_spill] sm:$0xff]  ;;  %v9996_v25 = vld [vmem:[#allocation104_spill] sm:$0xff] }
 0x39d   : > { %3557 = vmatpush.bf16.msra.mxu0 %v9968_v10  ;;  %v9983_v10 = vld [vmem:[#allocation91_spill] sm:$0xff] }
 0x39e   : > { %3472 = vmatmul.bf16.vlgmr.msrb.gmra.mxu3 %v6950_v32 }
 0x39f   : > { %3516 = vmatpush.bf16.msra.mxu3 %v9966_v9  ;;  %3496 = vmatpush.bf16.msrb.mxu2 %v9972_v24  ;;  %v3251_v9 = vpop.f32.mrf.mxu1  ;;  %v9988_v24 = vld [vmem:[#allocation115_spill] sm:$0xff] }
 0x3a0   : > { %3529 = vmatpush.bf16.msra.mxu1 %v9971_v17  ;;  %v9987_v17 = vld [vmem:[#allocation95_spill] sm:$0xff] }
 0x3a1   : > { %3558 = vmatpush.bf16.msra.mxu0 %v9973_v2  ;;  %3485 = vmatmul.bf16.vlgmr.msrb.gmra.mxu1 %v9889_v61  ;;  %v9989_v2 = vld [vmem:[#allocation110_spill] sm:$0xff] }
 0x3a3   : > { %3517 = vmatpush.bf16.msra.mxu3 %v9970_v42  ;;  %3497 = vmatpush.bf16.msrb.mxu2 %v9976_v49  ;;  %v9985_v42 = vld [vmem:[#allocation106_spill] sm:$0xff]  ;;  %v9992_v49 = vld [vmem:[#allocation100_spill] sm:$0xff] }
 0x3a4   : > { %3530 = vmatpush.bf16.msra.mxu1 %v9975_v43  ;;  %v9991_v43 = vld [vmem:[#allocation105_spill] sm:$0xff] }
 0x3a5   : > { %3559 = vmatpush.bf16.msra.mxu0 %v9977_v41 }
 0x3a6   : > { %3498 = vmatmul.bf16.vlgmr.msrb.gmra.mxu2 %v9903_v33 }
 0x3a7   : > { %3518 = vmatpush.bf16.msra.mxu3 %v9974_v16  ;;  %3542 = vmatpush.bf16.msra.mxu2 %v9978_v30  ;;  %v3253_v16 = vpop.f32.mrf.mxu1  ;;  %v9993_v30 = vld [vmem:[#allocation114_spill] sm:$0xff] }
 0x3a8   : > { %3531 = vmatpush.bf16.msra.mxu1 %v9980_v0  ;;  %v9995_v0 = vld [vmem:[#allocation109_spill] sm:$0xff] }
 0x3a9   : > { %3560 = vmatpush.bf16.msra.mxu0 %v8071_v55  ;;  %v9990_v55 = vld [vmem:[#allocation132_spill] sm:$0xff]  ;;  %v3264_v41 = vpop.f32.mrf.mxu3 }
 0x3ab   : > { %3519 = vmatpush.bf16.msra.mxu3 %v9979_v48  ;;  %3543 = vmatpush.bf16.msra.mxu2 %v9981_v14  ;;  %v9994_v48 = vld [vmem:[#allocation136_spill] sm:$0xff] }
 0x3ac   : > { %3532 = vmatpush.bf16.msra.mxu1 %v9983_v10  ;;  %v9997_v14 = vld [vmem:[#allocation112_spill] sm:$0xff] }
 0x3ad   : > { %3561 = vmatpush.bf16.msra.mxu0 %v9984_v45  ;;  %v9999_v10 = vld [vmem:[#allocation140_spill] sm:$0xff]  ;;  %v3226_v45 = vadd.f32 %v9103_v26, %v3213_v23 }
 0x3ae   : > { %v10004_v26 = vld [vmem:[#allocation120_spill] sm:$0xff] }
 0x3af   : > { %3520 = vmatpush.bf16.msra.mxu3 %v9982_v12  ;;  %3544 = vmatpush.bf16.msra.mxu2 %v9985_v42  ;;  %v9998_v12 = vld [vmem:[#allocation119_spill] sm:$0xff]  ;;  %v10009_v23 = vld [vmem:[#allocation124_spill] sm:$0xff] }
 0x3b0   : > { %3533 = vmatpush.bf16.msra.mxu1 %v9987_v17  ;;  %v10000_v42 = vld [vmem:[#allocation107_spill] sm:$0xff]  ;;  %v3239_v17 = vadd.f32 %v3238_v15, %v3226_v45  ;;  %v10007_v15 = vld [vmem:[#allocation149_spill] sm:$0xff] }
 0x3b1   : > { %3562 = vmatpush.bf16.msra.mxu0 %v9988_v24  ;;  %v3266_v28 = vpop.f32.mrf.mxu3  ;;  %v3343_v21 = vpop.f32.mrf.mxu0  ;;  %v10002_v24 = vld [vmem:[#allocation108_spill] sm:$0xff]  ;;  %v10013_v45 = vld [vmem:[#allocation129_spill] sm:$0xff] }
 0x3b2   : > { %v3290_v16 = vpop.f32.mrf.mxu2  ;;  %v10015_v28 = vld [vmem:[#allocation157_spill] sm:$0xff] }
 0x3b3   : > { %3521 = vmatpush.bf16.msra.mxu3 %v9986_v44  ;;  %3545 = vmatpush.bf16.msra.mxu2 %v9989_v2  ;;  %v10001_v44 = vld [vmem:[#allocation116_spill] sm:$0xff]  ;;  %v10003_v2 = vld [vmem:[#allocation123_spill] sm:$0xff] }
 0x3b4   : > { %3563 = vmatmul.bf16.vlgmr.msra.gmra.mxu0 %v9107_v35  ;;  %3534 = vmatpush.bf16.msra.mxu1 %v9992_v49  ;;  %v10005_v49 = vld [vmem:[#allocation113_spill] sm:$0xff] }
 0x3b5   : > { %3607 = vmatpush.bf16.msrb.mxu0 %v9990_v55  ;;  %v3252_v55 = vadd.f32 %v3251_v9, %v3239_v17  ;;  %v10011_v9 = vld [vmem:[#allocation153_spill] sm:$0xff] }
 0x3b7   : > { %3522 = vmatpush.bf16.msra.mxu3 %v9991_v43  ;;  %3546 = vmatpush.bf16.msra.mxu2 %v9993_v30  ;;  %v3265_v43 = vadd.f32 %v3264_v41, %v3252_v55  ;;  %v10006_v30 = vld [vmem:[#allocation127_spill] sm:$0xff]  ;;  %v10018_v55 = vld [vmem:[#allocation126_spill] sm:$0xff] }
 0x3b8   : > { %3535 = vmatpush.bf16.msra.mxu1 %v9996_v25 }
 0x3b9   : > { %3608 = vmatpush.bf16.msrb.mxu0 %v9994_v48  ;;  %v10008_v48 = vld [vmem:[#allocation128_spill] sm:$0xff]  ;;  %v3345_v25 = vpop.f32.mrf.mxu0 }
 0x3ba   : > { %v3292_v41 = vpop.f32.mrf.mxu2 }
 0x3bb   : > { %3523 = vmatpush.bf16.msra.mxu3 %v9995_v0  ;;  %3547 = vmatpush.bf16.msra.mxu2 %v9998_v12  ;;  %v3278_v0 = vadd.f32 %v3277_v8, %v3265_v43  ;;  %v10012_v12 = vld [vmem:[#allocation133_spill] sm:$0xff]  ;;  %v10020_v43 = vld [vmem:[#allocation138_spill] sm:$0xff]  ;;  %v10031_v41 = vld [vmem:[#allocation151_spill] sm:$0xff] }
 0x3bc   : > { %3536 = vmatpush.bf16.msra.mxu1 %v10000_v42 }
 0x3bd   : > { %3609 = vmatpush.bf16.msrb.mxu0 %v9999_v10 }
 0x3be   : > { %3524 = vmatmul.bf16.vlgmr.msra.gmra.mxu3 %v9035_v51  ;;  %v3303_v10 = vpop.f32.mrf.mxu1 }
 0x3bf   : > { %3568 = vmatpush.bf16.msrb.mxu3 %v9997_v14  ;;  %3548 = vmatpush.bf16.msra.mxu2 %v10003_v2  ;;  %v3291_v14 = vadd.f32 %v3290_v16, %v3278_v0  ;;  %v10017_v2 = vld [vmem:[#allocation134_spill] sm:$0xff]  ;;  %v10019_v16 = vld [vmem:[#allocation141_spill] sm:$0xff] }
 0x3c0   : > { %3583 = vmatpush.bf16.msrb.mxu1 %v10002_v24  ;;  %v10016_v24 = vld [vmem:[#allocation137_spill] sm:$0xff]  ;;  %v10027_v0 = vld [vmem:[#allocation150_spill] sm:$0xff] }
 0x3c1   : > { %3610 = vmatpush.bf16.msrb.mxu0 %v8427_v18  ;;  %3537 = vmatmul.bf16.vlgmr.msra.gmra.mxu1 %v9074_v20  ;;  %v10010_v18 = vld [vmem:[#allocation118_spill] sm:$0xff]  ;;  %v3304_v42 = vadd.f32 %v3303_v10, %v3291_v14  ;;  %v3316_v17 = vpop.f32.mrf.mxu3 }
 0x3c2   : > { %v10033_v10 = vld [vmem:[#allocation158_spill] sm:$0xff] }
 0x3c3   : > { %3569 = vmatpush.bf16.msrb.mxu3 %v10001_v44  ;;  %3549 = vmatpush.bf16.msra.mxu2 %v10006_v30  ;;  %v10014_v44 = vld [vmem:[#allocation122_spill] sm:$0xff]  ;;  %v3317_v8 = vadd.f32 %v3316_v17, %v3304_v42 }
 0x3c4   : > { %3584 = vmatpush.bf16.msrb.mxu1 %v10005_v49  ;;  %v10021_v49 = vld [vmem:[#allocation131_spill] sm:$0xff] }
 0x3c5   : > { %3611 = vmatpush.bf16.msrb.mxu0 %v10007_v15  ;;  %3324 = vrot.lane.b32.xlu2 %v3317_v8, %s6007_s20  ;;  %v10022_v15 = vld [vmem:[#allocation117_spill] sm:$0xff]  ;;  %v10039_v8 = vld [vmem:[#allocation139_spill] sm:$0xff] }
 0x3c6   : > { %3550 = vmatmul.bf16.vlgmr.msra.gmra.mxu2 %v9096_v37 }
 0x3c7   : > { %3570 = vmatpush.bf16.msrb.mxu3 %v10004_v26  ;;  %3594 = vmatpush.bf16.msrb.mxu2 %v10008_v48  ;;  %v3305_v26 = vpop.f32.mrf.mxu1  ;;  %v10023_v48 = vld [vmem:[#allocation145_spill] sm:$0xff] }
 0x3c8   : > { %3585 = vmatpush.bf16.msrb.mxu1 %v10010_v18  ;;  %v10029_v18 = vld [vmem:[#allocation125_spill] sm:$0xff] }
 0x3c9   : > { %3612 = vmatpush.bf16.msrb.mxu0 %v10011_v9  ;;  %v3318_v30 = vpop.f32.mrf.mxu3 }
 0x3cb   : > { %3571 = vmatpush.bf16.msrb.mxu3 %v10009_v23  ;;  %3595 = vmatpush.bf16.msrb.mxu2 %v10012_v12  ;;  %v10024_v23 = vld [vmem:[#allocation142_spill] sm:$0xff] }
 0x3cc   : > { %3586 = vmatpush.bf16.msrb.mxu1 %v10014_v44  ;;  %v10032_v12 = vld [vmem:[#allocation130_spill] sm:$0xff]  ;;  %v10036_v44 = vld [vmem:[#allocation135_spill] sm:$0xff] }
 0x3cd   : > { %3613 = vmatpush.bf16.msrb.mxu0 %v10015_v28  ;;  %v10038_v28 = vld [vmem:[#allocation160_spill] sm:$0xff] }
 0x3cf   : > { %3572 = vmatpush.bf16.msrb.mxu3 %v10013_v45  ;;  %3596 = vmatpush.bf16.msrb.mxu2 %v10016_v24  ;;  %v10035_v45 = vld [vmem:[#allocation155_spill] sm:$0xff] }
 0x3d0   : > { %3587 = vmatpush.bf16.msrb.mxu1 %v10018_v55  ;;  %v10041_v55 = vld [vmem:[#allocation163_spill] sm:$0xff] }
 0x3d1   : > { %3614 = vmatpush.bf16.msrb.mxu0 %v8591_v50  ;;  %v10025_v50 = vld [vmem:[#allocation144_spill] sm:$0xff]  ;;  %v3395_v25 = vpop.f32.mrf.mxu0  ;;  %v3356_v9 = vpop.f32.mrf.mxu2 }
 0x3d2   : > { %v3357_v14 = vadd.f32 %v3356_v9, %v3343_v21  ;;  %v10037_v21 = vld [vmem:[#allocation162_spill] sm:$0xff] }
 0x3d3   : > { %3573 = vmatpush.bf16.msrb.mxu3 %v10017_v2  ;;  %3597 = vmatpush.bf16.msrb.mxu2 %v10019_v16  ;;  %v10040_v2 = vld [vmem:[#allocation165_spill] sm:$0xff]  ;;  %v10042_v16 = vld [vmem:[#allocation143_spill] sm:$0xff]  ;;  %v10059_v9 = vld [vmem:[#allocation178_spill] sm:$0xff] }
 0x3d4   : > { %3615 = vmatmul.bf16.vlgmr.msrb.gmra.mxu0 %v9889_v61  ;;  %3588 = vmatpush.bf16.msrb.mxu1 %v10021_v49  ;;  %v10028_v61 = vld [vmem:[#allocation147_spill] sm:$0xff]  ;;  %v10044_v49 = vld [vmem:[#allocation166_spill] sm:$0xff] }
 0x3d5   : > { %3659 = vmatpush.bf16.msra.mxu0 %v8603_v22  ;;  %v10026_v22 = vld [vmem:[#allocation121_spill] sm:$0xff] }
 0x3d7   : > { %3574 = vmatpush.bf16.msrb.mxu3 %v10020_v43  ;;  %3598 = vmatpush.bf16.msrb.mxu2 %v10023_v48  ;;  %v10049_v48 = vld [vmem:[#allocation152_spill] sm:$0xff] }
 0x3d8   : > { %3620 = vmatpush.bf16.msra.mxu1 %v10022_v15  ;;  %v10046_v15 = vld [vmem:[#allocation148_spill] sm:$0xff] }
 0x3d9   : > { %3660 = vmatpush.bf16.msra.mxu0 %v8641_v27  ;;  %5372 = vmatmul.msk.bf16.vlgmr.msrb.gmra.mxu1 %vm1130_vm4, %v9121_v36  ;;  %v10030_v27 = vld [vmem:[#allocation154_spill] sm:$0xff]  ;;  %v3397_v42 = vpop.f32.mrf.mxu0 }
 0x3db   : > { %3575 = vmatpush.bf16.msrb.mxu3 %v10024_v23  ;;  %3599 = vmatpush.bf16.msrb.mxu2 %v10027_v0  ;;  %v10050_v23 = vld [vmem:[#allocation174_spill] sm:$0xff]  ;;  %v10054_v0 = vld [vmem:[#allocation175_spill] sm:$0xff] }
 0x3dc   : > { %3621 = vmatpush.bf16.msra.mxu1 %v10026_v22 }
 0x3dd   : > { %3661 = vmatpush.bf16.msra.mxu0 %v8678_v63  ;;  %v10034_v63 = vld [vmem:[#allocation159_spill] sm:$0xff] }
 0x3de   : > { %3576 = vmatmul.bf16.vlgmr.msrb.gmra.mxu3 %v9084_v1  ;;  %v3382_v17 = vpop.f32.mrf.mxu1 }
 0x3df   : > { %3633 = vmatpush.bf16.msra.mxu3 %v10025_v50  ;;  %3600 = vmatpush.bf16.msrb.mxu2 %v10030_v27 }
 0x3e0   : > { %3622 = vmatpush.bf16.msra.mxu1 %v10029_v18  ;;  %v10058_v18 = vld [vmem:[#allocation179_spill] sm:$0xff] }
 0x3e1   : > { %3662 = vmatpush.bf16.msra.mxu0 %v8716_v5  ;;  %v3358_v5 = vpop.f32.mrf.mxu2 }
 0x3e3   : > { %3634 = vmatpush.bf16.msra.mxu3 %v10028_v61  ;;  %3601 = vmatpush.bf16.msrb.mxu2 %v10033_v10  ;;  %v10055_v61 = vld [vmem:[#allocation161_spill] sm:$0xff]  ;;  %v10063_v10 = vld [vmem:[#allocation172_spill] sm:$0xff] }
 0x3e4   : > { %3623 = vmatpush.bf16.msra.mxu1 %v10032_v12 }
 0x3e5   : > { %3663 = vmatpush.bf16.msra.mxu0 %v8747_v47  ;;  %v3369_v47 = vpop.f32.mrf.mxu3 }
 0x3e6   : > { %3602 = vmatmul.bf16.vlgmr.msrb.gmra.mxu2 %v6950_v32  ;;  %v3370_v24 = vadd.f32 %v3369_v47, %v3357_v14  ;;  %v3384_v43 = vpop.f32.mrf.mxu1 }
 0x3e7   : > { %3635 = vmatpush.bf16.msra.mxu3 %v10031_v41  ;;  %3646 = vmatpush.bf16.msra.mxu2 %v10034_v63  ;;  %v10062_v41 = vld [vmem:[#allocation170_spill] sm:$0xff] }
 0x3e8   : > { %3624 = vmatpush.bf16.msra.mxu1 %v10036_v44  ;;  %v3383_v32 = vadd.f32 %v3382_v17, %v3370_v24 }
 0x3e9   : > { %3664 = vmatpush.bf16.msra.mxu0 %v8777_v62  ;;  %v10043_v62 = vld [vmem:[#allocation168_spill] sm:$0xff] }
 0x3ea   : > { %v3396_v26 = vadd.f32 %v3395_v25, %v3383_v32  ;;  %v10057_v25 = vld [vmem:[#allocation164_spill] sm:$0xff] }
 0x3eb   : > { %3636 = vmatpush.bf16.msra.mxu3 %v10035_v45  ;;  %3647 = vmatpush.bf16.msra.mxu2 %v10037_v21 }
 0x3ec   : > { %3625 = vmatpush.bf16.msra.mxu1 %v10039_v8 }
 0x3ed   : > { %3665 = vmatpush.bf16.msra.mxu0 %v8812_v4  ;;  %v10045_v4 = vld [vmem:[#allocation146_spill] sm:$0xff]  ;;  %v3371_v30 = vpop.f32.mrf.mxu3 }
 0x3ef   : > { %3637 = vmatpush.bf16.msra.mxu3 %v10038_v28  ;;  %3648 = vmatpush.bf16.msra.mxu2 %v10040_v2 }
 0x3f0   : > { %3626 = vmatpush.bf16.msra.mxu1 %v10042_v16 }
 0x3f1   : > { %3666 = vmatpush.bf16.msra.mxu0 %v8849_v56  ;;  %v10047_v56 = vld [vmem:[#allocation169_spill] sm:$0xff]  ;;  %v3447_v50 = vpop.f32.mrf.mxu0 }
 0x3f3   : > { %3638 = vmatpush.bf16.msra.mxu3 %v10041_v55  ;;  %3649 = vmatpush.bf16.msra.mxu2 %v10043_v62 }
 0x3f4   : > { %3667 = vmatmul.bf16.vlgmr.msra.gmra.mxu0 %v9074_v20  ;;  %3627 = vmatpush.bf16.msra.mxu1 %v10045_v4  ;;  %v10051_v20 = vld [vmem:[#allocation173_spill] sm:$0xff] }
 0x3f5   : > { %3713 = vmatpush.bf16.msrb.mxu0 %v8858_v34  ;;  %v10048_v34 = vld [vmem:[#allocation171_spill] sm:$0xff] }
 0x3f7   : > { %3639 = vmatpush.bf16.msra.mxu3 %v10044_v49  ;;  %3650 = vmatpush.bf16.msra.mxu2 %v8725_v46  ;;  %v10052_v46 = vld [vmem:[#allocation156_spill] sm:$0xff] }
 0x3f8   : > { %3672 = vmatpush.bf16.msrb.mxu1 %v10046_v15 }
 0x3f9   : > { %3714 = vmatpush.bf16.msrb.mxu0 %v8888_v11  ;;  %3628 = vmatmul.bf16.vlgmr.msra.gmra.mxu1 %v9903_v33  ;;  %v10053_v11 = vld [vmem:[#allocation176_spill] sm:$0xff]  ;;  %v3408_v33 = vpop.f32.mrf.mxu2 }
 0x3fa   : > { %v3409_v22 = vadd.f32 %v3408_v33, %v3396_v26 }
 0x3fb   : > { %3640 = vmatpush.bf16.msra.mxu3 %v10047_v56  ;;  %3651 = vmatpush.bf16.msra.mxu2 %v10050_v23 }
 0x3fc   : > { %3673 = vmatpush.bf16.msrb.mxu1 %v10049_v48 }
 0x3fd   : > { %3715 = vmatpush.bf16.msrb.mxu0 %v8917_v52  ;;  %v10056_v52 = vld [vmem:[#allocation177_spill] sm:$0xff] }
 0x3fe   : > { %3641 = vmatmul.bf16.vlgmr.msra.gmra.mxu3 %v9055_v13  ;;  %v3449_v13 = vpop.f32.mrf.mxu0  ;;  %v3434_v27 = vpop.f32.mrf.mxu1 }
 0x3ff   : > { %3685 = vmatpush.bf16.msrb.mxu3 %v10048_v34  ;;  %3652 = vmatpush.bf16.msra.mxu2 %v10053_v11 }
 0x400   : > { %3674 = vmatpush.bf16.msrb.mxu1 %v10052_v46 }
 0x401   : > { %3716 = vmatpush.bf16.msrb.mxu0 %v8939_v57  ;;  %v3410_v57 = vpop.f32.mrf.mxu2 }
 0x403   : > { %3686 = vmatpush.bf16.msrb.mxu3 %v10051_v20  ;;  %3653 = vmatpush.bf16.msra.mxu2 %v8821_v39  ;;  %v10060_v39 = vld [vmem:[#allocation167_spill] sm:$0xff] }
 0x404   : > { %3675 = vmatpush.bf16.msrb.mxu1 %v10055_v61 }
 0x405   : > { %3717 = vmatpush.bf16.msrb.mxu0 %v8960_v58 }
 0x406   : > { %3654 = vmatmul.bf16.vlgmr.msra.gmra.mxu2 %v9035_v51  ;;  %v10061_v51 = vld [vmem:[#allocation180_spill] sm:$0xff]  ;;  %v3436_v12 = vpop.f32.mrf.mxu1 }
 0x407   : > { %3687 = vmatpush.bf16.msrb.mxu3 %v10054_v0  ;;  %3698 = vmatpush.bf16.msrb.mxu2 %v8830_v29  ;;  %v3421_v29 = vpop.f32.mrf.mxu3 }
 0x408   : > { %3676 = vmatpush.bf16.msrb.mxu1 %v10057_v25  ;;  %v3422_v58 = vadd.f32 %v3421_v29, %v3409_v22 }
 0x409   : > { %3718 = vmatpush.bf16.msrb.mxu0 %v8982_v3  ;;  %v3460_v63 = vpop.f32.mrf.mxu2 }
 0x40a   : > { %v3435_v14 = vadd.f32 %v3434_v27, %v3422_v58 }
 0x40b   : > { %3688 = vmatpush.bf16.msrb.mxu3 %v10056_v52  ;;  %3699 = vmatpush.bf16.msrb.mxu2 %v10058_v18 }
 0x40c   : > { %5373 = vmatmul.msk.bf16.vlgmr.msrb.gmra.mxu0 %vm1130_vm4, %v9121_v36  ;;  %3677 = vmatpush.bf16.msrb.mxu1 %v10060_v39  ;;  %v3448_v3 = vadd.f32 %v3447_v50, %v3435_v14 }
 0x40f   : > { %3689 = vmatpush.bf16.msrb.mxu3 %v10059_v9  ;;  %3700 = vmatpush.bf16.msrb.mxu2 %v8891_v60  ;;  %v3423_v36 = vpop.f32.mrf.mxu3  ;;  %v9291_v60 = vadd.f32 %v3460_v63, %v3448_v3  ;;  %v5853_v63 = vld [vmem:[%s9527_s5 + $0x30] sm:$0xff] }
 0x410   : > { %3678 = vmatpush.bf16.msrb.mxu1 %v10062_v41  ;;  %v5854_v36 = vld [vmem:[%s9527_s5 + $0x38] sm:$0xff] }
 0x413   : > { %3690 = vmatpush.bf16.msrb.mxu3 %v10061_v51  ;;  %3701 = vmatpush.bf16.msrb.mxu2 %v8920_v19  ;;  %v3512_v19 = vpop.f32.mrf.mxu0 }
 0x414   : > { %3679 = vmatpush.bf16.msrb.mxu1 %v10063_v10 }
 0x417   : > { %3691 = vmatpush.bf16.msrb.mxu3 %v8901_v7  ;;  %3702 = vmatpush.bf16.msrb.mxu2 %v8942_v53  ;;  %v3462_v7 = vpop.f32.mrf.mxu2 }
 0x418   : > { %3680 = vmatmul.bf16.vlgmr.msrb.gmra.mxu1 %v9096_v37  ;;  %v5851_v7 = vld [vmem:[%s9527_s5 + $0x20] sm:$0xff] }
 0x419   : > { %4097 = vmatpush.bf16.msra.mxu1 %v5854_v36  ;;  %v5875_v36 = vld [vmem:[%s9527_s5 + $0xe0] sm:$0xff] }
 0x41b   : > { %3692 = vmatpush.bf16.msrb.mxu3 %v8930_v31  ;;  %3703 = vmatpush.bf16.msrb.mxu2 %v8964_v59  ;;  %v3514_v45 = vpop.f32.mrf.mxu0 }
 0x41c   : > { %v5850_v45 = vld [vmem:[%s9527_s5 + $0x18] sm:$0xff] }
 0x41d   : > { %4098 = vmatpush.bf16.msra.mxu1 %v5853_v63  ;;  %v5883_v63 = vld [vmem:[%s9527_s5 + $0x120] sm:$0xff] }
 0x41e   : > { %3693 = vmatmul.bf16.vlgmr.msrb.gmra.mxu3 %v9107_v35  ;;  %v3486_v53 = vpop.f32.mrf.mxu1 }
 0x41f   : > { %3704 = vmatpush.bf16.msrb.mxu2 %v8986_v38 }
 0x421   : > { %v3473_v42 = vpop.f32.mrf.mxu3 }
 0x422   : > { %v3487_v47 = vadd.f32 %v3486_v53, %v3473_v42  ;;  %v5849_v53 = vld [vmem:[%s9527_s5 + $0x10] sm:$0xff]  ;;  %v5848_v42 = vld [vmem:[%s9527_s5 + $0x8] sm:$0xff] }
 0x423   : > { %3705 = vmatpush.bf16.msrb.mxu2 %v8999_v40 }
 0x426   : > { %3706 = vmatmul.bf16.vlgmr.msrb.gmra.mxu2 %v9084_v1  ;;  %v3488_v37 = vpop.f32.mrf.mxu1 }
 0x427   : > { %v5847_v37 = vld [vmem:[%s9527_s5] sm:$0xff] }
 0x429   : > { %v3475_v44 = vpop.f32.mrf.mxu3  ;;  %v3499_v31 = vpop.f32.mrf.mxu2 }
 0x42a   : > { %v3500_v24 = vadd.f32 %v3499_v31, %v3487_v47  ;;  %v3323_v44 = vpop.permute.xlu1 %3322  ;;  %v5862_v31 = vld [vmem:[%s9527_s5 + $0x78] sm:$0xff] }
 0x42b   : > { %4110 = vmatpush.bf16.msra.mxu3 %v5862_v31  ;;  %v5863_v31 = vld [vmem:[%s9527_s5 + $0x80] sm:$0xff] }
 0x42c   : > { %v3513_v2 = vadd.f32 %v3512_v19, %v3500_v24  ;;  %v5852_v19 = vld [vmem:[%s9527_s5 + $0x28] sm:$0xff] }
 0x42d   : > { %4099 = vmatpush.bf16.msra.mxu1 %v5852_v19  ;;  %v5887_v19 = vld [vmem:[%s9527_s5 + $0x140] sm:$0xff] }
 0x431   : > { %v3564_v5 = vpop.f32.mrf.mxu0  ;;  %v3501_v21 = vpop.f32.mrf.mxu2  ;;  %4100 = vmatpush.bf16.msra.mxu1 %v5851_v7  ;;  %v5865_v7 = vld [vmem:[%s9527_s5 + $0x90] sm:$0xff] }
 0x432   : > { %v5861_v21 = vld [vmem:[%s9527_s5 + $0x70] sm:$0xff] }
 0x433   : > { %4111 = vmatpush.bf16.msra.mxu3 %v5861_v21  ;;  %v5880_v21 = vld [vmem:[%s9527_s5 + $0x108] sm:$0xff] }
 0x435   : > { %4101 = vmatpush.bf16.msra.mxu1 %v5850_v45  ;;  %v5874_v45 = vld [vmem:[%s9527_s5 + $0xd8] sm:$0xff] }
 0x439   : > { %v3566_v17 = vpop.f32.mrf.mxu0  ;;  %4102 = vmatpush.bf16.msra.mxu1 %v5849_v53  ;;  %v5882_v53 = vld [vmem:[%s9527_s5 + $0x118] sm:$0xff] }
 0x43a   : > { %v738_v17 = vld [vmem:[%s9526_s4] sm:$0x3] }
 0x43b   : > { %v3739_v47 = vperm.slane %v738_v17, 1 }
 0x43d   : > { %4103 = vmatpush.bf16.msra.mxu1 %v5848_v42  ;;  %v5864_v42 = vld [vmem:[%s9527_s5 + $0x88] sm:$0xff] }
 0x43e   : > { %v3538_v59 = vpop.f32.mrf.mxu1 }
 0x441   : > { %v3525_v28 = vpop.f32.mrf.mxu3  ;;  %4104 = vmatpush.bf16.msra.mxu1 %v5847_v37  ;;  %v5873_v37 = vld [vmem:[%s9527_s5 + $0xd0] sm:$0xff] }
 0x442   : > { %v3526_v55 = vadd.f32 %v3525_v28, %v3513_v2  ;;  %v5860_v2 = vld [vmem:[%s9527_s5 + $0x68] sm:$0xff] }
 0x443   : > { %4112 = vmatpush.bf16.msra.mxu3 %v5860_v2 }
 0x444   : > { %v3539_v16 = vadd.f32 %v3538_v59, %v3526_v55  ;;  %v3738_v55 = vperm.slane %v738_v17, 0  ;;  %v5896_v17 = vld [vmem:[%s9527_s5 + $0x188] sm:$0xff] }
 0x446   : > { %v3540_v35 = vpop.f32.mrf.mxu1 }
 0x449   : > { %v3527_v8 = vpop.f32.mrf.mxu3  ;;  %v3551_v38 = vpop.f32.mrf.mxu2 }
 0x44a   : > { %v3552_v62 = vadd.f32 %v3551_v38, %v3539_v16 }
 0x44c   : > { %v3565_v49 = vadd.f32 %v3564_v5, %v3552_v62  ;;  %v3325_v5 = vpop.permute.xlu2 %3324 }
 0x44d   : > { %v3326_v59 = vsel %vm1130_vm4, %v3323_v44, %v3325_v5  ;;  %v3330_v8 = vmax.f32 %v9115_v54, %v3325_v5  ;;  %v5870_v54 = vld [vmem:[%s9527_s5 + $0xb8] sm:$0xff]  ;;  %v5881_v44 = vld [vmem:[%s9527_s5 + $0x110] sm:$0xff]  ;;  %v5872_v5 = vld [vmem:[%s9527_s5 + $0xc8] sm:$0xff] }
 0x44e   : > { %4123 = vmatpush.bf16.msra.mxu0 %v5870_v54 }
 0x451   : > { %v3616_v40 = vpop.f32.mrf.mxu0  ;;  %v3553_v32 = vpop.f32.mrf.mxu2 }
 0x456   : > { %v3590_v1 = vpop.f32.mrf.mxu1 }
 0x459   : > { %v3618_v26 = vpop.f32.mrf.mxu0 }
 0x45a   : > { %v5859_v26 = vld [vmem:[%s9527_s5 + $0x60] sm:$0xff] }
 0x45b   : > { %4113 = vmatpush.bf16.msra.mxu3 %v5859_v26 }
 0x45e   : > { %v3592_v43 = vpop.f32.mrf.mxu1 }
 0x461   : > { %v3577_v4 = vpop.f32.mrf.mxu3 }
 0x462   : > { %v3578_v30 = vadd.f32 %v3577_v4, %v3565_v49  ;;  %v5858_v4 = vld [vmem:[%s9527_s5 + $0x58] sm:$0xff] }
 0x463   : > { %4114 = vmatpush.bf16.msra.mxu3 %v5858_v4 }
 0x464   : > { %v9298_v15 = vadd.f32 %v3590_v1, %v3578_v30 }
 0x466   : > { %3726 = vrot.lane.b32.xlu0 %v9298_v15, %s6007_s20 }
 0x469   : > { %v3579_v56 = vpop.f32.mrf.mxu3  ;;  %v3603_v34 = vpop.f32.mrf.mxu2 }
 0x46a   : > { %v3617_v25 = vadd.f32 %v3616_v40, %v3603_v34  ;;  %v3329_v40 = vmax.f32 %v9013_v6, %v3326_v59  ;;  %v5869_v6 = vld [vmem:[%s9527_s5 + $0xb0] sm:$0xff]  ;;  %v5871_v59 = vld [vmem:[%s9527_s5 + $0xc0] sm:$0xff] }
 0x46b   : > { %4124 = vmatpush.bf16.msra.mxu0 %v5869_v6  ;;  %v5857_v34 = vld [vmem:[%s9527_s5 + $0x50] sm:$0xff] }
 0x46c   : > { %4115 = vmatpush.bf16.msra.mxu3 %v5857_v34 }
 0x471   : > { %v3668_v48 = vpop.f32.mrf.mxu0  ;;  %v3605_v23 = vpop.f32.mrf.mxu2 }
 0x476   : > { %v3629_v20 = vpop.f32.mrf.mxu1 }
 0x477   : > { %v3630_v57 = vadd.f32 %v3629_v20, %v3617_v25  ;;  %v5892_v25 = vld [vmem:[%s9527_s5 + $0x168] sm:$0xff] }
 0x479   : > { %v3670_v50 = vpop.f32.mrf.mxu0 }
 0x47e   : > { %v3631_v46 = vpop.f32.mrf.mxu1 }
 0x481   : > { %v3642_v11 = vpop.f32.mrf.mxu3 }
 0x482   : > { %v3643_v27 = vadd.f32 %v3642_v11, %v3630_v57  ;;  %v5856_v11 = vld [vmem:[%s9527_s5 + $0x48] sm:$0xff]  ;;  %v5891_v57 = vld [vmem:[%s9527_s5 + $0x160] sm:$0xff] }
 0x483   : > { %4116 = vmatpush.bf16.msra.mxu3 %v5856_v11 }
 0x489   : > { %v3644_v33 = vpop.f32.mrf.mxu3  ;;  %v3720_v22 = vpop.f32.mrf.mxu0 }
 0x48a   : > { %v3655_v0 = vpop.f32.mrf.mxu2  ;;  %v5855_v33 = vld [vmem:[%s9527_s5 + $0x40] sm:$0xff] }
 0x48b   : > { %v3656_v39 = vadd.f32 %v3655_v0, %v3643_v27  ;;  %4117 = vmatpush.bf16.msra.mxu3 %v5855_v33  ;;  %v5886_v27 = vld [vmem:[%s9527_s5 + $0x138] sm:$0xff] }
 0x48c   : > { %4149 = vmatpush.bf16.msrb.mxu1 %v5886_v27 }
 0x48d   : > { %v3669_v29 = vadd.f32 %v3668_v48, %v3656_v39  ;;  %v5868_v39 = vld [vmem:[%s9527_s5 + $0xa8] sm:$0xff] }
 0x48e   : > { %4125 = vmatpush.bf16.msra.mxu0 %v5868_v39 }
 0x491   : > { %v3722_v61 = vpop.f32.mrf.mxu0 }
 0x492   : > { %v3657_v52 = vpop.f32.mrf.mxu2 }
 0x495   : > { %v3681_v13 = vpop.f32.mrf.mxu1 }
 0x496   : > { %v3682_v58 = vadd.f32 %v3681_v13, %v3669_v29  ;;  %v5893_v13 = vld [vmem:[%s9527_s5 + $0x170] sm:$0xff] }
 0x497   : > { %v5877_v29 = vld [vmem:[%s9527_s5 + $0xf0] sm:$0xff] }
 0x49d   : > { %v3683_v18 = vpop.f32.mrf.mxu1 }
 0x49e   : > { %v5878_v18 = vld [vmem:[%s9527_s5 + $0xf8] sm:$0xff] }
 0x49f   : > { %4136 = vmatpush.bf16.msra.mxu2 %v5878_v18 }
 0x4a1   : > { %v3694_v9 = vpop.f32.mrf.mxu3 }
 0x4a2   : > { %v3695_v14 = vadd.f32 %v3694_v9, %v3682_v58  ;;  %v5890_v9 = vld [vmem:[%s9527_s5 + $0x158] sm:$0xff]  ;;  %v5885_v58 = vld [vmem:[%s9527_s5 + $0x130] sm:$0xff] }
 0x4a3   : > { %4137 = vmatpush.bf16.msra.mxu2 %v5877_v29  ;;  %4150 = vmatpush.bf16.msrb.mxu1 %v5885_v58 }
 0x4a9   : > { %v3696_v51 = vpop.f32.mrf.mxu3  ;;  %v3707_v41 = vpop.f32.mrf.mxu2 }
 0x4aa   : > { %v3708_v3 = vadd.f32 %v3707_v41, %v3695_v14  ;;  %v5889_v51 = vld [vmem:[%s9527_s5 + $0x150] sm:$0xff]  ;;  %v5867_v14 = vld [vmem:[%s9527_s5 + $0xa0] sm:$0xff]  ;;  %v5876_v41 = vld [vmem:[%s9527_s5 + $0xe8] sm:$0xff] }
 0x4ab   : > { %4126 = vmatpush.bf16.msra.mxu0 %v5867_v14  ;;  %4138 = vmatpush.bf16.msra.mxu2 %v5876_v41 }
 0x4ac   : > { %v3721_v12 = vadd.f32 %v3720_v22, %v3708_v3  ;;  %v5894_v22 = vld [vmem:[%s9527_s5 + $0x178] sm:$0xff]  ;;  %v5884_v3 = vld [vmem:[%s9527_s5 + $0x128] sm:$0xff] }
 0x4ad   : > { %4162 = vmatpush.bf16.msrb.mxu3 %v5894_v22  ;;  %4151 = vmatpush.bf16.msrb.mxu1 %v5884_v3 }
 0x4ae   : > { %3728 = vrot.lane.b32.xlu1 %v3721_v12, %s6007_s20  ;;  %v5888_v12 = vld [vmem:[%s9527_s5 + $0x148] sm:$0xff] }
 0x4af   : > { %4139 = vmatpush.bf16.msra.mxu2 %v5875_v36 }
 0x4b1   : > { %v3709_v10 = vpop.f32.mrf.mxu2  ;;  %4163 = vmatpush.bf16.msrb.mxu3 %v5893_v13  ;;  %4152 = vmatpush.bf16.msrb.mxu1 %v5883_v63 }
 0x4b2   : > { %v5866_v10 = vld [vmem:[%s9527_s5 + $0x98] sm:$0xff] }
 0x4b3   : > { %4127 = vmatpush.bf16.msra.mxu0 %v5866_v10  ;;  %4140 = vmatpush.bf16.msra.mxu2 %v5874_v45 }
 0x4b5   : > { %4164 = vmatpush.bf16.msrb.mxu3 %v5892_v25  ;;  %4153 = vmatpush.bf16.msrb.mxu1 %v5882_v53 }
 0x4b7   : > { %4128 = vmatpush.bf16.msra.mxu0 %v5865_v7  ;;  %4141 = vmatpush.bf16.msra.mxu2 %v5873_v37 }
 0x4b9   : > { %4165 = vmatpush.bf16.msrb.mxu3 %v5891_v57  ;;  %4154 = vmatpush.bf16.msrb.mxu1 %v5881_v44 }
 0x4bb   : > { %4129 = vmatpush.bf16.msra.mxu0 %v5864_v42  ;;  %4142 = vmatpush.bf16.msra.mxu2 %v5872_v5 }
 0x4bd   : > { %4166 = vmatpush.bf16.msrb.mxu3 %v5890_v9  ;;  %4155 = vmatpush.bf16.msrb.mxu1 %v5880_v21 }
 0x4bf   : > { %4130 = vmatpush.bf16.msra.mxu0 %v5863_v31  ;;  %4143 = vmatpush.bf16.msra.mxu2 %v5871_v59 }
 0x4c1   : > { %4167 = vmatpush.bf16.msrb.mxu3 %v5889_v51 }
 0x4c3   : > { %4181 = vmatpush.bf16.msrb.mxu0 %v5896_v17 }
 0x4c5   : > { %4168 = vmatpush.bf16.msrb.mxu3 %v5888_v12 }
 0x4c9   : > { %4169 = vmatpush.bf16.msrb.mxu3 %v5887_v19 }
 0x4d8   : > { %v3727_v28 = vpop.permute.xlu0 %3726 }
 0x520   : > { %v3729_v35 = vpop.permute.xlu1 %3728 }
 0x521   : > { %v3730_v38 = vsel %vm1130_vm4, %v3727_v28, %v3729_v35  ;;  %v3734_v24 = vmax.f32 %v9298_v15, %v3729_v35  ;;  %v5879_v28 = vld [vmem:[%s9527_s5 + $0x100] sm:$0xff] }
 0x522   : > { %v3733_v32 = vmax.f32 %v9291_v60, %v3730_v38  ;;  %4156 = vmatpush.bf16.msrb.mxu1 %v5879_v28 }
 0x523   : > { %v3736_v1 = vmax.f32 %v3330_v8, %v3734_v24 }
 0x524   : > { %v3735_v16 = vmax.f32 %v3329_v40, %v3733_v32 }
 0x525   : > { %v3743_v62 = vadd.f32 %v3739_v47, %v3736_v1  ;;  %v5895_v47 = vld [vmem:[%s9527_s5 + $0x180] sm:$0xff] }
 0x526   : > { %v3742_v43 = vadd.f32 %v3738_v55, %v3735_v16  ;;  %4182 = vmatpush.bf16.msrb.mxu0 %v5895_v47 }
 0x527   : > { %v3745_v49 = vmax.f32 %v3743_v62, 0.0 }
 0x528   : > { %v3744_v60 = vmax.f32 %v3742_v43, 0.0 }
 0x52a   : > { %v3746_v30 = vpack.c.bf16 %v3745_v49, %v3744_v60 }
 0x52c   : > { %v3748_v15 = vunpack.c.l.b16 %v3746_v30  ;;  %v3749_v56 = vunpack.c.h.b16 %v3746_v30 }
 0x52e   : > { %v9360_v48 = vpack.c.b16 %v3748_v15, %v3748_v15  ;;  %v9362_v23 = vpack.c.b16 %v3749_v56, %v3749_v56  ;;  %v739_v56 = vld [vmem:[%s9528_s6] sm:$0x1] }
 0x530   : > { %4105 = vmatmul.bf16.vlgmr.msra.gmra.mxu1 %v9360_v48  ;;  %v3757_v20 = vshrl.u32 %v9362_v23, 16  ;;  %v3764_v50 = vrot.slane %v9360_v48, 1  ;;  %v3754_v46 = vshrl.u32 %v9360_v48, 16  ;;  %v3765_v52 = vrot.slane %v9362_v23, 1 }
 0x531   : > { %v3780_v38 = vrot.slane %v9360_v48, 2  ;;  %v3781_v6 = vrot.slane %v9362_v23, 2 }
 0x532   : > { %3761 = vrot.lane.b32.xlu0 %v3757_v20, %s6008_s16  ;;  %3766 = vrot.lane.b32.xlu1 %v3764_v50, %s10064_s21  ;;  %v3772_v0 = vrot.slane %v3757_v20, 1  ;;  %v3771_v61 = vrot.slane %v3754_v46, 1 }
 0x533   : > { %3759 = vrot.lane.b32.xlu2 %v3754_v46, %s6008_s16  ;;  %s4203_s16 = sshll.u32 %s4199_s23, 4  ;;  %s4204_s16 = int_to_ptr.hbm [resolvable:$true] %s4203_s16 }
 0x534   : > { %s5955_s13 = sshra.s32 %s4204_s16, 4  ;;  %s5956_s13 = int_to_ptr.hbm [resolvable:$true] %s5955_s13 }
 0x535   : > { %s5957_s14 = scalar_lea.hbm %s5956_s13, 1  ;;  %p5962_p0 = scmp.lt.s32.totalorder %s5956_s13, %s9529_s7 }
 0x536   : > { %p5958_p11 = scmp.ne.s32.totalorder %s5956_s13, %s5957_s14  ;;  %p5963_p1 = scmp.lt.s32.totalorder %s5961_s15, %s5957_s14 }
 0x538   : > { %p5959_p12 = pnand %p5958_p11, %p6088_p5  ;;  %p5964_p2 = por %p5963_p1, %p5962_p0 }
 0x53a   : > { %3775 = vrot.lane.b32.xlu1 %v3772_v0, %s6007_s20  ;;  %3773 = vrot.lane.b32.xlu0 %v3771_v61, %s6007_s20  ;;  %p5960_p13 = pneg %p5959_p12 }
 0x53b   : > { %3768 = vrot.lane.b32.xlu2 %v3765_v52, %s10064_s21 }
 0x53c   : > { %p5965_p3 = pnand %p5964_p2, %p5960_p13 }
 0x58d   : > { %v3760_v35 = vpop.permute.xlu2 %3759 }
 0x58e   : > { %v3784_v8 = vsel %vm1558_vm5, %v9362_v23, %v3760_v35 }
 0x58f   : > { %4118 = vmatmul.bf16.vlgmr.msra.gmra.mxu3 %v3784_v8 }
 0x595   : > { %v3769_v32 = vpop.permute.xlu2 %3768 }
 0x59f   : > { %4170 = vmatmul.bf16.vlgmr.msrb.gmra.mxu3 %v3780_v38 }
 0x5a4   : > { %v3762_v24 = vpop.permute.xlu0 %3761  ;;  %v3767_v2 = vpop.permute.xlu1 %3766 }
 0x5a5   : > { %v3763_v40 = vsel %vm1558_vm5, %v3760_v35, %v3762_v24  ;;  %v3770_v1 = vsel %vm1600_vm6, %v3767_v2, %v3769_v32 }
 0x5a6   : > { %v3788_v55 = vsel %vm1600_vm6, %v3763_v40, %v3767_v2 }
 0x5a7   : > { %4131 = vmatmul.bf16.vlgmr.msra.gmra.mxu0 %v3788_v55 }
 0x5ac   : > { %v3776_v54 = vpop.permute.xlu1 %3775  ;;  %v3774_v16 = vpop.permute.xlu0 %3773 }
 0x5ad   : > { %v3778_v62 = vsel %vm1130_vm4, %v3774_v16, %v3776_v54  ;;  %v3792_v26 = vsel %vm1130_vm4, %v3770_v1, %v3774_v16  ;;  %v4106_v43 = vpop.f32.mrf.mxu1 }
 0x5ae   : > { %4144 = vmatmul.bf16.vlgmr.msra.gmra.mxu2 %v3792_v26  ;;  %4157 = vmatmul.bf16.vlgmr.msrb.gmra.mxu1 %v3778_v62  ;;  %v4107_v20 = vadd.f32 %v4106_v43, %v739_v56 }
 0x5b5   : > { %v4108_v49 = vpop.f32.mrf.mxu1 }
 0x5b7   : > { %5574 = vmatmul.msk.bf16.vlgmr.msrb.gmra.mxu0 %vm1558_vm5, %v3781_v6 }
 0x612   : > { %v4119_v60 = vpop.f32.mrf.mxu3 }
 0x613   : > { %v4120_v46 = vadd.f32 %v4119_v60, %v4107_v20 }
 0x61a   : > { %v4121_v4 = vpop.f32.mrf.mxu3 }
 0x622   : > { %v4171_v30 = vpop.f32.mrf.mxu3 }
 0x624   : > { %v4132_v15 = vpop.f32.mrf.mxu0 }
 0x625   : > { %v4133_v11 = vadd.f32 %v4132_v15, %v4120_v46 }
 0x62a   : > { %v4173_v34 = vpop.f32.mrf.mxu3 }
 0x62b   : > { %v4158_v48 = vpop.f32.mrf.mxu1 }
 0x62c   : > { %v4134_v50 = vpop.f32.mrf.mxu0 }
 0x631   : > { %v4145_v33 = vpop.f32.mrf.mxu2 }
 0x632   : > { %v4146_v23 = vadd.f32 %v4145_v33, %v4133_v11 }
 0x633   : > { %v4160_v22 = vpop.f32.mrf.mxu1 }
 0x634   : > { %v4159_v0 = vadd.f32 %v4158_v48, %v4146_v23  ;;  %v4184_v61 = vpop.f32.mrf.mxu0 }
 0x636   : > { %v4172_v52 = vadd.f32 %v4171_v30, %v4159_v0 }
 0x638   : > { %v4185_v13 = vadd.f32 %v4184_v61, %v4172_v52 }
 0x639   : > { %v4147_v25 = vpop.f32.mrf.mxu2 }
 0x63a   : > { %4189 = vst.msk [vmem:[%s270_s29] sm:$0x1] %vm4188_vm7, %v4185_v13 }
 0x63b   : > { %5968 = shalt.err (!%p5965_p3)
}
 0x63c   : > { %5897 = dma.vmem_to_hbm [thread:$0]  (%p6088_p5), %s4202_s19, 16, %s4204_s16, %s4191_s9   ;;  %v4186_v57 = vpop.f32.mrf.mxu0 }
 0x63d PF: > { %p5903_p4 = scmp.ge.s32.totalorder %s6003_s27, 2  ;;  %s4215_s18 = sand.u32 1, %s5991_s24  }
 0x63e   : > { %s4216_s21 = scalar_lea.sflag [#allocation3], %s4215_s18 }
 0x63f   : > { %p5900_p7 = pnand %p5903_p4, %p6092_p6 }
 0x641   : > { %p5901_p8 = pneg %p5900_p7 }
 0x643   : > { %5986 = dma.done.wait (%p5901_p8), %s4216_s21, 16  }
 0x644   : > { %5988 = vsyncadd (%p5901_p8), %s4216_s21, 4294967280  ;;  %p17_p9 = scmp.ge.s32.totalorder %s6075_s30, 4   ;;  %s10065_s24 = smov %s5995_s25 }
 0x645   : > { %s10066_s25 = smov %s5999_s26  ;;  %s10067_s26 = smov %s6086_s10 }
 0x646   : > { %s10068_s27 = smov %s6075_s30  ;;  %19 = sbr.rel (!%p17_p9) target bundleno = 3 (0x3), region = 83 }
 0x64b   :  { %4221 = vsyncpa [#allocation3], 1 }
 0x64c   :  { %4223 = vsyncpa [#allocation3 + $0x1], 1 }

</bundles_post_ra>
